<compile_context>
chip_gen: v5e
topology: v5e:2x2
jax: 0.10.0
libtpu: 0.0.40
codegen_flags: <defaults>
</compile_context>

<pallas_src>
import functools

import jax
import jax.numpy as jnp
from jax.experimental import pallas as pl
from jax.experimental.pallas import tpu as pltpu

EPS = 1e-5          # torch.nn.GroupNorm default eps
NUM_GROUPS = 32     # normalization() helper uses GroupNorm32(32, channels)


# ---------------------------------------------------------------------------
# Kernel 1: GroupNorm statistics (tiled over H, one-pass sum / sum-of-squares).
# Emits per-(sample, channel) affine scale/shift so the conv kernels can apply
# the whole GroupNorm + gamma/beta with one multiply-add.
# ---------------------------------------------------------------------------
def _gn_stats_kernel(x_ref, g_ref, gt_ref, gamma_ref, beta_ref,
                     scale_ref, shift_ref, s1_ref, s2_ref, *, count):
    h = pl.program_id(1)

    @pl.when(h == 0)
    def _init():
        s1_ref[...] = jnp.zeros_like(s1_ref)
        s2_ref[...] = jnp.zeros_like(s2_ref)

    xf = x_ref[0].astype(jnp.float32)                                   # (TH, W, C)
    s1_ref[...] += jnp.sum(jnp.sum(xf, axis=0), axis=0, keepdims=True)  # (1, C)
    s2_ref[...] += jnp.sum(jnp.sum(xf * xf, axis=0), axis=0, keepdims=True)

    @pl.when(h == pl.num_programs(1) - 1)
    def _finalize():
        gsum = jnp.dot(s1_ref[...], g_ref[...], preferred_element_type=jnp.float32)   # (1, G)
        gsq = jnp.dot(s2_ref[...], g_ref[...], preferred_element_type=jnp.float32)
        gmean = gsum / count
        gvar = jnp.maximum(gsq / count - gmean * gmean, 0.0)
        grstd = jax.lax.rsqrt(gvar + EPS)
        mean_c = jnp.dot(gmean, gt_ref[...], preferred_element_type=jnp.float32)      # (1, C)
        rstd_c = jnp.dot(grstd, gt_ref[...], preferred_element_type=jnp.float32)      # (1, C)
        sc = rstd_c * gamma_ref[...]
        scale_ref[0] = sc
        shift_ref[0] = beta_ref[...] - mean_c * sc


def gn_scale_shift(x, gamma, beta, tile_h):
    """Per-(sample, channel) GroupNorm affine params: (scale, shift), each (N, 1, C)."""
    N, H, W, C = x.shape
    G = NUM_GROUPS
    assert C % G == 0
    Cg = C // G
    assert H % tile_h == 0
    nh = H // tile_h
    ch = jnp.arange(C)
    gmat = (ch[:, None] // Cg == jnp.arange(G)[None, :]).astype(jnp.float32)  # (C, G)
    kernel = functools.partial(_gn_stats_kernel, count=float(H * W * Cg))
    return pl.pallas_call(
        kernel,
        out_shape=(jax.ShapeDtypeStruct((N, 1, C), jnp.float32),
                   jax.ShapeDtypeStruct((N, 1, C), jnp.float32)),
        grid=(N, nh),
        in_specs=[
            pl.BlockSpec((1, tile_h, W, C), lambda n, h: (n, h, 0, 0)),
            pl.BlockSpec((C, G), lambda n, h: (0, 0)),
            pl.BlockSpec((G, C), lambda n, h: (0, 0)),
            pl.BlockSpec((1, C), lambda n, h: (0, 0)),
            pl.BlockSpec((1, C), lambda n, h: (0, 0)),
        ],
        out_specs=(pl.BlockSpec((1, 1, C), lambda n, h: (n, 0, 0)),
                   pl.BlockSpec((1, 1, C), lambda n, h: (n, 0, 0))),
        scratch_shapes=[pltpu.VMEM((1, C), jnp.float32),
                        pltpu.VMEM((1, C), jnp.float32)],
        compiler_params=pltpu.CompilerParams(
            dimension_semantics=("parallel", "arbitrary")),
    )(x, gmat, gmat.T, gamma.reshape(1, C), beta.reshape(1, C))


# ---------------------------------------------------------------------------
# Kernel 2: fused GroupNorm-apply + swish + 3x3 conv (+ fused identity or 1x1
# shortcut for the final conv).  Spatially tiled over H with 1-row halos; the
# zero padding lives only in a VMEM scratch.  The scratch is flattened with a
# row pitch Wp (multiple of 8) so every tap is a contiguous row-slice matmul.
# ---------------------------------------------------------------------------
def _gn_swish_conv3x3_kernel(scale_ref, shift_ref, xm_ref, xt_ref, xb_ref,
                             w_ref, b_ref, *rest,
                             TH, W, Wp, Cout, residual_mode):
    if residual_mode == "none":
        o_ref, pad_ref = rest
        res_ref = ninw_ref = ninb_ref = None
    elif residual_mode == "identity":
        res_ref, o_ref, pad_ref = rest
        ninw_ref = ninb_ref = None
    else:  # "nin"
        res_ref, ninw_ref, ninb_ref, o_ref, pad_ref = rest

    th = pl.program_id(1)
    last = pl.num_programs(1) - 1
    scale = scale_ref[...]          # (1, 1, Cin)
    shift = shift_ref[...]          # (1, 1, Cin)

    def norm_swish(v):
        a = v.astype(jnp.float32) * scale + shift
        return a * jax.nn.sigmoid(a)

    # Zero the padded scratch: borders and invalid halo rows stay 0 (= conv zero padding).
    pad_ref[...] = jnp.zeros_like(pad_ref)

    a_main = norm_swish(xm_ref[0])                               # (TH, W, Cin)
    a_top = jnp.where(th > 0, norm_swish(xt_ref[0]), 0.0)        # (1, W, Cin)
    a_bot = jnp.where(th < last, norm_swish(xb_ref[0]), 0.0)     # (1, W, Cin)

    # Padded row r occupies flat rows [r*Wp, (r+1)*Wp); data columns are [1, 1+W).
    pad_ref[1:1 + W, :] = a_top[0]                               # padded row 0 (top halo)
    base = (TH + 1) * Wp + 1
    pad_ref[base:base + W, :] = a_bot[0]                         # padded row TH+1 (bottom halo)
    for y in range(TH):                                          # padded rows 1..TH
        r0 = (y + 1) * Wp + 1
        pad_ref[r0:r0 + W, :] = a_main[y]

    # 3x3 conv: each tap is a contiguous row-slice of the flattened padded scratch.
    L = TH * Wp
    acc = jnp.zeros((L, Cout), jnp.float32)
    for ky in range(3):
        for kx in range(3):
            off = ky * Wp + kx
            acc = acc + jnp.dot(pad_ref[off:off + L, :], w_ref[ky * 3 + kx],
                                preferred_element_type=jnp.float32)

    out = acc.reshape(TH, Wp, Cout)[:, :W, :] + b_ref[...]
    if residual_mode == "identity":
        out = out + res_ref[0].astype(jnp.float32)
    elif residual_mode == "nin":
        sc_res = jnp.einsum("hwc,cd->hwd", res_ref[0].astype(jnp.float32),
                            ninw_ref[...], preferred_element_type=jnp.float32)
        out = out + sc_res + ninb_ref[...]
    o_ref[0] = out.astype(o_ref.dtype)


def _round_up(v, m):
    return (v + m - 1) // m * m


def _pick_tile_h(H, target=16):
    if H <= target:
        return H
    for t in range(target, 0, -1):
        if H % t == 0:
            return t
    return H


def gn_swish_conv3x3(x, scale, shift, w, b, tile_h,
                     residual=None, nin_w=None, nin_b=None):
    N, H, W, Cin = x.shape
    Cout = w.shape[-1]
    TH = tile_h
    assert H % TH == 0
    nh = H // TH
    Wp = _round_up(W + 2, 8)          # padded row pitch (sublane-aligned)
    n_rows = (TH + 3) * Wp            # extra rows so tap slices never run out of bounds

    if residual is None:
        residual_mode = "none"
    elif nin_w is None:
        residual_mode = "identity"
    else:
        residual_mode = "nin"

    in_specs = [
        pl.BlockSpec((1, 1, Cin), lambda n, h: (n, 0, 0)),                  # scale
        pl.BlockSpec((1, 1, Cin), lambda n, h: (n, 0, 0)),                  # shift
        pl.BlockSpec((1, TH, W, Cin), lambda n, h: (n, h, 0, 0)),           # main tile
        pl.BlockSpec((1, 1, W, Cin),                                        # top halo row
                     lambda n, h: (n, jnp.maximum(h * TH - 1, 0), 0, 0)),
        pl.BlockSpec((1, 1, W, Cin),                                        # bottom halo row
                     lambda n, h: (n, jnp.minimum(h * TH + TH, H - 1), 0, 0)),
        pl.BlockSpec((9, Cin, Cout), lambda n, h: (0, 0, 0)),               # conv weights
        pl.BlockSpec((1, 1, Cout), lambda n, h: (0, 0, 0)),                 # conv bias
    ]
    args = [scale, shift, x, x, x,
            w.reshape(9, Cin, Cout), b.reshape(1, 1, Cout)]
    if residual is not None:
        Cr = residual.shape[-1]
        in_specs.append(pl.BlockSpec((1, TH, W, Cr), lambda n, h: (n, h, 0, 0)))
        args.append(residual)
        if nin_w is not None:
            in_specs.append(pl.BlockSpec((Cr, Cout), lambda n, h: (0, 0)))
            in_specs.append(pl.BlockSpec((1, 1, Cout), lambda n, h: (0, 0, 0)))
            args.append(nin_w)
            args.append(nin_b.reshape(1, 1, Cout))

    kernel = functools.partial(_gn_swish_conv3x3_kernel, TH=TH, W=W, Wp=Wp,
                               Cout=Cout, residual_mode=residual_mode)
    return pl.pallas_call(
        kernel,
        out_shape=jax.ShapeDtypeStruct((N, H, W, Cout), x.dtype),
        grid=(N, nh),
        in_specs=in_specs,
        out_specs=pl.BlockSpec((1, TH, W, Cout), lambda n, h: (n, h, 0, 0)),
        scratch_shapes=[pltpu.VMEM((n_rows, Cin), jnp.float32)],
        compiler_params=pltpu.CompilerParams(
            dimension_semantics=("parallel", "parallel")),
    )(*args)


# ---------------------------------------------------------------------------
# ResnetBlock forward (NCHW in / NCHW out, like the PyTorch module)
# ---------------------------------------------------------------------------
def resnet_block(x_nchw, params, tile_h=None):
    x = jnp.transpose(x_nchw, (0, 2, 3, 1))                   # NCHW -> NHWC
    H = x.shape[1]
    th = tile_h if tile_h is not None else _pick_tile_h(H)

    # GN1 stats, then fused GN1-apply + swish + conv1
    sc1, sh1 = gn_scale_shift(x, params["gn1_w"], params["gn1_b"], th)
    h1 = gn_swish_conv3x3(x, sc1, sh1, params["conv1_w"], params["conv1_b"], th)

    # GN2 stats, then fused GN2-apply + swish + conv2 + shortcut (identity or 1x1)
    sc2, sh2 = gn_scale_shift(h1, params["gn2_w"], params["gn2_b"], th)
    if "nin_w" in params:
        y = gn_swish_conv3x3(h1, sc2, sh2, params["conv2_w"], params["conv2_b"], th,
                             residual=x, nin_w=params["nin_w"], nin_b=params["nin_b"])
    else:
        y = gn_swish_conv3x3(h1, sc2, sh2, params["conv2_w"], params["conv2_b"], th,
                             residual=x)
    return jnp.transpose(y, (0, 3, 1, 2))                      # NHWC -> NCHW


# ---------------------------------------------------------------------------
# Pure-JAX reference (for validation only)
# ---------------------------------------------------------------------------
def ref_resnet_block(x_nchw, p):
    x = jnp.transpose(x_nchw, (0, 2, 3, 1))

    def gn_swish(h, w, b):
        N, H, W, C = h.shape
        hg = h.reshape(N, H, W, NUM_GROUPS, C // NUM_GROUPS).astype(jnp.float32)
        mean = hg.mean(axis=(1, 2, 4), keepdims=True)
        var = ((hg - mean) ** 2).mean(axis=(1, 2, 4), keepdims=True)
        y = ((hg - mean) * jax.lax.rsqrt(var + EPS)).reshape(N, H, W, C)
        y = y * w + b
        return y * jax.nn.sigmoid(y)

    def conv(h, w, b):
        return jax.lax.conv_general_dilated(
            h, w, (1, 1), "SAME",
            dimension_numbers=("NHWC", "HWIO", "NHWC")) + b

    h = gn_swish(x, p["gn1_w"], p["gn1_b"])
    h = conv(h, p["conv1_w"], p["conv1_b"])
    h = gn_swish(h, p["gn2_w"], p["gn2_b"])
    h = conv(h, p["conv2_w"], p["conv2_b"])
    shortcut = x if "nin_w" not in p else (x @ p["nin_w"] + p["nin_b"])
    return jnp.transpose(shortcut + h, (0, 3, 1, 2))


def init_params(key, in_channels, out_channels):
    ks = jax.random.split(key, 8)
    p = {
        "gn1_w": 1.0 + 0.1 * jax.random.normal(ks[0], (in_channels,), jnp.float32),
        "gn1_b": 0.1 * jax.random.normal(ks[1], (in_channels,), jnp.float32),
        "conv1_w": 0.1 * jax.random.normal(ks[2], (3, 3, in_channels, out_channels), jnp.float32),
        "conv1_b": 0.1 * jax.random.normal(ks[3], (out_channels,), jnp.float32),
        "gn2_w": 1.0 + 0.1 * jax.random.normal(ks[4], (out_channels,), jnp.float32),
        "gn2_b": 0.1 * jax.random.normal(ks[5], (out_channels,), jnp.float32),
        "conv2_w": 0.1 * jax.random.normal(ks[6], (3, 3, out_channels, out_channels), jnp.float32),
        "conv2_b": 0.1 * jax.random.normal(ks[7], (out_channels,), jnp.float32),
    }
    if in_channels != out_channels:
        k1, k2 = jax.random.split(ks[0])
        p["nin_w"] = 0.1 * jax.random.normal(k1, (in_channels, out_channels), jnp.float32)
        p["nin_b"] = 0.1 * jax.random.normal(k2, (out_channels,), jnp.float32)
    return p


if __name__ == "__main__":
    key = jax.random.PRNGKey(0)

    # Config A: in_channels != out_channels -> fused 1x1 nin_shortcut path (single H tile).
    kx, kp, key = jax.random.split(key, 3)
    xA = jax.random.normal(kx, (2, 32, 8, 8), jnp.float32)          # NCHW, like PyTorch
    pA = init_params(kp, 32, 64)
    fwdA = jax.jit(functools.partial(resnet_block, tile_h=8))
    yA = fwdA(xA, pA)
    jax.block_until_ready(yA)
    refA = ref_resnet_block(xA, pA)
    assert yA.shape == (2, 64, 8, 8)
    assert jnp.allclose(yA, refA, atol=2e-3, rtol=2e-3), float(jnp.max(jnp.abs(yA - refA)))

    # Config B: in_channels == out_channels -> identity shortcut, 2 H-tiles (halo path).
    kx, kp = jax.random.split(key)
    xB = jax.random.normal(kx, (2, 64, 16, 16), jnp.float32)
    pB = init_params(kp, 64, 64)
    fwdB = jax.jit(functools.partial(resnet_block, tile_h=8))
    yB = fwdB(xB, pB)
    jax.block_until_ready(yB)
    refB = ref_resnet_block(xB, pB)
    assert yB.shape == (2, 64, 16, 16)
    assert jnp.allclose(yB, refB, atol=2e-3, rtol=2e-3), float(jnp.max(jnp.abs(yB - refB)))

    print("KERNEL_OK")
</pallas_src>

<mosaic_0001>
module attributes {stable_mosaic.version = 11 : i64} {
  func.func @_gn_stats_kernel(%arg0: i32, %arg1: i32, %arg2: memref<1x8x8x64xf32, #tpu.memory_space<vmem>>, %arg3: memref<64x32xf32, #tpu.memory_space<vmem>>, %arg4: memref<32x64xf32, #tpu.memory_space<vmem>>, %arg5: memref<1x64xf32, #tpu.memory_space<vmem>>, %arg6: memref<1x64xf32, #tpu.memory_space<vmem>>, %arg7: memref<1x1x64xf32, #tpu.memory_space<vmem>>, %arg8: memref<1x1x64xf32, #tpu.memory_space<vmem>>, %arg9: memref<1x64xf32, #tpu.memory_space<vmem>>, %arg10: memref<1x64xf32, #tpu.memory_space<vmem>>) attributes {dimension_semantics = [#tpu.dimension_semantics<parallel>, #tpu.dimension_semantics<arbitrary>], iteration_bounds = array<i64: 2, 1>, scalar_prefetch = 0 : i64, scratch_operands = 2 : i64, tpu.core_type = #tpu.core_type<tc>, window_params = [{transform_indices = @transform_0, window_bounds = array<i64: 1, 8, 8, 64>}, {pipeline_mode = #tpu.pipeline_mode<synchronous>, transform_indices = @transform_1, window_bounds = array<i64: 64, 32>}, {pipeline_mode = #tpu.pipeline_mode<synchronous>, transform_indices = @transform_2, window_bounds = array<i64: 32, 64>}, {pipeline_mode = #tpu.pipeline_mode<synchronous>, transform_indices = @transform_3, window_bounds = array<i64: 1, 64>}, {pipeline_mode = #tpu.pipeline_mode<synchronous>, transform_indices = @transform_4, window_bounds = array<i64: 1, 64>}, {transform_indices = @transform_5, window_bounds = array<i64: 1, 1, 64>}, {transform_indices = @transform_6, window_bounds = array<i64: 1, 1, 64>}]} {
    %c0_i32 = arith.constant 0 : i32
    %0 = arith.cmpi eq, %arg1, %c0_i32 : i32
    %1 = arith.extui %0 : i1 to i32
    %c0_i32_0 = arith.constant 0 : i32
    %2 = arith.cmpi ne, %1, %c0_i32_0 : i32
    scf.if %2 {
      %cst_17 = arith.constant 0.000000e+00 : f32
      %21 = vector.broadcast %cst_17 : f32 to vector<1x64xf32>
      %c0_18 = arith.constant 0 : index
      %c0_19 = arith.constant 0 : index
      %22 = vector.load %arg9[%c0_18, %c0_19] : memref<1x64xf32, #tpu.memory_space<vmem>>, vector<1x64xf32>
      tpu.vector_store %arg9[%c0_18, %c0_19], %21 {strides = array<i32>} : memref<1x64xf32, #tpu.memory_space<vmem>>, vector<1x64xf32>,
      %cst_20 = arith.constant 0.000000e+00 : f32
      %23 = vector.broadcast %cst_20 : f32 to vector<1x64xf32>
      %c0_21 = arith.constant 0 : index
      %c0_22 = arith.constant 0 : index
      %24 = vector.load %arg10[%c0_21, %c0_22] : memref<1x64xf32, #tpu.memory_space<vmem>>, vector<1x64xf32>
      tpu.vector_store %arg10[%c0_21, %c0_22], %23 {strides = array<i32>} : memref<1x64xf32, #tpu.memory_space<vmem>>, vector<1x64xf32>,
    } else {
    }
    %c0 = arith.constant 0 : index
    %c0_1 = arith.constant 0 : index
    %c0_2 = arith.constant 0 : index
    %c0_3 = arith.constant 0 : index
    %3 = vector.load %arg2[%c0, %c0_1, %c0_2, %c0_3] : memref<1x8x8x64xf32, #tpu.memory_space<vmem>>, vector<1x8x8x64xf32>
    %4 = vector.shape_cast %3 : vector<1x8x8x64xf32> to vector<8x8x64xf32>
    %c0_4 = arith.constant 0 : index
    %c0_5 = arith.constant 0 : index
    %5 = vector.load %arg9[%c0_4, %c0_5] : memref<1x64xf32, #tpu.memory_space<vmem>>, vector<1x64xf32>
    %cst = arith.constant dense<0.000000e+00> : vector<8x64xf32>
    %6 = vector.multi_reduction <add>, %4, %cst [0] : vector<8x8x64xf32> to vector<8x64xf32>
    %cst_6 = arith.constant dense<0.000000e+00> : vector<64xf32>
    %7 = vector.multi_reduction <add>, %6, %cst_6 [0] : vector<8x64xf32> to vector<64xf32>
    %8 = vector.shape_cast %7 : vector<64xf32> to vector<1x64xf32>
    %9 = arith.addf %5, %8 : vector<1x64xf32>
    %c0_7 = arith.constant 0 : index
    %c0_8 = arith.constant 0 : index
    %10 = vector.load %arg9[%c0_7, %c0_8] : memref<1x64xf32, #tpu.memory_space<vmem>>, vector<1x64xf32>
    tpu.vector_store %arg9[%c0_7, %c0_8], %9 {strides = array<i32>} : memref<1x64xf32, #tpu.memory_space<vmem>>, vector<1x64xf32>,
    %c0_9 = arith.constant 0 : index
    %c0_10 = arith.constant 0 : index
    %11 = vector.load %arg10[%c0_9, %c0_10] : memref<1x64xf32, #tpu.memory_space<vmem>>, vector<1x64xf32>
    %12 = arith.mulf %4, %4 : vector<8x8x64xf32>
    %cst_11 = arith.constant dense<0.000000e+00> : vector<8x64xf32>
    %13 = vector.multi_reduction <add>, %12, %cst_11 [0] : vector<8x8x64xf32> to vector<8x64xf32>
    %cst_12 = arith.constant dense<0.000000e+00> : vector<64xf32>
    %14 = vector.multi_reduction <add>, %13, %cst_12 [0] : vector<8x64xf32> to vector<64xf32>
    %15 = vector.shape_cast %14 : vector<64xf32> to vector<1x64xf32>
    %16 = arith.addf %11, %15 : vector<1x64xf32>
    %c0_13 = arith.constant 0 : index
    %c0_14 = arith.constant 0 : index
    %17 = vector.load %arg10[%c0_13, %c0_14] : memref<1x64xf32, #tpu.memory_space<vmem>>, vector<1x64xf32>
    tpu.vector_store %arg10[%c0_13, %c0_14], %16 {strides = array<i32>} : memref<1x64xf32, #tpu.memory_space<vmem>>, vector<1x64xf32>,
    %c0_i32_15 = arith.constant 0 : i32
    %18 = arith.cmpi eq, %arg1, %c0_i32_15 : i32
    %19 = arith.extui %18 : i1 to i32
    %c0_i32_16 = arith.constant 0 : i32
    %20 = arith.cmpi ne, %19, %c0_i32_16 : i32
    scf.if %20 {
      %c0_17 = arith.constant 0 : index
      %c0_18 = arith.constant 0 : index
      %21 = vector.load %arg9[%c0_17, %c0_18] : memref<1x64xf32, #tpu.memory_space<vmem>>, vector<1x64xf32>
      %c0_19 = arith.constant 0 : index
      %c0_20 = arith.constant 0 : index
      %22 = vector.load %arg3[%c0_19, %c0_20] : memref<64x32xf32, #tpu.memory_space<vmem>>, vector<64x32xf32>
      %cst_21 = arith.constant dense<0.000000e+00> : vector<1x32xf32>
      %23 = tpu.matmul %21, %22, %cst_21 {dimension_numbers = #tpu.dot_dimension_numbers<[1], [0], [0], [1], [0, 0, 1, 1], [], []>} : vector<1x64xf32>, vector<64x32xf32>, vector<1x32xf32> -> vector<1x32xf32>
      %c0_22 = arith.constant 0 : index
      %c0_23 = arith.constant 0 : index
      %24 = vector.load %arg10[%c0_22, %c0_23] : memref<1x64xf32, #tpu.memory_space<vmem>>, vector<1x64xf32>
      %c0_24 = arith.constant 0 : index
      %c0_25 = arith.constant 0 : index
      %25 = vector.load %arg3[%c0_24, %c0_25] : memref<64x32xf32, #tpu.memory_space<vmem>>, vector<64x32xf32>
      %cst_26 = arith.constant dense<0.000000e+00> : vector<1x32xf32>
      %26 = tpu.matmul %24, %25, %cst_26 {dimension_numbers = #tpu.dot_dimension_numbers<[1], [0], [0], [1], [0, 0, 1, 1], [], []>} : vector<1x64xf32>, vector<64x32xf32>, vector<1x32xf32> -> vector<1x32xf32>
      %cst_27 = arith.constant 1.280000e+02 : f32
      %27 = vector.broadcast %cst_27 : f32 to vector<1x32xf32>
      %28 = arith.divf %23, %27 : vector<1x32xf32>
      %cst_28 = arith.constant 1.280000e+02 : f32
      %29 = vector.broadcast %cst_28 : f32 to vector<1x32xf32>
      %30 = arith.divf %26, %29 : vector<1x32xf32>
      %31 = arith.mulf %28, %28 : vector<1x32xf32>
      %32 = arith.subf %30, %31 : vector<1x32xf32>
      %cst_29 = arith.constant 0.000000e+00 : f32
      %33 = vector.broadcast %cst_29 : f32 to vector<1x32xf32>
      %34 = arith.maximumf %32, %33 : vector<1x32xf32>
      %cst_30 = arith.constant 9.99999974E-6 : f32
      %35 = vector.broadcast %cst_30 : f32 to vector<1x32xf32>
      %36 = arith.addf %34, %35 : vector<1x32xf32>
      %37 = math.rsqrt %36 : vector<1x32xf32>
      %c0_31 = arith.constant 0 : index
      %c0_32 = arith.constant 0 : index
      %38 = vector.load %arg4[%c0_31, %c0_32] : memref<32x64xf32, #tpu.memory_space<vmem>>, vector<32x64xf32>
      %cst_33 = arith.constant dense<0.000000e+00> : vector<1x64xf32>
      %39 = tpu.matmul %28, %38, %cst_33 {dimension_numbers = #tpu.dot_dimension_numbers<[1], [0], [0], [1], [0, 0, 1, 1], [], []>} : vector<1x32xf32>, vector<32x64xf32>, vector<1x64xf32> -> vector<1x64xf32>
      %c0_34 = arith.constant 0 : index
      %c0_35 = arith.constant 0 : index
      %40 = vector.load %arg4[%c0_34, %c0_35] : memref<32x64xf32, #tpu.memory_space<vmem>>, vector<32x64xf32>
      %cst_36 = arith.constant dense<0.000000e+00> : vector<1x64xf32>
      %41 = tpu.matmul %37, %40, %cst_36 {dimension_numbers = #tpu.dot_dimension_numbers<[1], [0], [0], [1], [0, 0, 1, 1], [], []>} : vector<1x32xf32>, vector<32x64xf32>, vector<1x64xf32> -> vector<1x64xf32>
      %c0_37 = arith.constant 0 : index
      %c0_38 = arith.constant 0 : index
      %42 = vector.load %arg5[%c0_37, %c0_38] : memref<1x64xf32, #tpu.memory_space<vmem>>, vector<1x64xf32>
      %43 = arith.mulf %41, %42 : vector<1x64xf32>
      %c0_39 = arith.constant 0 : index
      %c0_40 = arith.constant 0 : index
      %c0_41 = arith.constant 0 : index
      %44 = vector.load %arg7[%c0_39, %c0_40, %c0_41] : memref<1x1x64xf32, #tpu.memory_space<vmem>>, vector<1x1x64xf32>
      %45 = vector.shape_cast %44 : vector<1x1x64xf32> to vector<1x64xf32>
      %46 = vector.shape_cast %43 : vector<1x64xf32> to vector<1x1x64xf32>
      tpu.vector_store %arg7[%c0_39, %c0_40, %c0_41], %46 {strides = array<i32>} : memref<1x1x64xf32, #tpu.memory_space<vmem>>, vector<1x1x64xf32>,
      %c0_42 = arith.constant 0 : index
      %c0_43 = arith.constant 0 : index
      %47 = vector.load %arg6[%c0_42, %c0_43] : memref<1x64xf32, #tpu.memory_space<vmem>>, vector<1x64xf32>
      %48 = arith.mulf %39, %43 : vector<1x64xf32>
      %49 = arith.subf %47, %48 : vector<1x64xf32>
      %c0_44 = arith.constant 0 : index
      %c0_45 = arith.constant 0 : index
      %c0_46 = arith.constant 0 : index
      %50 = vector.load %arg8[%c0_44, %c0_45, %c0_46] : memref<1x1x64xf32, #tpu.memory_space<vmem>>, vector<1x1x64xf32>
      %51 = vector.shape_cast %50 : vector<1x1x64xf32> to vector<1x64xf32>
      %52 = vector.shape_cast %49 : vector<1x64xf32> to vector<1x1x64xf32>
      tpu.vector_store %arg8[%c0_44, %c0_45, %c0_46], %52 {strides = array<i32>} : memref<1x1x64xf32, #tpu.memory_space<vmem>>, vector<1x1x64xf32>,
    } else {
    }
    return
  }
  func.func @transform_0(%arg0: i32, %arg1: i32) -> (i32, i32, i32, i32) {
    %c0_i32 = arith.constant 0 : i32
    %c0_i32_0 = arith.constant 0 : i32
    %c0_i32_1 = arith.constant 0 : i32
    return %arg0, %arg1, %c0_i32, %c0_i32_0 : i32, i32, i32, i32
  }
  func.func @transform_1(%arg0: i32, %arg1: i32) -> (i32, i32) {
    %c0_i32 = arith.constant 0 : i32
    %c0_i32_0 = arith.constant 0 : i32
    %c0_i32_1 = arith.constant 0 : i32
    return %c0_i32, %c0_i32_0 : i32, i32
  }
  func.func @transform_2(%arg0: i32, %arg1: i32) -> (i32, i32) {
    %c0_i32 = arith.constant 0 : i32
    %c0_i32_0 = arith.constant 0 : i32
    %c0_i32_1 = arith.constant 0 : i32
    return %c0_i32, %c0_i32_0 : i32, i32
  }
  func.func @transform_3(%arg0: i32, %arg1: i32) -> (i32, i32) {
    %c0_i32 = arith.constant 0 : i32
    %c0_i32_0 = arith.constant 0 : i32
    %c0_i32_1 = arith.constant 0 : i32
    return %c0_i32, %c0_i32_0 : i32, i32
  }
  func.func @transform_4(%arg0: i32, %arg1: i32) -> (i32, i32) {
    %c0_i32 = arith.constant 0 : i32
    %c0_i32_0 = arith.constant 0 : i32
    %c0_i32_1 = arith.constant 0 : i32
    return %c0_i32, %c0_i32_0 : i32, i32
  }
  func.func @transform_5(%arg0: i32, %arg1: i32) -> (i32, i32, i32) {
    %c0_i32 = arith.constant 0 : i32
    %c0_i32_0 = arith.constant 0 : i32
    %c0_i32_1 = arith.constant 0 : i32
    return %arg0, %c0_i32, %c0_i32_0 : i32, i32, i32
  }
  func.func @transform_6(%arg0: i32, %arg1: i32) -> (i32, i32, i32) {
    %c0_i32 = arith.constant 0 : i32
    %c0_i32_0 = arith.constant 0 : i32
    %c0_i32_1 = arith.constant 0 : i32
    return %arg0, %c0_i32, %c0_i32_0 : i32, i32, i32
  }
}

module attributes {stable_mosaic.version = 11 : i64} {
  func.func @_gn_stats_kernel(%arg0: i32, %arg1: i32, %arg2: memref<1x8x8x32xf32, #tpu.memory_space<vmem>>, %arg3: memref<32x32xf32, #tpu.memory_space<vmem>>, %arg4: memref<32x32xf32, #tpu.memory_space<vmem>>, %arg5: memref<1x32xf32, #tpu.memory_space<vmem>>, %arg6: memref<1x32xf32, #tpu.memory_space<vmem>>, %arg7: memref<1x1x32xf32, #tpu.memory_space<vmem>>, %arg8: memref<1x1x32xf32, #tpu.memory_space<vmem>>, %arg9: memref<1x32xf32, #tpu.memory_space<vmem>>, %arg10: memref<1x32xf32, #tpu.memory_space<vmem>>) attributes {dimension_semantics = [#tpu.dimension_semantics<parallel>, #tpu.dimension_semantics<arbitrary>], iteration_bounds = array<i64: 2, 1>, scalar_prefetch = 0 : i64, scratch_operands = 2 : i64, tpu.core_type = #tpu.core_type<tc>, window_params = [{transform_indices = @transform_0, window_bounds = array<i64: 1, 8, 8, 32>}, {pipeline_mode = #tpu.pipeline_mode<synchronous>, transform_indices = @transform_1, window_bounds = array<i64: 32, 32>}, {pipeline_mode = #tpu.pipeline_mode<synchronous>, transform_indices = @transform_2, window_bounds = array<i64: 32, 32>}, {pipeline_mode = #tpu.pipeline_mode<synchronous>, transform_indices = @transform_3, window_bounds = array<i64: 1, 32>}, {pipeline_mode = #tpu.pipeline_mode<synchronous>, transform_indices = @transform_4, window_bounds = array<i64: 1, 32>}, {transform_indices = @transform_5, window_bounds = array<i64: 1, 1, 32>}, {transform_indices = @transform_6, window_bounds = array<i64: 1, 1, 32>}]} {
    %c0_i32 = arith.constant 0 : i32
    %0 = arith.cmpi eq, %arg1, %c0_i32 : i32
    %1 = arith.extui %0 : i1 to i32
    %c0_i32_0 = arith.constant 0 : i32
    %2 = arith.cmpi ne, %1, %c0_i32_0 : i32
    scf.if %2 {
      %cst_17 = arith.constant 0.000000e+00 : f32
      %21 = vector.broadcast %cst_17 : f32 to vector<1x32xf32>
      %c0_18 = arith.constant 0 : index
      %c0_19 = arith.constant 0 : index
      %22 = vector.load %arg9[%c0_18, %c0_19] : memref<1x32xf32, #tpu.memory_space<vmem>>, vector<1x32xf32>
      tpu.vector_store %arg9[%c0_18, %c0_19], %21 {strides = array<i32>} : memref<1x32xf32, #tpu.memory_space<vmem>>, vector<1x32xf32>,
      %cst_20 = arith.constant 0.000000e+00 : f32
      %23 = vector.broadcast %cst_20 : f32 to vector<1x32xf32>
      %c0_21 = arith.constant 0 : index
      %c0_22 = arith.constant 0 : index
      %24 = vector.load %arg10[%c0_21, %c0_22] : memref<1x32xf32, #tpu.memory_space<vmem>>, vector<1x32xf32>
      tpu.vector_store %arg10[%c0_21, %c0_22], %23 {strides = array<i32>} : memref<1x32xf32, #tpu.memory_space<vmem>>, vector<1x32xf32>,
    } else {
    }
    %c0 = arith.constant 0 : index
    %c0_1 = arith.constant 0 : index
    %c0_2 = arith.constant 0 : index
    %c0_3 = arith.constant 0 : index
    %3 = vector.load %arg2[%c0, %c0_1, %c0_2, %c0_3] : memref<1x8x8x32xf32, #tpu.memory_space<vmem>>, vector<1x8x8x32xf32>
    %4 = vector.shape_cast %3 : vector<1x8x8x32xf32> to vector<8x8x32xf32>
    %c0_4 = arith.constant 0 : index
    %c0_5 = arith.constant 0 : index
    %5 = vector.load %arg9[%c0_4, %c0_5] : memref<1x32xf32, #tpu.memory_space<vmem>>, vector<1x32xf32>
    %cst = arith.constant dense<0.000000e+00> : vector<8x32xf32>
    %6 = vector.multi_reduction <add>, %4, %cst [0] : vector<8x8x32xf32> to vector<8x32xf32>
    %cst_6 = arith.constant dense<0.000000e+00> : vector<32xf32>
    %7 = vector.multi_reduction <add>, %6, %cst_6 [0] : vector<8x32xf32> to vector<32xf32>
    %8 = vector.shape_cast %7 : vector<32xf32> to vector<1x32xf32>
    %9 = arith.addf %5, %8 : vector<1x32xf32>
    %c0_7 = arith.constant 0 : index
    %c0_8 = arith.constant 0 : index
    %10 = vector.load %arg9[%c0_7, %c0_8] : memref<1x32xf32, #tpu.memory_space<vmem>>, vector<1x32xf32>
    tpu.vector_store %arg9[%c0_7, %c0_8], %9 {strides = array<i32>} : memref<1x32xf32, #tpu.memory_space<vmem>>, vector<1x32xf32>,
    %c0_9 = arith.constant 0 : index
    %c0_10 = arith.constant 0 : index
    %11 = vector.load %arg10[%c0_9, %c0_10] : memref<1x32xf32, #tpu.memory_space<vmem>>, vector<1x32xf32>
    %12 = arith.mulf %4, %4 : vector<8x8x32xf32>
    %cst_11 = arith.constant dense<0.000000e+00> : vector<8x32xf32>
    %13 = vector.multi_reduction <add>, %12, %cst_11 [0] : vector<8x8x32xf32> to vector<8x32xf32>
    %cst_12 = arith.constant dense<0.000000e+00> : vector<32xf32>
    %14 = vector.multi_reduction <add>, %13, %cst_12 [0] : vector<8x32xf32> to vector<32xf32>
    %15 = vector.shape_cast %14 : vector<32xf32> to vector<1x32xf32>
    %16 = arith.addf %11, %15 : vector<1x32xf32>
    %c0_13 = arith.constant 0 : index
    %c0_14 = arith.constant 0 : index
    %17 = vector.load %arg10[%c0_13, %c0_14] : memref<1x32xf32, #tpu.memory_space<vmem>>, vector<1x32xf32>
    tpu.vector_store %arg10[%c0_13, %c0_14], %16 {strides = array<i32>} : memref<1x32xf32, #tpu.memory_space<vmem>>, vector<1x32xf32>,
    %c0_i32_15 = arith.constant 0 : i32
    %18 = arith.cmpi eq, %arg1, %c0_i32_15 : i32
    %19 = arith.extui %18 : i1 to i32
    %c0_i32_16 = arith.constant 0 : i32
    %20 = arith.cmpi ne, %19, %c0_i32_16 : i32
    scf.if %20 {
      %c0_17 = arith.constant 0 : index
      %c0_18 = arith.constant 0 : index
      %21 = vector.load %arg9[%c0_17, %c0_18] : memref<1x32xf32, #tpu.memory_space<vmem>>, vector<1x32xf32>
      %c0_19 = arith.constant 0 : index
      %c0_20 = arith.constant 0 : index
      %22 = vector.load %arg3[%c0_19, %c0_20] : memref<32x32xf32, #tpu.memory_space<vmem>>, vector<32x32xf32>
      %cst_21 = arith.constant dense<0.000000e+00> : vector<1x32xf32>
      %23 = tpu.matmul %21, %22, %cst_21 {dimension_numbers = #tpu.dot_dimension_numbers<[1], [0], [0], [1], [0, 0, 1, 1], [], []>} : vector<1x32xf32>, vector<32x32xf32>, vector<1x32xf32> -> vector<1x32xf32>
      %c0_22 = arith.constant 0 : index
      %c0_23 = arith.constant 0 : index
      %24 = vector.load %arg10[%c0_22, %c0_23] : memref<1x32xf32, #tpu.memory_space<vmem>>, vector<1x32xf32>
      %c0_24 = arith.constant 0 : index
      %c0_25 = arith.constant 0 : index
      %25 = vector.load %arg3[%c0_24, %c0_25] : memref<32x32xf32, #tpu.memory_space<vmem>>, vector<32x32xf32>
      %cst_26 = arith.constant dense<0.000000e+00> : vector<1x32xf32>
      %26 = tpu.matmul %24, %25, %cst_26 {dimension_numbers = #tpu.dot_dimension_numbers<[1], [0], [0], [1], [0, 0, 1, 1], [], []>} : vector<1x32xf32>, vector<32x32xf32>, vector<1x32xf32> -> vector<1x32xf32>
      %cst_27 = arith.constant 6.400000e+01 : f32
      %27 = vector.broadcast %cst_27 : f32 to vector<1x32xf32>
      %28 = arith.divf %23, %27 : vector<1x32xf32>
      %cst_28 = arith.constant 6.400000e+01 : f32
      %29 = vector.broadcast %cst_28 : f32 to vector<1x32xf32>
      %30 = arith.divf %26, %29 : vector<1x32xf32>
      %31 = arith.mulf %28, %28 : vector<1x32xf32>
      %32 = arith.subf %30, %31 : vector<1x32xf32>
      %cst_29 = arith.constant 0.000000e+00 : f32
      %33 = vector.broadcast %cst_29 : f32 to vector<1x32xf32>
      %34 = arith.maximumf %32, %33 : vector<1x32xf32>
      %cst_30 = arith.constant 9.99999974E-6 : f32
      %35 = vector.broadcast %cst_30 : f32 to vector<1x32xf32>
      %36 = arith.addf %34, %35 : vector<1x32xf32>
      %37 = math.rsqrt %36 : vector<1x32xf32>
      %c0_31 = arith.constant 0 : index
      %c0_32 = arith.constant 0 : index
      %38 = vector.load %arg4[%c0_31, %c0_32] : memref<32x32xf32, #tpu.memory_space<vmem>>, vector<32x32xf32>
      %cst_33 = arith.constant dense<0.000000e+00> : vector<1x32xf32>
      %39 = tpu.matmul %28, %38, %cst_33 {dimension_numbers = #tpu.dot_dimension_numbers<[1], [0], [0], [1], [0, 0, 1, 1], [], []>} : vector<1x32xf32>, vector<32x32xf32>, vector<1x32xf32> -> vector<1x32xf32>
      %c0_34 = arith.constant 0 : index
      %c0_35 = arith.constant 0 : index
      %40 = vector.load %arg4[%c0_34, %c0_35] : memref<32x32xf32, #tpu.memory_space<vmem>>, vector<32x32xf32>
      %cst_36 = arith.constant dense<0.000000e+00> : vector<1x32xf32>
      %41 = tpu.matmul %37, %40, %cst_36 {dimension_numbers = #tpu.dot_dimension_numbers<[1], [0], [0], [1], [0, 0, 1, 1], [], []>} : vector<1x32xf32>, vector<32x32xf32>, vector<1x32xf32> -> vector<1x32xf32>
      %c0_37 = arith.constant 0 : index
      %c0_38 = arith.constant 0 : index
      %42 = vector.load %arg5[%c0_37, %c0_38] : memref<1x32xf32, #tpu.memory_space<vmem>>, vector<1x32xf32>
      %43 = arith.mulf %41, %42 : vector<1x32xf32>
      %c0_39 = arith.constant 0 : index
      %c0_40 = arith.constant 0 : index
      %c0_41 = arith.constant 0 : index
      %44 = vector.load %arg7[%c0_39, %c0_40, %c0_41] : memref<1x1x32xf32, #tpu.memory_space<vmem>>, vector<1x1x32xf32>
      %45 = vector.shape_cast %44 : vector<1x1x32xf32> to vector<1x32xf32>
      %46 = vector.shape_cast %43 : vector<1x32xf32> to vector<1x1x32xf32>
      tpu.vector_store %arg7[%c0_39, %c0_40, %c0_41], %46 {strides = array<i32>} : memref<1x1x32xf32, #tpu.memory_space<vmem>>, vector<1x1x32xf32>,
      %c0_42 = arith.constant 0 : index
      %c0_43 = arith.constant 0 : index
      %47 = vector.load %arg6[%c0_42, %c0_43] : memref<1x32xf32, #tpu.memory_space<vmem>>, vector<1x32xf32>
      %48 = arith.mulf %39, %43 : vector<1x32xf32>
      %49 = arith.subf %47, %48 : vector<1x32xf32>
      %c0_44 = arith.constant 0 : index
      %c0_45 = arith.constant 0 : index
      %c0_46 = arith.constant 0 : index
      %50 = vector.load %arg8[%c0_44, %c0_45, %c0_46] : memref<1x1x32xf32, #tpu.memory_space<vmem>>, vector<1x1x32xf32>
      %51 = vector.shape_cast %50 : vector<1x1x32xf32> to vector<1x32xf32>
      %52 = vector.shape_cast %49 : vector<1x32xf32> to vector<1x1x32xf32>
      tpu.vector_store %arg8[%c0_44, %c0_45, %c0_46], %52 {strides = array<i32>} : memref<1x1x32xf32, #tpu.memory_space<vmem>>, vector<1x1x32xf32>,
    } else {
    }
    return
  }
  func.func @transform_0(%arg0: i32, %arg1: i32) -> (i32, i32, i32, i32) {
    %c0_i32 = arith.constant 0 : i32
    %c0_i32_0 = arith.constant 0 : i32
    %c0_i32_1 = arith.constant 0 : i32
    return %arg0, %arg1, %c0_i32, %c0_i32_0 : i32, i32, i32, i32
  }
  func.func @transform_1(%arg0: i32, %arg1: i32) -> (i32, i32) {
    %c0_i32 = arith.constant 0 : i32
    %c0_i32_0 = arith.constant 0 : i32
    %c0_i32_1 = arith.constant 0 : i32
    return %c0_i32, %c0_i32_0 : i32, i32
  }
  func.func @transform_2(%arg0: i32, %arg1: i32) -> (i32, i32) {
    %c0_i32 = arith.constant 0 : i32
    %c0_i32_0 = arith.constant 0 : i32
    %c0_i32_1 = arith.constant 0 : i32
    return %c0_i32, %c0_i32_0 : i32, i32
  }
  func.func @transform_3(%arg0: i32, %arg1: i32) -> (i32, i32) {
    %c0_i32 = arith.constant 0 : i32
    %c0_i32_0 = arith.constant 0 : i32
    %c0_i32_1 = arith.constant 0 : i32
    return %c0_i32, %c0_i32_0 : i32, i32
  }
  func.func @transform_4(%arg0: i32, %arg1: i32) -> (i32, i32) {
    %c0_i32 = arith.constant 0 : i32
    %c0_i32_0 = arith.constant 0 : i32
    %c0_i32_1 = arith.constant 0 : i32
    return %c0_i32, %c0_i32_0 : i32, i32
  }
  func.func @transform_5(%arg0: i32, %arg1: i32) -> (i32, i32, i32) {
    %c0_i32 = arith.constant 0 : i32
    %c0_i32_0 = arith.constant 0 : i32
    %c0_i32_1 = arith.constant 0 : i32
    return %arg0, %c0_i32, %c0_i32_0 : i32, i32, i32
  }
  func.func @transform_6(%arg0: i32, %arg1: i32) -> (i32, i32, i32) {
    %c0_i32 = arith.constant 0 : i32
    %c0_i32_0 = arith.constant 0 : i32
    %c0_i32_1 = arith.constant 0 : i32
    return %arg0, %c0_i32, %c0_i32_0 : i32, i32, i32
  }
}

module attributes {stable_mosaic.version = 11 : i64} {
  func.func @_gn_swish_conv3x3_kernel(%arg0: i32, %arg1: i32, %arg2: memref<1x1x32xf32, #tpu.memory_space<vmem>>, %arg3: memref<1x1x32xf32, #tpu.memory_space<vmem>>, %arg4: memref<1x8x8x32xf32, #tpu.memory_space<vmem>>, %arg5: memref<1x1x8x32xf32, #tpu.memory_space<vmem>>, %arg6: memref<1x1x8x32xf32, #tpu.memory_space<vmem>>, %arg7: memref<9x32x64xf32, #tpu.memory_space<vmem>>, %arg8: memref<1x1x64xf32, #tpu.memory_space<vmem>>, %arg9: memref<1x8x8x64xf32, #tpu.memory_space<vmem>>, %arg10: memref<176x32xf32, #tpu.memory_space<vmem>>) attributes {dimension_semantics = [#tpu.dimension_semantics<parallel>, #tpu.dimension_semantics<parallel>], iteration_bounds = array<i64: 2, 1>, scalar_prefetch = 0 : i64, scratch_operands = 1 : i64, tpu.core_type = #tpu.core_type<tc>, window_params = [{transform_indices = @transform_0, window_bounds = array<i64: 1, 1, 32>}, {transform_indices = @transform_1, window_bounds = array<i64: 1, 1, 32>}, {transform_indices = @transform_2, window_bounds = array<i64: 1, 8, 8, 32>}, {transform_indices = @transform_3, window_bounds = array<i64: 1, 1, 8, 32>}, {transform_indices = @transform_4, window_bounds = array<i64: 1, 1, 8, 32>}, {pipeline_mode = #tpu.pipeline_mode<synchronous>, transform_indices = @transform_5, window_bounds = array<i64: 9, 32, 64>}, {pipeline_mode = #tpu.pipeline_mode<synchronous>, transform_indices = @transform_6, window_bounds = array<i64: 1, 1, 64>}, {transform_indices = @transform_7, window_bounds = array<i64: 1, 8, 8, 64>}]} {
    %c0 = arith.constant 0 : index
    %c0_0 = arith.constant 0 : index
    %c0_1 = arith.constant 0 : index
    %0 = vector.load %arg2[%c0, %c0_0, %c0_1] : memref<1x1x32xf32, #tpu.memory_space<vmem>>, vector<1x1x32xf32>
    %c0_2 = arith.constant 0 : index
    %c0_3 = arith.constant 0 : index
    %c0_4 = arith.constant 0 : index
    %1 = vector.load %arg3[%c0_2, %c0_3, %c0_4] : memref<1x1x32xf32, #tpu.memory_space<vmem>>, vector<1x1x32xf32>
    %cst = arith.constant 0.000000e+00 : f32
    %2 = vector.broadcast %cst : f32 to vector<176x32xf32>
    %c0_5 = arith.constant 0 : index
    %c0_6 = arith.constant 0 : index
    %3 = vector.load %arg10[%c0_5, %c0_6] : memref<176x32xf32, #tpu.memory_space<vmem>>, vector<176x32xf32>
    tpu.vector_store %arg10[%c0_5, %c0_6], %2 {strides = array<i32>} : memref<176x32xf32, #tpu.memory_space<vmem>>, vector<176x32xf32>,
    %c0_7 = arith.constant 0 : index
    %c0_8 = arith.constant 0 : index
    %c0_9 = arith.constant 0 : index
    %c0_10 = arith.constant 0 : index
    %4 = vector.load %arg4[%c0_7, %c0_8, %c0_9, %c0_10] : memref<1x8x8x32xf32, #tpu.memory_space<vmem>>, vector<1x8x8x32xf32>
    %5 = vector.shape_cast %4 : vector<1x8x8x32xf32> to vector<8x8x32xf32>
    %6 = vector.broadcast %0 : vector<1x1x32xf32> to vector<8x8x32xf32>
    %7 = arith.mulf %5, %6 : vector<8x8x32xf32>
    %8 = vector.broadcast %1 : vector<1x1x32xf32> to vector<8x8x32xf32>
    %9 = arith.addf %7, %8 : vector<8x8x32xf32>
    %10 = arith.negf %9 : vector<8x8x32xf32>
    %11 = math.exp %10 : vector<8x8x32xf32>
    %cst_11 = arith.constant 1.000000e+00 : f32
    %12 = vector.broadcast %cst_11 : f32 to vector<8x8x32xf32>
    %13 = arith.addf %12, %11 : vector<8x8x32xf32>
    %14 = arith.divf %12, %13 : vector<8x8x32xf32>
    %15 = arith.mulf %9, %14 : vector<8x8x32xf32>
    %c0_i32 = arith.constant 0 : i32
    %16 = arith.cmpi sgt, %arg1, %c0_i32 : i32
    %c0_12 = arith.constant 0 : index
    %c0_13 = arith.constant 0 : index
    %c0_14 = arith.constant 0 : index
    %c0_15 = arith.constant 0 : index
    %17 = vector.load %arg5[%c0_12, %c0_13, %c0_14, %c0_15] : memref<1x1x8x32xf32, #tpu.memory_space<vmem>>, vector<1x1x8x32xf32>
    %18 = vector.shape_cast %17 : vector<1x1x8x32xf32> to vector<1x8x32xf32>
    %19 = vector.broadcast %0 : vector<1x1x32xf32> to vector<1x8x32xf32>
    %20 = arith.mulf %18, %19 : vector<1x8x32xf32>
    %21 = vector.broadcast %1 : vector<1x1x32xf32> to vector<1x8x32xf32>
    %22 = arith.addf %20, %21 : vector<1x8x32xf32>
    %23 = arith.negf %22 : vector<1x8x32xf32>
    %24 = math.exp %23 : vector<1x8x32xf32>
    %cst_16 = arith.constant 1.000000e+00 : f32
    %25 = vector.broadcast %cst_16 : f32 to vector<1x8x32xf32>
    %26 = arith.addf %25, %24 : vector<1x8x32xf32>
    %27 = arith.divf %25, %26 : vector<1x8x32xf32>
    %28 = arith.mulf %22, %27 : vector<1x8x32xf32>
    %cst_17 = arith.constant 0.000000e+00 : f32
    %29 = vector.broadcast %cst_17 : f32 to vector<1x8x32xf32>
    %30 = arith.select %16, %28, %29 : vector<1x8x32xf32>
    %c0_i32_18 = arith.constant 0 : i32
    %31 = arith.cmpi slt, %arg1, %c0_i32_18 : i32
    %c0_19 = arith.constant 0 : index
    %c0_20 = arith.constant 0 : index
    %c0_21 = arith.constant 0 : index
    %c0_22 = arith.constant 0 : index
    %32 = vector.load %arg6[%c0_19, %c0_20, %c0_21, %c0_22] : memref<1x1x8x32xf32, #tpu.memory_space<vmem>>, vector<1x1x8x32xf32>
    %33 = vector.shape_cast %32 : vector<1x1x8x32xf32> to vector<1x8x32xf32>
    %34 = vector.broadcast %0 : vector<1x1x32xf32> to vector<1x8x32xf32>
    %35 = arith.mulf %33, %34 : vector<1x8x32xf32>
    %36 = vector.broadcast %1 : vector<1x1x32xf32> to vector<1x8x32xf32>
    %37 = arith.addf %35, %36 : vector<1x8x32xf32>
    %38 = arith.negf %37 : vector<1x8x32xf32>
    %39 = math.exp %38 : vector<1x8x32xf32>
    %cst_23 = arith.constant 1.000000e+00 : f32
    %40 = vector.broadcast %cst_23 : f32 to vector<1x8x32xf32>
    %41 = arith.addf %40, %39 : vector<1x8x32xf32>
    %42 = arith.divf %40, %41 : vector<1x8x32xf32>
    %43 = arith.mulf %37, %42 : vector<1x8x32xf32>
    %cst_24 = arith.constant 0.000000e+00 : f32
    %44 = vector.broadcast %cst_24 : f32 to vector<1x8x32xf32>
    %45 = arith.select %31, %43, %44 : vector<1x8x32xf32>
    %46 = vector.shape_cast %30 : vector<1x8x32xf32> to vector<8x32xf32>
    %c1 = arith.constant 1 : index
    %c0_25 = arith.constant 0 : index
    %47 = vector.load %arg10[%c1, %c0_25] : memref<176x32xf32, #tpu.memory_space<vmem>>, vector<8x32xf32>
    tpu.vector_store %arg10[%c1, %c0_25], %46 {strides = array<i32>} : memref<176x32xf32, #tpu.memory_space<vmem>>, vector<8x32xf32>,
    %48 = vector.shape_cast %45 : vector<1x8x32xf32> to vector<8x32xf32>
    %c145 = arith.constant 145 : index
    %c0_26 = arith.constant 0 : index
    %49 = vector.load %arg10[%c145, %c0_26] : memref<176x32xf32, #tpu.memory_space<vmem>>, vector<8x32xf32>
    tpu.vector_store %arg10[%c145, %c0_26], %48 {strides = array<i32>} : memref<176x32xf32, #tpu.memory_space<vmem>>, vector<8x32xf32>,
    %50 = vector.extract_strided_slice %15 {offsets = [0, 0, 0], sizes = [1, 8, 32], strides = [1, 1, 1]} : vector<8x8x32xf32> to vector<1x8x32xf32>
    %51 = vector.shape_cast %50 : vector<1x8x32xf32> to vector<8x32xf32>
    %c17 = arith.constant 17 : index
    %c0_27 = arith.constant 0 : index
    %52 = vector.load %arg10[%c17, %c0_27] : memref<176x32xf32, #tpu.memory_space<vmem>>, vector<8x32xf32>
    tpu.vector_store %arg10[%c17, %c0_27], %51 {strides = array<i32>} : memref<176x32xf32, #tpu.memory_space<vmem>>, vector<8x32xf32>,
    %53 = vector.extract_strided_slice %15 {offsets = [1, 0, 0], sizes = [1, 8, 32], strides = [1, 1, 1]} : vector<8x8x32xf32> to vector<1x8x32xf32>
    %54 = vector.shape_cast %53 : vector<1x8x32xf32> to vector<8x32xf32>
    %c33 = arith.constant 33 : index
    %c0_28 = arith.constant 0 : index
    %55 = vector.load %arg10[%c33, %c0_28] : memref<176x32xf32, #tpu.memory_space<vmem>>, vector<8x32xf32>
    tpu.vector_store %arg10[%c33, %c0_28], %54 {strides = array<i32>} : memref<176x32xf32, #tpu.memory_space<vmem>>, vector<8x32xf32>,
    %56 = vector.extract_strided_slice %15 {offsets = [2, 0, 0], sizes = [1, 8, 32], strides = [1, 1, 1]} : vector<8x8x32xf32> to vector<1x8x32xf32>
    %57 = vector.shape_cast %56 : vector<1x8x32xf32> to vector<8x32xf32>
    %c49 = arith.constant 49 : index
    %c0_29 = arith.constant 0 : index
    %58 = vector.load %arg10[%c49, %c0_29] : memref<176x32xf32, #tpu.memory_space<vmem>>, vector<8x32xf32>
    tpu.vector_store %arg10[%c49, %c0_29], %57 {strides = array<i32>} : memref<176x32xf32, #tpu.memory_space<vmem>>, vector<8x32xf32>,
    %59 = vector.extract_strided_slice %15 {offsets = [3, 0, 0], sizes = [1, 8, 32], strides = [1, 1, 1]} : vector<8x8x32xf32> to vector<1x8x32xf32>
    %60 = vector.shape_cast %59 : vector<1x8x32xf32> to vector<8x32xf32>
    %c65 = arith.constant 65 : index
    %c0_30 = arith.constant 0 : index
    %61 = vector.load %arg10[%c65, %c0_30] : memref<176x32xf32, #tpu.memory_space<vmem>>, vector<8x32xf32>
    tpu.vector_store %arg10[%c65, %c0_30], %60 {strides = array<i32>} : memref<176x32xf32, #tpu.memory_space<vmem>>, vector<8x32xf32>,
    %62 = vector.extract_strided_slice %15 {offsets = [4, 0, 0], sizes = [1, 8, 32], strides = [1, 1, 1]} : vector<8x8x32xf32> to vector<1x8x32xf32>
    %63 = vector.shape_cast %62 : vector<1x8x32xf32> to vector<8x32xf32>
    %c81 = arith.constant 81 : index
    %c0_31 = arith.constant 0 : index
    %64 = vector.load %arg10[%c81, %c0_31] : memref<176x32xf32, #tpu.memory_space<vmem>>, vector<8x32xf32>
    tpu.vector_store %arg10[%c81, %c0_31], %63 {strides = array<i32>} : memref<176x32xf32, #tpu.memory_space<vmem>>, vector<8x32xf32>,
    %65 = vector.extract_strided_slice %15 {offsets = [5, 0, 0], sizes = [1, 8, 32], strides = [1, 1, 1]} : vector<8x8x32xf32> to vector<1x8x32xf32>
    %66 = vector.shape_cast %65 : vector<1x8x32xf32> to vector<8x32xf32>
    %c97 = arith.constant 97 : index
    %c0_32 = arith.constant 0 : index
    %67 = vector.load %arg10[%c97, %c0_32] : memref<176x32xf32, #tpu.memory_space<vmem>>, vector<8x32xf32>
    tpu.vector_store %arg10[%c97, %c0_32], %66 {strides = array<i32>} : memref<176x32xf32, #tpu.memory_space<vmem>>, vector<8x32xf32>,
    %68 = vector.extract_strided_slice %15 {offsets = [6, 0, 0], sizes = [1, 8, 32], strides = [1, 1, 1]} : vector<8x8x32xf32> to vector<1x8x32xf32>
    %69 = vector.shape_cast %68 : vector<1x8x32xf32> to vector<8x32xf32>
    %c113 = arith.constant 113 : index
    %c0_33 = arith.constant 0 : index
    %70 = vector.load %arg10[%c113, %c0_33] : memref<176x32xf32, #tpu.memory_space<vmem>>, vector<8x32xf32>
    tpu.vector_store %arg10[%c113, %c0_33], %69 {strides = array<i32>} : memref<176x32xf32, #tpu.memory_space<vmem>>, vector<8x32xf32>,
    %71 = vector.extract_strided_slice %15 {offsets = [7, 0, 0], sizes = [1, 8, 32], strides = [1, 1, 1]} : vector<8x8x32xf32> to vector<1x8x32xf32>
    %72 = vector.shape_cast %71 : vector<1x8x32xf32> to vector<8x32xf32>
    %c129 = arith.constant 129 : index
    %c0_34 = arith.constant 0 : index
    %73 = vector.load %arg10[%c129, %c0_34] : memref<176x32xf32, #tpu.memory_space<vmem>>, vector<8x32xf32>
    tpu.vector_store %arg10[%c129, %c0_34], %72 {strides = array<i32>} : memref<176x32xf32, #tpu.memory_space<vmem>>, vector<8x32xf32>,
    %cst_35 = arith.constant 0.000000e+00 : f32
    %74 = vector.broadcast %cst_35 : f32 to vector<128x64xf32>
    %c0_36 = arith.constant 0 : index
    %c0_37 = arith.constant 0 : index
    %75 = vector.load %arg10[%c0_36, %c0_37] : memref<176x32xf32, #tpu.memory_space<vmem>>, vector<128x32xf32>
    %c0_38 = arith.constant 0 : index
    %c0_39 = arith.constant 0 : index
    %c0_40 = arith.constant 0 : index
    %76 = vector.load %arg7[%c0_38, %c0_39, %c0_40] : memref<9x32x64xf32, #tpu.memory_space<vmem>>, vector<1x32x64xf32>
    %77 = vector.shape_cast %76 : vector<1x32x64xf32> to vector<32x64xf32>
    %cst_41 = arith.constant dense<0.000000e+00> : vector<128x64xf32>
    %78 = tpu.matmul %75, %77, %cst_41 {dimension_numbers = #tpu.dot_dimension_numbers<[1], [0], [0], [1], [0, 0, 1, 1], [], []>} : vector<128x32xf32>, vector<32x64xf32>, vector<128x64xf32> -> vector<128x64xf32>
    %79 = arith.addf %74, %78 : vector<128x64xf32>
    %c1_42 = arith.constant 1 : index
    %c0_43 = arith.constant 0 : index
    %80 = vector.load %arg10[%c1_42, %c0_43] : memref<176x32xf32, #tpu.memory_space<vmem>>, vector<128x32xf32>
    %c1_44 = arith.constant 1 : index
    %c0_45 = arith.constant 0 : index
    %c0_46 = arith.constant 0 : index
    %81 = vector.load %arg7[%c1_44, %c0_45, %c0_46] : memref<9x32x64xf32, #tpu.memory_space<vmem>>, vector<1x32x64xf32>
    %82 = vector.shape_cast %81 : vector<1x32x64xf32> to vector<32x64xf32>
    %cst_47 = arith.constant dense<0.000000e+00> : vector<128x64xf32>
    %83 = tpu.matmul %80, %82, %cst_47 {dimension_numbers = #tpu.dot_dimension_numbers<[1], [0], [0], [1], [0, 0, 1, 1], [], []>} : vector<128x32xf32>, vector<32x64xf32>, vector<128x64xf32> -> vector<128x64xf32>
    %84 = arith.addf %79, %83 : vector<128x64xf32>
    %c2 = arith.constant 2 : index
    %c0_48 = arith.constant 0 : index
    %85 = vector.load %arg10[%c2, %c0_48] : memref<176x32xf32, #tpu.memory_space<vmem>>, vector<128x32xf32>
    %c2_49 = arith.constant 2 : index
    %c0_50 = arith.constant 0 : index
    %c0_51 = arith.constant 0 : index
    %86 = vector.load %arg7[%c2_49, %c0_50, %c0_51] : memref<9x32x64xf32, #tpu.memory_space<vmem>>, vector<1x32x64xf32>
    %87 = vector.shape_cast %86 : vector<1x32x64xf32> to vector<32x64xf32>
    %cst_52 = arith.constant dense<0.000000e+00> : vector<128x64xf32>
    %88 = tpu.matmul %85, %87, %cst_52 {dimension_numbers = #tpu.dot_dimension_numbers<[1], [0], [0], [1], [0, 0, 1, 1], [], []>} : vector<128x32xf32>, vector<32x64xf32>, vector<128x64xf32> -> vector<128x64xf32>
    %89 = arith.addf %84, %88 : vector<128x64xf32>
    %c16 = arith.constant 16 : index
    %c0_53 = arith.constant 0 : index
    %90 = vector.load %arg10[%c16, %c0_53] : memref<176x32xf32, #tpu.memory_space<vmem>>, vector<128x32xf32>
    %c3 = arith.constant 3 : index
    %c0_54 = arith.constant 0 : index
    %c0_55 = arith.constant 0 : index
    %91 = vector.load %arg7[%c3, %c0_54, %c0_55] : memref<9x32x64xf32, #tpu.memory_space<vmem>>, vector<1x32x64xf32>
    %92 = vector.shape_cast %91 : vector<1x32x64xf32> to vector<32x64xf32>
    %cst_56 = arith.constant dense<0.000000e+00> : vector<128x64xf32>
    %93 = tpu.matmul %90, %92, %cst_56 {dimension_numbers = #tpu.dot_dimension_numbers<[1], [0], [0], [1], [0, 0, 1, 1], [], []>} : vector<128x32xf32>, vector<32x64xf32>, vector<128x64xf32> -> vector<128x64xf32>
    %94 = arith.addf %89, %93 : vector<128x64xf32>
    %c17_57 = arith.constant 17 : index
    %c0_58 = arith.constant 0 : index
    %95 = vector.load %arg10[%c17_57, %c0_58] : memref<176x32xf32, #tpu.memory_space<vmem>>, vector<128x32xf32>
    %c4 = arith.constant 4 : index
    %c0_59 = arith.constant 0 : index
    %c0_60 = arith.constant 0 : index
    %96 = vector.load %arg7[%c4, %c0_59, %c0_60] : memref<9x32x64xf32, #tpu.memory_space<vmem>>, vector<1x32x64xf32>
    %97 = vector.shape_cast %96 : vector<1x32x64xf32> to vector<32x64xf32>
    %cst_61 = arith.constant dense<0.000000e+00> : vector<128x64xf32>
    %98 = tpu.matmul %95, %97, %cst_61 {dimension_numbers = #tpu.dot_dimension_numbers<[1], [0], [0], [1], [0, 0, 1, 1], [], []>} : vector<128x32xf32>, vector<32x64xf32>, vector<128x64xf32> -> vector<128x64xf32>
    %99 = arith.addf %94, %98 : vector<128x64xf32>
    %c18 = arith.constant 18 : index
    %c0_62 = arith.constant 0 : index
    %100 = vector.load %arg10[%c18, %c0_62] : memref<176x32xf32, #tpu.memory_space<vmem>>, vector<128x32xf32>
    %c5 = arith.constant 5 : index
    %c0_63 = arith.constant 0 : index
    %c0_64 = arith.constant 0 : index
    %101 = vector.load %arg7[%c5, %c0_63, %c0_64] : memref<9x32x64xf32, #tpu.memory_space<vmem>>, vector<1x32x64xf32>
    %102 = vector.shape_cast %101 : vector<1x32x64xf32> to vector<32x64xf32>
    %cst_65 = arith.constant dense<0.000000e+00> : vector<128x64xf32>
    %103 = tpu.matmul %100, %102, %cst_65 {dimension_numbers = #tpu.dot_dimension_numbers<[1], [0], [0], [1], [0, 0, 1, 1], [], []>} : vector<128x32xf32>, vector<32x64xf32>, vector<128x64xf32> -> vector<128x64xf32>
    %104 = arith.addf %99, %103 : vector<128x64xf32>
    %c32 = arith.constant 32 : index
    %c0_66 = arith.constant 0 : index
    %105 = vector.load %arg10[%c32, %c0_66] : memref<176x32xf32, #tpu.memory_space<vmem>>, vector<128x32xf32>
    %c6 = arith.constant 6 : index
    %c0_67 = arith.constant 0 : index
    %c0_68 = arith.constant 0 : index
    %106 = vector.load %arg7[%c6, %c0_67, %c0_68] : memref<9x32x64xf32, #tpu.memory_space<vmem>>, vector<1x32x64xf32>
    %107 = vector.shape_cast %106 : vector<1x32x64xf32> to vector<32x64xf32>
    %cst_69 = arith.constant dense<0.000000e+00> : vector<128x64xf32>
    %108 = tpu.matmul %105, %107, %cst_69 {dimension_numbers = #tpu.dot_dimension_numbers<[1], [0], [0], [1], [0, 0, 1, 1], [], []>} : vector<128x32xf32>, vector<32x64xf32>, vector<128x64xf32> -> vector<128x64xf32>
    %109 = arith.addf %104, %108 : vector<128x64xf32>
    %c33_70 = arith.constant 33 : index
    %c0_71 = arith.constant 0 : index
    %110 = vector.load %arg10[%c33_70, %c0_71] : memref<176x32xf32, #tpu.memory_space<vmem>>, vector<128x32xf32>
    %c7 = arith.constant 7 : index
    %c0_72 = arith.constant 0 : index
    %c0_73 = arith.constant 0 : index
    %111 = vector.load %arg7[%c7, %c0_72, %c0_73] : memref<9x32x64xf32, #tpu.memory_space<vmem>>, vector<1x32x64xf32>
    %112 = vector.shape_cast %111 : vector<1x32x64xf32> to vector<32x64xf32>
    %cst_74 = arith.constant dense<0.000000e+00> : vector<128x64xf32>
    %113 = tpu.matmul %110, %112, %cst_74 {dimension_numbers = #tpu.dot_dimension_numbers<[1], [0], [0], [1], [0, 0, 1, 1], [], []>} : vector<128x32xf32>, vector<32x64xf32>, vector<128x64xf32> -> vector<128x64xf32>
    %114 = arith.addf %109, %113 : vector<128x64xf32>
    %c34 = arith.constant 34 : index
    %c0_75 = arith.constant 0 : index
    %115 = vector.load %arg10[%c34, %c0_75] : memref<176x32xf32, #tpu.memory_space<vmem>>, vector<128x32xf32>
    %c8 = arith.constant 8 : index
    %c0_76 = arith.constant 0 : index
    %c0_77 = arith.constant 0 : index
    %116 = vector.load %arg7[%c8, %c0_76, %c0_77] : memref<9x32x64xf32, #tpu.memory_space<vmem>>, vector<1x32x64xf32>
    %117 = vector.shape_cast %116 : vector<1x32x64xf32> to vector<32x64xf32>
    %cst_78 = arith.constant dense<0.000000e+00> : vector<128x64xf32>
    %118 = tpu.matmul %115, %117, %cst_78 {dimension_numbers = #tpu.dot_dimension_numbers<[1], [0], [0], [1], [0, 0, 1, 1], [], []>} : vector<128x32xf32>, vector<32x64xf32>, vector<128x64xf32> -> vector<128x64xf32>
    %119 = arith.addf %114, %118 : vector<128x64xf32>
    %120 = vector.shape_cast %119 : vector<128x64xf32> to vector<8x16x64xf32>
    %121 = vector.extract_strided_slice %120 {offsets = [0, 0, 0], sizes = [8, 8, 64], strides = [1, 1, 1]} : vector<8x16x64xf32> to vector<8x8x64xf32>
    %c0_79 = arith.constant 0 : index
    %c0_80 = arith.constant 0 : index
    %c0_81 = arith.constant 0 : index
    %122 = vector.load %arg8[%c0_79, %c0_80, %c0_81] : memref<1x1x64xf32, #tpu.memory_space<vmem>>, vector<1x1x64xf32>
    %123 = vector.broadcast %122 : vector<1x1x64xf32> to vector<8x8x64xf32>
    %124 = arith.addf %121, %123 : vector<8x8x64xf32>
    %c0_82 = arith.constant 0 : index
    %c0_83 = arith.constant 0 : index
    %c0_84 = arith.constant 0 : index
    %c0_85 = arith.constant 0 : index
    %125 = vector.load %arg9[%c0_82, %c0_83, %c0_84, %c0_85] : memref<1x8x8x64xf32, #tpu.memory_space<vmem>>, vector<1x8x8x64xf32>
    %126 = vector.shape_cast %125 : vector<1x8x8x64xf32> to vector<8x8x64xf32>
    %127 = vector.shape_cast %124 : vector<8x8x64xf32> to vector<1x8x8x64xf32>
    tpu.vector_store %arg9[%c0_82, %c0_83, %c0_84, %c0_85], %127 {strides = array<i32>} : memref<1x8x8x64xf32, #tpu.memory_space<vmem>>, vector<1x8x8x64xf32>,
    return
  }
  func.func @transform_0(%arg0: i32, %arg1: i32) -> (i32, i32, i32) {
    %c0_i32 = arith.constant 0 : i32
    %c0_i32_0 = arith.constant 0 : i32
    %c0_i32_1 = arith.constant 0 : i32
    return %arg0, %c0_i32, %c0_i32_0 : i32, i32, i32
  }
  func.func @transform_1(%arg0: i32, %arg1: i32) -> (i32, i32, i32) {
    %c0_i32 = arith.constant 0 : i32
    %c0_i32_0 = arith.constant 0 : i32
    %c0_i32_1 = arith.constant 0 : i32
    return %arg0, %c0_i32, %c0_i32_0 : i32, i32, i32
  }
  func.func @transform_2(%arg0: i32, %arg1: i32) -> (i32, i32, i32, i32) {
    %c0_i32 = arith.constant 0 : i32
    %c0_i32_0 = arith.constant 0 : i32
    %c0_i32_1 = arith.constant 0 : i32
    return %arg0, %arg1, %c0_i32, %c0_i32_0 : i32, i32, i32, i32
  }
  func.func @transform_3(%arg0: i32, %arg1: i32) -> (i32, i32, i32, i32) {
    %c8_i32 = arith.constant 8 : i32
    %0 = arith.muli %arg1, %c8_i32 : i32
    %c1_i32 = arith.constant 1 : i32
    %1 = arith.subi %0, %c1_i32 : i32
    %c0_i32 = arith.constant 0 : i32
    %2 = arith.maxsi %1, %c0_i32 : i32
    %c0_i32_0 = arith.constant 0 : i32
    %c0_i32_1 = arith.constant 0 : i32
    %c0_i32_2 = arith.constant 0 : i32
    return %arg0, %2, %c0_i32_0, %c0_i32_1 : i32, i32, i32, i32
  }
  func.func @transform_4(%arg0: i32, %arg1: i32) -> (i32, i32, i32, i32) {
    %c8_i32 = arith.constant 8 : i32
    %0 = arith.muli %arg1, %c8_i32 : i32
    %c8_i32_0 = arith.constant 8 : i32
    %1 = arith.addi %0, %c8_i32_0 : i32
    %c7_i32 = arith.constant 7 : i32
    %2 = arith.minsi %1, %c7_i32 : i32
    %c0_i32 = arith.constant 0 : i32
    %c0_i32_1 = arith.constant 0 : i32
    %c0_i32_2 = arith.constant 0 : i32
    return %arg0, %2, %c0_i32, %c0_i32_1 : i32, i32, i32, i32
  }
  func.func @transform_5(%arg0: i32, %arg1: i32) -> (i32, i32, i32) {
    %c0_i32 = arith.constant 0 : i32
    %c0_i32_0 = arith.constant 0 : i32
    %c0_i32_1 = arith.constant 0 : i32
    %c0_i32_2 = arith.constant 0 : i32
    return %c0_i32, %c0_i32_0, %c0_i32_1 : i32, i32, i32
  }
  func.func @transform_6(%arg0: i32, %arg1: i32) -> (i32, i32, i32) {
    %c0_i32 = arith.constant 0 : i32
    %c0_i32_0 = arith.constant 0 : i32
    %c0_i32_1 = arith.constant 0 : i32
    %c0_i32_2 = arith.constant 0 : i32
    return %c0_i32, %c0_i32_0, %c0_i32_1 : i32, i32, i32
  }
  func.func @transform_7(%arg0: i32, %arg1: i32) -> (i32, i32, i32, i32) {
    %c0_i32 = arith.constant 0 : i32
    %c0_i32_0 = arith.constant 0 : i32
    %c0_i32_1 = arith.constant 0 : i32
    return %arg0, %arg1, %c0_i32, %c0_i32_0 : i32, i32, i32, i32
  }
}

module attributes {stable_mosaic.version = 11 : i64} {
  func.func @_gn_swish_conv3x3_kernel(%arg0: i32, %arg1: i32, %arg2: memref<1x1x64xf32, #tpu.memory_space<vmem>>, %arg3: memref<1x1x64xf32, #tpu.memory_space<vmem>>, %arg4: memref<1x8x8x64xf32, #tpu.memory_space<vmem>>, %arg5: memref<1x1x8x64xf32, #tpu.memory_space<vmem>>, %arg6: memref<1x1x8x64xf32, #tpu.memory_space<vmem>>, %arg7: memref<9x64x64xf32, #tpu.memory_space<vmem>>, %arg8: memref<1x1x64xf32, #tpu.memory_space<vmem>>, %arg9: memref<1x8x8x32xf32, #tpu.memory_space<vmem>>, %arg10: memref<32x64xf32, #tpu.memory_space<vmem>>, %arg11: memref<1x1x64xf32, #tpu.memory_space<vmem>>, %arg12: memref<1x8x8x64xf32, #tpu.memory_space<vmem>>, %arg13: memref<176x64xf32, #tpu.memory_space<vmem>>) attributes {dimension_semantics = [#tpu.dimension_semantics<parallel>, #tpu.dimension_semantics<parallel>], iteration_bounds = array<i64: 2, 1>, scalar_prefetch = 0 : i64, scratch_operands = 1 : i64, tpu.core_type = #tpu.core_type<tc>, window_params = [{transform_indices = @transform_0, window_bounds = array<i64: 1, 1, 64>}, {transform_indices = @transform_1, window_bounds = array<i64: 1, 1, 64>}, {transform_indices = @transform_2, window_bounds = array<i64: 1, 8, 8, 64>}, {transform_indices = @transform_3, window_bounds = array<i64: 1, 1, 8, 64>}, {transform_indices = @transform_4, window_bounds = array<i64: 1, 1, 8, 64>}, {pipeline_mode = #tpu.pipeline_mode<synchronous>, transform_indices = @transform_5, window_bounds = array<i64: 9, 64, 64>}, {pipeline_mode = #tpu.pipeline_mode<synchronous>, transform_indices = @transform_6, window_bounds = array<i64: 1, 1, 64>}, {transform_indices = @transform_7, window_bounds = array<i64: 1, 8, 8, 32>}, {pipeline_mode = #tpu.pipeline_mode<synchronous>, transform_indices = @transform_8, window_bounds = array<i64: 32, 64>}, {pipeline_mode = #tpu.pipeline_mode<synchronous>, transform_indices = @transform_9, window_bounds = array<i64: 1, 1, 64>}, {transform_indices = @transform_10, window_bounds = array<i64: 1, 8, 8, 64>}]} {
    %c0 = arith.constant 0 : index
    %c0_0 = arith.constant 0 : index
    %c0_1 = arith.constant 0 : index
    %0 = vector.load %arg2[%c0, %c0_0, %c0_1] : memref<1x1x64xf32, #tpu.memory_space<vmem>>, vector<1x1x64xf32>
    %c0_2 = arith.constant 0 : index
    %c0_3 = arith.constant 0 : index
    %c0_4 = arith.constant 0 : index
    %1 = vector.load %arg3[%c0_2, %c0_3, %c0_4] : memref<1x1x64xf32, #tpu.memory_space<vmem>>, vector<1x1x64xf32>
    %cst = arith.constant 0.000000e+00 : f32
    %2 = vector.broadcast %cst : f32 to vector<176x64xf32>
    %c0_5 = arith.constant 0 : index
    %c0_6 = arith.constant 0 : index
    %3 = vector.load %arg13[%c0_5, %c0_6] : memref<176x64xf32, #tpu.memory_space<vmem>>, vector<176x64xf32>
    tpu.vector_store %arg13[%c0_5, %c0_6], %2 {strides = array<i32>} : memref<176x64xf32, #tpu.memory_space<vmem>>, vector<176x64xf32>,
    %c0_7 = arith.constant 0 : index
    %c0_8 = arith.constant 0 : index
    %c0_9 = arith.constant 0 : index
    %c0_10 = arith.constant 0 : index
    %4 = vector.load %arg4[%c0_7, %c0_8, %c0_9, %c0_10] : memref<1x8x8x64xf32, #tpu.memory_space<vmem>>, vector<1x8x8x64xf32>
    %5 = vector.shape_cast %4 : vector<1x8x8x64xf32> to vector<8x8x64xf32>
    %6 = vector.broadcast %0 : vector<1x1x64xf32> to vector<8x8x64xf32>
    %7 = arith.mulf %5, %6 : vector<8x8x64xf32>
    %8 = vector.broadcast %1 : vector<1x1x64xf32> to vector<8x8x64xf32>
    %9 = arith.addf %7, %8 : vector<8x8x64xf32>
    %10 = arith.negf %9 : vector<8x8x64xf32>
    %11 = math.exp %10 : vector<8x8x64xf32>
    %cst_11 = arith.constant 1.000000e+00 : f32
    %12 = vector.broadcast %cst_11 : f32 to vector<8x8x64xf32>
    %13 = arith.addf %12, %11 : vector<8x8x64xf32>
    %14 = arith.divf %12, %13 : vector<8x8x64xf32>
    %15 = arith.mulf %9, %14 : vector<8x8x64xf32>
    %c0_i32 = arith.constant 0 : i32
    %16 = arith.cmpi sgt, %arg1, %c0_i32 : i32
    %c0_12 = arith.constant 0 : index
    %c0_13 = arith.constant 0 : index
    %c0_14 = arith.constant 0 : index
    %c0_15 = arith.constant 0 : index
    %17 = vector.load %arg5[%c0_12, %c0_13, %c0_14, %c0_15] : memref<1x1x8x64xf32, #tpu.memory_space<vmem>>, vector<1x1x8x64xf32>
    %18 = vector.shape_cast %17 : vector<1x1x8x64xf32> to vector<1x8x64xf32>
    %19 = vector.broadcast %0 : vector<1x1x64xf32> to vector<1x8x64xf32>
    %20 = arith.mulf %18, %19 : vector<1x8x64xf32>
    %21 = vector.broadcast %1 : vector<1x1x64xf32> to vector<1x8x64xf32>
    %22 = arith.addf %20, %21 : vector<1x8x64xf32>
    %23 = arith.negf %22 : vector<1x8x64xf32>
    %24 = math.exp %23 : vector<1x8x64xf32>
    %cst_16 = arith.constant 1.000000e+00 : f32
    %25 = vector.broadcast %cst_16 : f32 to vector<1x8x64xf32>
    %26 = arith.addf %25, %24 : vector<1x8x64xf32>
    %27 = arith.divf %25, %26 : vector<1x8x64xf32>
    %28 = arith.mulf %22, %27 : vector<1x8x64xf32>
    %cst_17 = arith.constant 0.000000e+00 : f32
    %29 = vector.broadcast %cst_17 : f32 to vector<1x8x64xf32>
    %30 = arith.select %16, %28, %29 : vector<1x8x64xf32>
    %c0_i32_18 = arith.constant 0 : i32
    %31 = arith.cmpi slt, %arg1, %c0_i32_18 : i32
    %c0_19 = arith.constant 0 : index
    %c0_20 = arith.constant 0 : index
    %c0_21 = arith.constant 0 : index
    %c0_22 = arith.constant 0 : index
    %32 = vector.load %arg6[%c0_19, %c0_20, %c0_21, %c0_22] : memref<1x1x8x64xf32, #tpu.memory_space<vmem>>, vector<1x1x8x64xf32>
    %33 = vector.shape_cast %32 : vector<1x1x8x64xf32> to vector<1x8x64xf32>
    %34 = vector.broadcast %0 : vector<1x1x64xf32> to vector<1x8x64xf32>
    %35 = arith.mulf %33, %34 : vector<1x8x64xf32>
    %36 = vector.broadcast %1 : vector<1x1x64xf32> to vector<1x8x64xf32>
    %37 = arith.addf %35, %36 : vector<1x8x64xf32>
    %38 = arith.negf %37 : vector<1x8x64xf32>
    %39 = math.exp %38 : vector<1x8x64xf32>
    %cst_23 = arith.constant 1.000000e+00 : f32
    %40 = vector.broadcast %cst_23 : f32 to vector<1x8x64xf32>
    %41 = arith.addf %40, %39 : vector<1x8x64xf32>
    %42 = arith.divf %40, %41 : vector<1x8x64xf32>
    %43 = arith.mulf %37, %42 : vector<1x8x64xf32>
    %cst_24 = arith.constant 0.000000e+00 : f32
    %44 = vector.broadcast %cst_24 : f32 to vector<1x8x64xf32>
    %45 = arith.select %31, %43, %44 : vector<1x8x64xf32>
    %46 = vector.shape_cast %30 : vector<1x8x64xf32> to vector<8x64xf32>
    %c1 = arith.constant 1 : index
    %c0_25 = arith.constant 0 : index
    %47 = vector.load %arg13[%c1, %c0_25] : memref<176x64xf32, #tpu.memory_space<vmem>>, vector<8x64xf32>
    tpu.vector_store %arg13[%c1, %c0_25], %46 {strides = array<i32>} : memref<176x64xf32, #tpu.memory_space<vmem>>, vector<8x64xf32>,
    %48 = vector.shape_cast %45 : vector<1x8x64xf32> to vector<8x64xf32>
    %c145 = arith.constant 145 : index
    %c0_26 = arith.constant 0 : index
    %49 = vector.load %arg13[%c145, %c0_26] : memref<176x64xf32, #tpu.memory_space<vmem>>, vector<8x64xf32>
    tpu.vector_store %arg13[%c145, %c0_26], %48 {strides = array<i32>} : memref<176x64xf32, #tpu.memory_space<vmem>>, vector<8x64xf32>,
    %50 = vector.extract_strided_slice %15 {offsets = [0, 0, 0], sizes = [1, 8, 64], strides = [1, 1, 1]} : vector<8x8x64xf32> to vector<1x8x64xf32>
    %51 = vector.shape_cast %50 : vector<1x8x64xf32> to vector<8x64xf32>
    %c17 = arith.constant 17 : index
    %c0_27 = arith.constant 0 : index
    %52 = vector.load %arg13[%c17, %c0_27] : memref<176x64xf32, #tpu.memory_space<vmem>>, vector<8x64xf32>
    tpu.vector_store %arg13[%c17, %c0_27], %51 {strides = array<i32>} : memref<176x64xf32, #tpu.memory_space<vmem>>, vector<8x64xf32>,
    %53 = vector.extract_strided_slice %15 {offsets = [1, 0, 0], sizes = [1, 8, 64], strides = [1, 1, 1]} : vector<8x8x64xf32> to vector<1x8x64xf32>
    %54 = vector.shape_cast %53 : vector<1x8x64xf32> to vector<8x64xf32>
    %c33 = arith.constant 33 : index
    %c0_28 = arith.constant 0 : index
    %55 = vector.load %arg13[%c33, %c0_28] : memref<176x64xf32, #tpu.memory_space<vmem>>, vector<8x64xf32>
    tpu.vector_store %arg13[%c33, %c0_28], %54 {strides = array<i32>} : memref<176x64xf32, #tpu.memory_space<vmem>>, vector<8x64xf32>,
    %56 = vector.extract_strided_slice %15 {offsets = [2, 0, 0], sizes = [1, 8, 64], strides = [1, 1, 1]} : vector<8x8x64xf32> to vector<1x8x64xf32>
    %57 = vector.shape_cast %56 : vector<1x8x64xf32> to vector<8x64xf32>
    %c49 = arith.constant 49 : index
    %c0_29 = arith.constant 0 : index
    %58 = vector.load %arg13[%c49, %c0_29] : memref<176x64xf32, #tpu.memory_space<vmem>>, vector<8x64xf32>
    tpu.vector_store %arg13[%c49, %c0_29], %57 {strides = array<i32>} : memref<176x64xf32, #tpu.memory_space<vmem>>, vector<8x64xf32>,
    %59 = vector.extract_strided_slice %15 {offsets = [3, 0, 0], sizes = [1, 8, 64], strides = [1, 1, 1]} : vector<8x8x64xf32> to vector<1x8x64xf32>
    %60 = vector.shape_cast %59 : vector<1x8x64xf32> to vector<8x64xf32>
    %c65 = arith.constant 65 : index
    %c0_30 = arith.constant 0 : index
    %61 = vector.load %arg13[%c65, %c0_30] : memref<176x64xf32, #tpu.memory_space<vmem>>, vector<8x64xf32>
    tpu.vector_store %arg13[%c65, %c0_30], %60 {strides = array<i32>} : memref<176x64xf32, #tpu.memory_space<vmem>>, vector<8x64xf32>,
    %62 = vector.extract_strided_slice %15 {offsets = [4, 0, 0], sizes = [1, 8, 64], strides = [1, 1, 1]} : vector<8x8x64xf32> to vector<1x8x64xf32>
    %63 = vector.shape_cast %62 : vector<1x8x64xf32> to vector<8x64xf32>
    %c81 = arith.constant 81 : index
    %c0_31 = arith.constant 0 : index
    %64 = vector.load %arg13[%c81, %c0_31] : memref<176x64xf32, #tpu.memory_space<vmem>>, vector<8x64xf32>
    tpu.vector_store %arg13[%c81, %c0_31], %63 {strides = array<i32>} : memref<176x64xf32, #tpu.memory_space<vmem>>, vector<8x64xf32>,
    %65 = vector.extract_strided_slice %15 {offsets = [5, 0, 0], sizes = [1, 8, 64], strides = [1, 1, 1]} : vector<8x8x64xf32> to vector<1x8x64xf32>
    %66 = vector.shape_cast %65 : vector<1x8x64xf32> to vector<8x64xf32>
    %c97 = arith.constant 97 : index
    %c0_32 = arith.constant 0 : index
    %67 = vector.load %arg13[%c97, %c0_32] : memref<176x64xf32, #tpu.memory_space<vmem>>, vector<8x64xf32>
    tpu.vector_store %arg13[%c97, %c0_32], %66 {strides = array<i32>} : memref<176x64xf32, #tpu.memory_space<vmem>>, vector<8x64xf32>,
    %68 = vector.extract_strided_slice %15 {offsets = [6, 0, 0], sizes = [1, 8, 64], strides = [1, 1, 1]} : vector<8x8x64xf32> to vector<1x8x64xf32>
    %69 = vector.shape_cast %68 : vector<1x8x64xf32> to vector<8x64xf32>
    %c113 = arith.constant 113 : index
    %c0_33 = arith.constant 0 : index
    %70 = vector.load %arg13[%c113, %c0_33] : memref<176x64xf32, #tpu.memory_space<vmem>>, vector<8x64xf32>
    tpu.vector_store %arg13[%c113, %c0_33], %69 {strides = array<i32>} : memref<176x64xf32, #tpu.memory_space<vmem>>, vector<8x64xf32>,
    %71 = vector.extract_strided_slice %15 {offsets = [7, 0, 0], sizes = [1, 8, 64], strides = [1, 1, 1]} : vector<8x8x64xf32> to vector<1x8x64xf32>
    %72 = vector.shape_cast %71 : vector<1x8x64xf32> to vector<8x64xf32>
    %c129 = arith.constant 129 : index
    %c0_34 = arith.constant 0 : index
    %73 = vector.load %arg13[%c129, %c0_34] : memref<176x64xf32, #tpu.memory_space<vmem>>, vector<8x64xf32>
    tpu.vector_store %arg13[%c129, %c0_34], %72 {strides = array<i32>} : memref<176x64xf32, #tpu.memory_space<vmem>>, vector<8x64xf32>,
    %cst_35 = arith.constant 0.000000e+00 : f32
    %74 = vector.broadcast %cst_35 : f32 to vector<128x64xf32>
    %c0_36 = arith.constant 0 : index
    %c0_37 = arith.constant 0 : index
    %75 = vector.load %arg13[%c0_36, %c0_37] : memref<176x64xf32, #tpu.memory_space<vmem>>, vector<128x64xf32>
    %c0_38 = arith.constant 0 : index
    %c0_39 = arith.constant 0 : index
    %c0_40 = arith.constant 0 : index
    %76 = vector.load %arg7[%c0_38, %c0_39, %c0_40] : memref<9x64x64xf32, #tpu.memory_space<vmem>>, vector<1x64x64xf32>
    %77 = vector.shape_cast %76 : vector<1x64x64xf32> to vector<64x64xf32>
    %cst_41 = arith.constant dense<0.000000e+00> : vector<128x64xf32>
    %78 = tpu.matmul %75, %77, %cst_41 {dimension_numbers = #tpu.dot_dimension_numbers<[1], [0], [0], [1], [0, 0, 1, 1], [], []>} : vector<128x64xf32>, vector<64x64xf32>, vector<128x64xf32> -> vector<128x64xf32>
    %79 = arith.addf %74, %78 : vector<128x64xf32>
    %c1_42 = arith.constant 1 : index
    %c0_43 = arith.constant 0 : index
    %80 = vector.load %arg13[%c1_42, %c0_43] : memref<176x64xf32, #tpu.memory_space<vmem>>, vector<128x64xf32>
    %c1_44 = arith.constant 1 : index
    %c0_45 = arith.constant 0 : index
    %c0_46 = arith.constant 0 : index
    %81 = vector.load %arg7[%c1_44, %c0_45, %c0_46] : memref<9x64x64xf32, #tpu.memory_space<vmem>>, vector<1x64x64xf32>
    %82 = vector.shape_cast %81 : vector<1x64x64xf32> to vector<64x64xf32>
    %cst_47 = arith.constant dense<0.000000e+00> : vector<128x64xf32>
    %83 = tpu.matmul %80, %82, %cst_47 {dimension_numbers = #tpu.dot_dimension_numbers<[1], [0], [0], [1], [0, 0, 1, 1], [], []>} : vector<128x64xf32>, vector<64x64xf32>, vector<128x64xf32> -> vector<128x64xf32>
    %84 = arith.addf %79, %83 : vector<128x64xf32>
    %c2 = arith.constant 2 : index
    %c0_48 = arith.constant 0 : index
    %85 = vector.load %arg13[%c2, %c0_48] : memref<176x64xf32, #tpu.memory_space<vmem>>, vector<128x64xf32>
    %c2_49 = arith.constant 2 : index
    %c0_50 = arith.constant 0 : index
    %c0_51 = arith.constant 0 : index
    %86 = vector.load %arg7[%c2_49, %c0_50, %c0_51] : memref<9x64x64xf32, #tpu.memory_space<vmem>>, vector<1x64x64xf32>
    %87 = vector.shape_cast %86 : vector<1x64x64xf32> to vector<64x64xf32>
    %cst_52 = arith.constant dense<0.000000e+00> : vector<128x64xf32>
    %88 = tpu.matmul %85, %87, %cst_52 {dimension_numbers = #tpu.dot_dimension_numbers<[1], [0], [0], [1], [0, 0, 1, 1], [], []>} : vector<128x64xf32>, vector<64x64xf32>, vector<128x64xf32> -> vector<128x64xf32>
    %89 = arith.addf %84, %88 : vector<128x64xf32>
    %c16 = arith.constant 16 : index
    %c0_53 = arith.constant 0 : index
    %90 = vector.load %arg13[%c16, %c0_53] : memref<176x64xf32, #tpu.memory_space<vmem>>, vector<128x64xf32>
    %c3 = arith.constant 3 : index
    %c0_54 = arith.constant 0 : index
    %c0_55 = arith.constant 0 : index
    %91 = vector.load %arg7[%c3, %c0_54, %c0_55] : memref<9x64x64xf32, #tpu.memory_space<vmem>>, vector<1x64x64xf32>
    %92 = vector.shape_cast %91 : vector<1x64x64xf32> to vector<64x64xf32>
    %cst_56 = arith.constant dense<0.000000e+00> : vector<128x64xf32>
    %93 = tpu.matmul %90, %92, %cst_56 {dimension_numbers = #tpu.dot_dimension_numbers<[1], [0], [0], [1], [0, 0, 1, 1], [], []>} : vector<128x64xf32>, vector<64x64xf32>, vector<128x64xf32> -> vector<128x64xf32>
    %94 = arith.addf %89, %93 : vector<128x64xf32>
    %c17_57 = arith.constant 17 : index
    %c0_58 = arith.constant 0 : index
    %95 = vector.load %arg13[%c17_57, %c0_58] : memref<176x64xf32, #tpu.memory_space<vmem>>, vector<128x64xf32>
    %c4 = arith.constant 4 : index
    %c0_59 = arith.constant 0 : index
    %c0_60 = arith.constant 0 : index
    %96 = vector.load %arg7[%c4, %c0_59, %c0_60] : memref<9x64x64xf32, #tpu.memory_space<vmem>>, vector<1x64x64xf32>
    %97 = vector.shape_cast %96 : vector<1x64x64xf32> to vector<64x64xf32>
    %cst_61 = arith.constant dense<0.000000e+00> : vector<128x64xf32>
    %98 = tpu.matmul %95, %97, %cst_61 {dimension_numbers = #tpu.dot_dimension_numbers<[1], [0], [0], [1], [0, 0, 1, 1], [], []>} : vector<128x64xf32>, vector<64x64xf32>, vector<128x64xf32> -> vector<128x64xf32>
    %99 = arith.addf %94, %98 : vector<128x64xf32>
    %c18 = arith.constant 18 : index
    %c0_62 = arith.constant 0 : index
    %100 = vector.load %arg13[%c18, %c0_62] : memref<176x64xf32, #tpu.memory_space<vmem>>, vector<128x64xf32>
    %c5 = arith.constant 5 : index
    %c0_63 = arith.constant 0 : index
    %c0_64 = arith.constant 0 : index
    %101 = vector.load %arg7[%c5, %c0_63, %c0_64] : memref<9x64x64xf32, #tpu.memory_space<vmem>>, vector<1x64x64xf32>
    %102 = vector.shape_cast %101 : vector<1x64x64xf32> to vector<64x64xf32>
    %cst_65 = arith.constant dense<0.000000e+00> : vector<128x64xf32>
    %103 = tpu.matmul %100, %102, %cst_65 {dimension_numbers = #tpu.dot_dimension_numbers<[1], [0], [0], [1], [0, 0, 1, 1], [], []>} : vector<128x64xf32>, vector<64x64xf32>, vector<128x64xf32> -> vector<128x64xf32>
    %104 = arith.addf %99, %103 : vector<128x64xf32>
    %c32 = arith.constant 32 : index
    %c0_66 = arith.constant 0 : index
    %105 = vector.load %arg13[%c32, %c0_66] : memref<176x64xf32, #tpu.memory_space<vmem>>, vector<128x64xf32>
    %c6 = arith.constant 6 : index
    %c0_67 = arith.constant 0 : index
    %c0_68 = arith.constant 0 : index
    %106 = vector.load %arg7[%c6, %c0_67, %c0_68] : memref<9x64x64xf32, #tpu.memory_space<vmem>>, vector<1x64x64xf32>
    %107 = vector.shape_cast %106 : vector<1x64x64xf32> to vector<64x64xf32>
    %cst_69 = arith.constant dense<0.000000e+00> : vector<128x64xf32>
    %108 = tpu.matmul %105, %107, %cst_69 {dimension_numbers = #tpu.dot_dimension_numbers<[1], [0], [0], [1], [0, 0, 1, 1], [], []>} : vector<128x64xf32>, vector<64x64xf32>, vector<128x64xf32> -> vector<128x64xf32>
    %109 = arith.addf %104, %108 : vector<128x64xf32>
    %c33_70 = arith.constant 33 : index
    %c0_71 = arith.constant 0 : index
    %110 = vector.load %arg13[%c33_70, %c0_71] : memref<176x64xf32, #tpu.memory_space<vmem>>, vector<128x64xf32>
    %c7 = arith.constant 7 : index
    %c0_72 = arith.constant 0 : index
    %c0_73 = arith.constant 0 : index
    %111 = vector.load %arg7[%c7, %c0_72, %c0_73] : memref<9x64x64xf32, #tpu.memory_space<vmem>>, vector<1x64x64xf32>
    %112 = vector.shape_cast %111 : vector<1x64x64xf32> to vector<64x64xf32>
    %cst_74 = arith.constant dense<0.000000e+00> : vector<128x64xf32>
    %113 = tpu.matmul %110, %112, %cst_74 {dimension_numbers = #tpu.dot_dimension_numbers<[1], [0], [0], [1], [0, 0, 1, 1], [], []>} : vector<128x64xf32>, vector<64x64xf32>, vector<128x64xf32> -> vector<128x64xf32>
    %114 = arith.addf %109, %113 : vector<128x64xf32>
    %c34 = arith.constant 34 : index
    %c0_75 = arith.constant 0 : index
    %115 = vector.load %arg13[%c34, %c0_75] : memref<176x64xf32, #tpu.memory_space<vmem>>, vector<128x64xf32>
    %c8 = arith.constant 8 : index
    %c0_76 = arith.constant 0 : index
    %c0_77 = arith.constant 0 : index
    %116 = vector.load %arg7[%c8, %c0_76, %c0_77] : memref<9x64x64xf32, #tpu.memory_space<vmem>>, vector<1x64x64xf32>
    %117 = vector.shape_cast %116 : vector<1x64x64xf32> to vector<64x64xf32>
    %cst_78 = arith.constant dense<0.000000e+00> : vector<128x64xf32>
    %118 = tpu.matmul %115, %117, %cst_78 {dimension_numbers = #tpu.dot_dimension_numbers<[1], [0], [0], [1], [0, 0, 1, 1], [], []>} : vector<128x64xf32>, vector<64x64xf32>, vector<128x64xf32> -> vector<128x64xf32>
    %119 = arith.addf %114, %118 : vector<128x64xf32>
    %120 = vector.shape_cast %119 : vector<128x64xf32> to vector<8x16x64xf32>
    %121 = vector.extract_strided_slice %120 {offsets = [0, 0, 0], sizes = [8, 8, 64], strides = [1, 1, 1]} : vector<8x16x64xf32> to vector<8x8x64xf32>
    %c0_79 = arith.constant 0 : index
    %c0_80 = arith.constant 0 : index
    %c0_81 = arith.constant 0 : index
    %122 = vector.load %arg8[%c0_79, %c0_80, %c0_81] : memref<1x1x64xf32, #tpu.memory_space<vmem>>, vector<1x1x64xf32>
    %123 = vector.broadcast %122 : vector<1x1x64xf32> to vector<8x8x64xf32>
    %124 = arith.addf %121, %123 : vector<8x8x64xf32>
    %c0_82 = arith.constant 0 : index
    %c0_83 = arith.constant 0 : index
    %c0_84 = arith.constant 0 : index
    %c0_85 = arith.constant 0 : index
    %125 = vector.load %arg9[%c0_82, %c0_83, %c0_84, %c0_85] : memref<1x8x8x32xf32, #tpu.memory_space<vmem>>, vector<1x8x8x32xf32>
    %126 = vector.shape_cast %125 : vector<1x8x8x32xf32> to vector<8x8x32xf32>
    %c0_86 = arith.constant 0 : index
    %c0_87 = arith.constant 0 : index
    %127 = vector.load %arg10[%c0_86, %c0_87] : memref<32x64xf32, #tpu.memory_space<vmem>>, vector<32x64xf32>
    "tpu.trace_start"() <{level = 10 : i32, message = "hwc,cd->hwd"}> : () -> ()
    %cst_88 = arith.constant dense<0.000000e+00> : vector<8x8x64xf32>
    %128 = tpu.matmul %126, %127, %cst_88 {dimension_numbers = #tpu.dot_dimension_numbers<[2], [0], [0, 1], [1], [0, 0, 0, 1, 1, 1], [], []>} : vector<8x8x32xf32>, vector<32x64xf32>, vector<8x8x64xf32> -> vector<8x8x64xf32>
    "tpu.trace_stop"() : () -> ()
    %129 = arith.addf %124, %128 : vector<8x8x64xf32>
    %c0_89 = arith.constant 0 : index
    %c0_90 = arith.constant 0 : index
    %c0_91 = arith.constant 0 : index
    %130 = vector.load %arg11[%c0_89, %c0_90, %c0_91] : memref<1x1x64xf32, #tpu.memory_space<vmem>>, vector<1x1x64xf32>
    %131 = vector.broadcast %130 : vector<1x1x64xf32> to vector<8x8x64xf32>
    %132 = arith.addf %129, %131 : vector<8x8x64xf32>
    %c0_92 = arith.constant 0 : index
    %c0_93 = arith.constant 0 : index
    %c0_94 = arith.constant 0 : index
    %c0_95 = arith.constant 0 : index
    %133 = vector.load %arg12[%c0_92, %c0_93, %c0_94, %c0_95] : memref<1x8x8x64xf32, #tpu.memory_space<vmem>>, vector<1x8x8x64xf32>
    %134 = vector.shape_cast %133 : vector<1x8x8x64xf32> to vector<8x8x64xf32>
    %135 = vector.shape_cast %132 : vector<8x8x64xf32> to vector<1x8x8x64xf32>
    tpu.vector_store %arg12[%c0_92, %c0_93, %c0_94, %c0_95], %135 {strides = array<i32>} : memref<1x8x8x64xf32, #tpu.memory_space<vmem>>, vector<1x8x8x64xf32>,
    return
  }
  func.func @transform_0(%arg0: i32, %arg1: i32) -> (i32, i32, i32) {
    %c0_i32 = arith.constant 0 : i32
    %c0_i32_0 = arith.constant 0 : i32
    %c0_i32_1 = arith.constant 0 : i32
    return %arg0, %c0_i32, %c0_i32_0 : i32, i32, i32
  }
  func.func @transform_1(%arg0: i32, %arg1: i32) -> (i32, i32, i32) {
    %c0_i32 = arith.constant 0 : i32
    %c0_i32_0 = arith.constant 0 : i32
    %c0_i32_1 = arith.constant 0 : i32
    return %arg0, %c0_i32, %c0_i32_0 : i32, i32, i32
  }
  func.func @transform_2(%arg0: i32, %arg1: i32) -> (i32, i32, i32, i32) {
    %c0_i32 = arith.constant 0 : i32
    %c0_i32_0 = arith.constant 0 : i32
    %c0_i32_1 = arith.constant 0 : i32
    return %arg0, %arg1, %c0_i32, %c0_i32_0 : i32, i32, i32, i32
  }
  func.func @transform_3(%arg0: i32, %arg1: i32) -> (i32, i32, i32, i32) {
    %c8_i32 = arith.constant 8 : i32
    %0 = arith.muli %arg1, %c8_i32 : i32
    %c1_i32 = arith.constant 1 : i32
    %1 = arith.subi %0, %c1_i32 : i32
    %c0_i32 = arith.constant 0 : i32
    %2 = arith.maxsi %1, %c0_i32 : i32
    %c0_i32_0 = arith.constant 0 : i32
    %c0_i32_1 = arith.constant 0 : i32
    %c0_i32_2 = arith.constant 0 : i32
    return %arg0, %2, %c0_i32_0, %c0_i32_1 : i32, i32, i32, i32
  }
  func.func @transform_4(%arg0: i32, %arg1: i32) -> (i32, i32, i32, i32) {
    %c8_i32 = arith.constant 8 : i32
    %0 = arith.muli %arg1, %c8_i32 : i32
    %c8_i32_0 = arith.constant 8 : i32
    %1 = arith.addi %0, %c8_i32_0 : i32
    %c7_i32 = arith.constant 7 : i32
    %2 = arith.minsi %1, %c7_i32 : i32
    %c0_i32 = arith.constant 0 : i32
    %c0_i32_1 = arith.constant 0 : i32
    %c0_i32_2 = arith.constant 0 : i32
    return %arg0, %2, %c0_i32, %c0_i32_1 : i32, i32, i32, i32
  }
  func.func @transform_5(%arg0: i32, %arg1: i32) -> (i32, i32, i32) {
    %c0_i32 = arith.constant 0 : i32
    %c0_i32_0 = arith.constant 0 : i32
    %c0_i32_1 = arith.constant 0 : i32
    %c0_i32_2 = arith.constant 0 : i32
    return %c0_i32, %c0_i32_0, %c0_i32_1 : i32, i32, i32
  }
  func.func @transform_6(%arg0: i32, %arg1: i32) -> (i32, i32, i32) {
    %c0_i32 = arith.constant 0 : i32
    %c0_i32_0 = arith.constant 0 : i32
    %c0_i32_1 = arith.constant 0 : i32
    %c0_i32_2 = arith.constant 0 : i32
    return %c0_i32, %c0_i32_0, %c0_i32_1 : i32, i32, i32
  }
  func.func @transform_7(%arg0: i32, %arg1: i32) -> (i32, i32, i32, i32) {
    %c0_i32 = arith.constant 0 : i32
    %c0_i32_0 = arith.constant 0 : i32
    %c0_i32_1 = arith.constant 0 : i32
    return %arg0, %arg1, %c0_i32, %c0_i32_0 : i32, i32, i32, i32
  }
  func.func @transform_8(%arg0: i32, %arg1: i32) -> (i32, i32) {
    %c0_i32 = arith.constant 0 : i32
    %c0_i32_0 = arith.constant 0 : i32
    %c0_i32_1 = arith.constant 0 : i32
    return %c0_i32, %c0_i32_0 : i32, i32
  }
  func.func @transform_9(%arg0: i32, %arg1: i32) -> (i32, i32, i32) {
    %c0_i32 = arith.constant 0 : i32
    %c0_i32_0 = arith.constant 0 : i32
    %c0_i32_1 = arith.constant 0 : i32
    %c0_i32_2 = arith.constant 0 : i32
    return %c0_i32, %c0_i32_0, %c0_i32_1 : i32, i32, i32
  }
  func.func @transform_10(%arg0: i32, %arg1: i32) -> (i32, i32, i32, i32) {
    %c0_i32 = arith.constant 0 : i32
    %c0_i32_0 = arith.constant 0 : i32
    %c0_i32_1 = arith.constant 0 : i32
    return %arg0, %arg1, %c0_i32, %c0_i32_0 : i32, i32, i32, i32
  }
}

</mosaic_0001>

<bundles_post_ra>
// kernel: resnet_block.4
= control target key start
LH: loop header
LB: loop body
LE: loop exit
PB: predicated region body
PF: predicated region fallthrough
CT: control target
= control target key end

     0   :  { %12 = vsyncpa [#allocation5], 0  ;;  %s960_s0 = inlined_call_operand.hbm [shape: f32[2,8,8,32], index: 0, kind: input, shape index: {}]   ;;  %s961_s1 = inlined_call_operand.vmem [shape: f32[32,32], index: 1, kind: input, shape index: {}]   ;;  %s962_s2 = inlined_call_operand.vmem [shape: f32[32,32], index: 2, kind: input, shape index: {}]   ;;  %s963_s3 = inlined_call_operand.vmem [shape: f32[1,32], index: 3, kind: input, shape index: {}]   ;;  %s964_s4 = inlined_call_operand.vmem [shape: f32[1,32], index: 4, kind: input, shape index: {}]   ;;  %s965_s5 = inlined_call_operand.vmem [shape: f32[2,1,32], index: 5, kind: output, shape index: {0}]   ;;  %s966_s6 = inlined_call_operand.vmem [shape: f32[2,1,32], index: 6, kind: output, shape index: {1}]  }
   0x1   :  { %14 = vsyncpa [#allocation5 + $0x1], 0  ;;  %s801_s21 = smov 0   ;;  %s803_s22 = smov 0  }
   0x2   :  { %s805_s23 = smov 0   ;;  %s807_s24 = smov 0  }
   0x3   :  { %s809_s25 = smov 0   ;;  %s811_s26 = smov 0  }
   0x4 LB: > { %s601_s27 = sadd.s32 4294967295, %s760_s26   ;;  %s32_s28 = sadd.s32 1, %s756_s25  ;;  %s760_s26 = sphi %s811_s26, %s20_s26   ;;  %s756_s25 = sphi %s809_s25, %s973_s25   ;;  %s752_s24 = sphi %s807_s24, %s972_s24   ;;  %s748_s23 = sphi %s805_s23, %s971_s23   ;;  %s744_s22 = sphi %s803_s22, %s970_s22   ;;  %s740_s21 = sphi %s801_s21, %s969_s21  }
   0x5   : > { %p34_p0 = scmp.ge.s32.totalorder %s32_s28, 2  ;;  %s41_s29 = sadd.s32 1, %s748_s23 }
   0x6   : > { %p48_p1 = scmp.ne.s32.totalorder %s748_s23, %s744_s22  ;;  %p49_p2 = scmp.eq.s32.totalorder %s760_s26, 0 }
   0x7   : > { %s975_s28 = smov (%p34_p0, %s32_s28), 0  ;;  %p54_p4 = scmp.ne.s32.totalorder %s744_s22, %s740_s21 }
   0x8   : > { %p837_p3 = por %p49_p2, %p48_p1  ;;  %s36_s7 = ssub.s32 %s756_s25, %s975_s28 }
   0x9   : > { %p55_p5 = scmp.eq.s32.totalorder %s601_s27, 0  ;;  %p39_p6 = scmp.eq.s32.totalorder %s36_s7, 0 }
   0xa   : > { %p623_p8 = scmp.lt.s32.totalorder %s760_s26, 2  ;;  %s226_s10 = sand.u32 1, %s748_s23  }
   0xb   : > { %p844_p7 = por %p55_p5, %p54_p4  ;;  %s616_s11 = sshll.u32 %s756_s25, 6 }
   0xc   : > { %s850_s9 = scalar_select %p39_p6, %s748_s23, %s41_s29  }
   0xd   : > { %s605_s12 = sshll.u32 %s226_s10, 6  ;;  %s237_s15 = scalar_lea.hbm %s960_s0, %s616_s11 }
   0xe   : > { %s238_s16 = sshll.u32 %s237_s15, 4  ;;  %s230_s17 = scalar_lea.vmem [#allocation4], %s605_s12  ;;  %s239_s16 = int_to_ptr.hbm [resolvable:$true] %s238_s16 }
   0xf   : > { %s240_s18 = sshll.u32 %s230_s17, 4  ;;  %p620_p9 = pnand %p623_p8, %p837_p3  ;;  %s241_s18 = int_to_ptr.vmem [resolvable:$true] %s240_s18 }
  0x10   : > { %p608_p10 = scmp.ge.s32.totalorder %s760_s26, 1  ;;  %p248_p11 = scmp.lt.s32.totalorder %s760_s26, 3 }
  0x11   : > { %s227_s19 = scalar_lea.sflag [#allocation5], %s226_s10  ;;  %s762_s20 = smov 128  }
  0x12   : > { %s763_s21 = smov 8   ;;  %p249_p12 = pnand %p608_p10, %p248_p11 }
  0x13   : > { %622 = dma.hbm_to_vmem [thread:$0]  (!%p620_p9), %s239_s16, 1024, %s241_s18, %s227_s19, %s762_s20, %s762_s20, %s763_s21  }
  0x14   : > { %252 = sbr.rel (%p249_p12) target bundleno = 360 (0x168), region = 40  ;;  %s254_s27 = sand.u32 (!%p249_p12), 1, %s744_s22  }
  0x15   : > { %s609_s29 = sshll.u32 (!%p249_p12), %s254_s27, 6  ;;  %s255_s7 = scalar_lea.sflag (!%p249_p12), [#allocation5], %s254_s27 }
  0x16   : > { %s862_s11 = scalar_lea.vmem (!%p249_p12), [#allocation4], %s609_s29 }
  0x19   : > { %735 = dma.done.wait (%p844_p7), %s255_s7, 1024  }
  0x1a   : > { %737 = vsyncadd (%p844_p7), %s255_s7, 4294966272  ;;  %vm300_vm0 = vcmask 253952   ;;  %v764_v0 = vmov 0.0   ;;  %vm312_vm1 = vcmask 261120   ;;  %v378_v1 = vld [vmem:[%s961_s1 + $0x18] sm:$0xff]  ;;  %v377_v2 = vld [vmem:[%s961_s1 + $0x10] sm:$0xff] }
  0x1b   : > { %301 = vst.msk [vmem:[#allocation2] sm:$0x1] %vm300_vm0, %v764_v0  ;;  %394 = vmatpush.msra.mxu0 %v378_v1  ;;  %418 = vmatpush.msra.mxu1 %v378_v1  ;;  %v303_v3 = vld [vmem:[%s862_s11] sm:$0xff]  ;;  %v304_v4 = vld [vmem:[%s862_s11 + $0x8] sm:$0xff]  ;;  %v305_v6 = vld [vmem:[%s862_s11 + $0x10] sm:$0xff]  ;;  %p290_p13 = scmp.lt.s32.totalorder %s752_s24, 1 }
  0x1c   : > { %302 = vst.msk [vmem:[#allocation3] sm:$0x1] %vm300_vm0, %v764_v0  ;;  %v376_v5 = vld [vmem:[%s961_s1 + $0x8] sm:$0xff]  ;;  %v306_v7 = vld [vmem:[%s862_s11 + $0x18] sm:$0xff]  ;;  %v313_v8 = vsel %vm312_vm1, %v303_v3, 0.0  ;;  %v314_v9 = vsel %vm312_vm1, %v304_v4, 0.0  ;;  %v339_v10 = vmul.f32 %v303_v3, %v303_v3  ;;  %v340_v11 = vmul.f32 %v304_v4, %v304_v4 }
  0x1d   : > { %395 = vmatpush.msra.mxu0 %v377_v2  ;;  %419 = vmatpush.msra.mxu1 %v377_v2  ;;  %v307_v12 = vld [vmem:[%s862_s11 + $0x20] sm:$0xff]  ;;  %v315_v13 = vadd.f32 %v314_v9, %v313_v8  ;;  %v316_v14 = vsel %vm312_vm1, %v305_v6, 0.0  ;;  %v318_v16 = vsel %vm312_vm1, %v306_v7, 0.0  ;;  %v341_v17 = vmul.f32 %v305_v6, %v305_v6  ;;  %v308_v18 = vld [vmem:[%s862_s11 + $0x28] sm:$0xff]  ;;  %v309_v25 = vld [vmem:[%s862_s11 + $0x30] sm:$0xff]  ;;  %s977_s24 = smov (!%p290_p13, %s752_s24), 1 }
  0x1e   : > { %v375_v15 = vld [vmem:[%s961_s1] sm:$0xff]  ;;  %v342_v20 = vmul.f32 %v306_v7, %v306_v7  ;;  %v347_v21 = vsel %vm312_vm1, %v339_v10, 0.0  ;;  %v320_v22 = vsel %vm312_vm1, %v307_v12, 0.0  ;;  %v343_v23 = vmul.f32 %v307_v12, %v307_v12  ;;  %v452_v43 = vld [vmem:[%s962_s2 + $0x18] sm:$0xff]  ;;  %v451_v44 = vld [vmem:[%s962_s2 + $0x10] sm:$0xff]  ;;  %s292_s13 = scalar_lea.vmem %s965_s5, %s977_s24  ;;  %s295_s17 = scalar_lea.vmem %s966_s6, %s977_s24 }
  0x1f   : > { %396 = vmatpush.msra.mxu0 %v376_v5  ;;  %420 = vmatpush.msra.mxu1 %v376_v5  ;;  %v317_v19 = vadd.f32 %v316_v14, %v315_v13  ;;  %v348_v24 = vsel %vm312_vm1, %v340_v11, 0.0  ;;  %v350_v28 = vsel %vm312_vm1, %v341_v17, 0.0  ;;  %v322_v29 = vsel %vm312_vm1, %v308_v18, 0.0  ;;  %v310_v32 = vld [vmem:[%s862_s11 + $0x38] sm:$0xff]  ;;  %v450_v9 = vld [vmem:[%s962_s2 + $0x8] sm:$0xff] }
  0x20   : > { %v349_v27 = vadd.f32 %v348_v24, %v347_v21  ;;  %v344_v30 = vmul.f32 %v308_v18, %v308_v18  ;;  %v352_v31 = vsel %vm312_vm1, %v342_v20, 0.0  ;;  %v324_v35 = vsel %vm312_vm1, %v309_v25, 0.0  ;;  %468 = vmatpush.msra.mxu2 %v452_v43  ;;  %491 = vmatpush.msra.mxu3 %v452_v43  ;;  %v449_v10 = vld [vmem:[%s962_s2] sm:$0xff] }
  0x21   : > { %397 = vmatpush.msra.mxu0 %v375_v15  ;;  %v319_v26 = vadd.f32 %v318_v16, %v317_v19  ;;  %421 = vmatpush.msra.mxu1 %v375_v15  ;;  %v345_v36 = vmul.f32 %v309_v25, %v309_v25  ;;  %v354_v37 = vsel %vm312_vm1, %v343_v23, 0.0  ;;  %v326_v40 = vsel %vm312_vm1, %v310_v32, 0.0 }
  0x22   : > { %v351_v34 = vadd.f32 %v350_v28, %v349_v27  ;;  %v346_v41 = vmul.f32 %v310_v32, %v310_v32  ;;  %v356_v42 = vsel %vm312_vm1, %v344_v30, 0.0  ;;  %469 = vmatpush.msra.mxu2 %v451_v44  ;;  %492 = vmatpush.msra.mxu3 %v451_v44  ;;  %v311_v63 = vld [vmem:[#allocation2] sm:$0x1]  ;;  %v765_v11 = vmov 64.0  }
  0x23   : > { %v321_v33 = vadd.f32 %v320_v22, %v319_v26  ;;  %v358_v47 = vsel %vm312_vm1, %v345_v36, 0.0  ;;  %v338_v4 = vld [vmem:[#allocation3] sm:$0x1]  ;;  %676 = vrcp.f32 %v765_v11 }
  0x24   : > { %v353_v39 = vadd.f32 %v352_v31, %v351_v34  ;;  %v360_v50 = vsel %vm312_vm1, %v346_v41, 0.0  ;;  %470 = vmatpush.msra.mxu2 %v450_v9  ;;  %493 = vmatpush.msra.mxu3 %v450_v9 }
  0x25   : > { %v323_v38 = vadd.f32 %v322_v29, %v321_v33  ;;  %v499_v33 = vld [vmem:[%s963_s3] sm:$0x1] }
  0x26   : > { %v355_v46 = vadd.f32 %v354_v37, %v353_v39  ;;  %471 = vmatpush.msra.mxu2 %v449_v10  ;;  %494 = vmatpush.msra.mxu3 %v449_v10  ;;  %v502_v37 = vld [vmem:[%s964_s4] sm:$0x1] }
  0x27   : > { %v325_v45 = vadd.f32 %v324_v35, %v323_v38 }
  0x28   : > { %v357_v49 = vadd.f32 %v356_v42, %v355_v46 }
  0x29   : > { %v327_v48 = vadd.f32 %v326_v40, %v325_v45  ;;  %v677_v12 = vpop.eup %676 }
  0x2a   : > { %v359_v52 = vadd.f32 %v358_v47, %v357_v49  ;;  %v427_v13 = vmul.f32 64.0, %v677_v12  ;;  %vm431_vm2 = vweird.f32 %v677_v12 }
  0x2b   : > { %v328_v51 = vsel %vm312_vm1, %v327_v48, 0.0 }
  0x2c   : > { %v329_v53 = vrot.slane %v328_v51, 4  ;;  %v361_v54 = vadd.f32 %v360_v50, %v359_v52  ;;  %v428_v14 = vsub.f32 1.0, %v427_v13 }
  0x2e   : > { %v330_v55 = vadd.f32 %v329_v53, %v328_v51  ;;  %v362_v56 = vsel %vm312_vm1, %v361_v54, 0.0  ;;  %v429_v15 = vmul.f32 %v677_v12, %v428_v14 }
  0x2f   : > { %v363_v58 = vrot.slane %v362_v56, 4 }
  0x30   : > { %v331_v57 = vrot.slane %v330_v55, 2  ;;  %v430_v16 = vadd.f32 %v677_v12, %v429_v15 }
  0x31   : > { %v364_v60 = vadd.f32 %v363_v58, %v362_v56 }
  0x32   : > { %v332_v59 = vadd.f32 %v331_v57, %v330_v55  ;;  %v432_v17 = vsel %vm431_vm2, %v677_v12, %v430_v16 }
  0x33   : > { %v365_v62 = vrot.slane %v364_v60, 2 }
  0x34   : > { %v333_v61 = vrot.slane %v332_v59, 1 }
  0x35   : > { %v366_v1 = vadd.f32 %v365_v62, %v364_v60 }
  0x36   : > { %v334_v0 = vadd.f32 %v333_v61, %v332_v59 }
  0x37   : > { %v367_v3 = vrot.slane %v366_v1, 1 }
  0x38   : > { %v335_v2 = vadd.f32 %v334_v0, %v311_v63 }
  0x39   : > { %v368_v5 = vadd.f32 %v367_v3, %v366_v1 }
  0x3a   : > { %337 = vst.msk [vmem:[#allocation2] sm:$0x1] %vm300_vm0, %v335_v2 }
  0x3b   : > { %v369_v6 = vadd.f32 %v368_v5, %v338_v4 }
  0x3d   : > { %370 = vst.msk [vmem:[#allocation3] sm:$0x1] %vm300_vm0, %v369_v6 }
  0x41   : > { %v374_v7 = vld [vmem:[#allocation2] sm:$0x1] }
  0x42   : > { %610 = vmatmul.msk.f32.vlgmr.msra.gmra.mxu0 %vm312_vm1, %v374_v7 }
  0x44   : > { %v402_v8 = vld [vmem:[#allocation3] sm:$0x1] }
  0x45   : > { %611 = vmatmul.msk.f32.vlgmr.msra.gmra.mxu1 %vm312_vm1, %v402_v8 }
  0xbf   : > { %v399_v18 = vpop.f32.mrf.mxu0 }
  0xc0   : > { %v433_v19 = vmul.f32 %v432_v17, %v399_v18 }
  0xc2   : > { %v435_v20 = vmul.f32 %v433_v19, %v433_v19  ;;  %612 = vmatmul.msk.f32.vlgmr.msra.gmra.mxu2 %vm312_vm1, %v433_v19  ;;  %v423_v21 = vpop.f32.mrf.mxu1 }
  0xc3   : > { %v434_v22 = vmul.f32 %v432_v17, %v423_v21 }
  0xc5   : > { %v436_v23 = vsub.f32 %v434_v22, %v435_v20 }
  0xc7   : > { %v437_v24 = vmax.f32 %v436_v23, 0.0 }
  0xc9   : > { %v438_v25 = vadd.f32 1e-05, %v437_v24 }
  0xcb   : > { %678 = vrsqrt.f32 %v438_v25  ;;  %vm445_vm4 = vweird.f32 %v438_v25 }
  0xd1   : > { %v679_v26 = vpop.eup %678 }
  0xd2   : > { %v440_v27 = vmul.f32 %v679_v26, %v438_v25  ;;  %vm446_vm3 = vweird.f32 %v679_v26 }
  0xd3   : > { %vm447_vm5 = vmor %vm445_vm4, %vm446_vm3 }
  0xd4   : > { %v441_v28 = vmul.f32 %v679_v26, %v440_v27 }
  0xd6   : > { %v442_v29 = vmul.f32 0.5, %v441_v28 }
  0xd8   : > { %v443_v30 = vsub.f32 1.5, %v442_v29 }
  0xda   : > { %v444_v31 = vmul.f32 %v679_v26, %v443_v30 }
  0xdc   : > { %v448_v32 = vsel %vm447_vm5, %v679_v26, %v444_v31 }
  0xdd   : > { %613 = vmatmul.msk.f32.vlgmr.msra.gmra.mxu3 %vm312_vm1, %v448_v32 }
 0x145   : > { %v473_v36 = vpop.f32.mrf.mxu2 }
 0x160   : > { %v496_v34 = vpop.f32.mrf.mxu3 }
 0x161   : > { %v500_v35 = vmul.f32 %v499_v33, %v496_v34 }
 0x163   : > { %501 = vst.msk [vmem:[%s292_s13] sm:$0x1] %vm300_vm0, %v500_v35  ;;  %v503_v38 = vmul.f32 %v500_v35, %v473_v36 }
 0x165   : > { %v504_v39 = vsub.f32 %v502_v37, %v503_v38 }
 0x167   : > { %505 = vst.msk [vmem:[%s295_s17] sm:$0x1] %vm300_vm0, %v504_v39 }
 0x168 PF: > { %s20_s26 = sadd.s32 1, %s760_s26   ;;  %s969_s21 = smov %s744_s22 }
 0x169   : > { %p17_p0 = scmp.ge.s32.totalorder %s20_s26, 4   ;;  %s970_s22 = smov %s748_s23 }
 0x16a   : > { %s971_s23 = smov %s850_s9  ;;  %s972_s24 = smov %s756_s25 }
 0x16b   : > { %s973_s25 = smov %s975_s28  ;;  %19 = sbr.rel (!%p17_p0) target bundleno = 4 (0x4), region = 100 }
 0x170   :  { %535 = vsyncpa [#allocation5], 1 }
 0x171   :  { %537 = vsyncpa [#allocation5 + $0x1], 1 }

// kernel: resnet_block.6
= control target key start
LH: loop header
LB: loop body
LE: loop exit
PB: predicated region body
PF: predicated region fallthrough
CT: control target
= control target key end

     0   :  { %s691_s21 = smov 0   ;;  %s693_s22 = smov 0   ;;  %s812_s0 = inlined_call_operand.vmem [shape: f32[2,8,8,64], index: 0, kind: input, shape index: {}]   ;;  %s813_s1 = inlined_call_operand.vmem [shape: f32[64,32], index: 1, kind: input, shape index: {}]   ;;  %s814_s2 = inlined_call_operand.vmem [shape: f32[32,64], index: 2, kind: input, shape index: {}]   ;;  %s815_s3 = inlined_call_operand.vmem [shape: f32[1,64], index: 3, kind: input, shape index: {}]   ;;  %s816_s4 = inlined_call_operand.vmem [shape: f32[1,64], index: 4, kind: input, shape index: {}]   ;;  %s817_s5 = inlined_call_operand.vmem [shape: f32[2,1,64], index: 5, kind: output, shape index: {0}]   ;;  %s818_s6 = inlined_call_operand.vmem [shape: f32[2,1,64], index: 6, kind: output, shape index: {1}]  }
   0x1   :  { %s695_s23 = smov 0  }
   0x2 LB: > { %s29_s24 = sadd.s32 1, %s648_s22  ;;  %p590_p0 = scmp.ge.s32.totalorder %s652_s23, 1  ;;  %s652_s23 = sphi %s695_s23, %s17_s23   ;;  %s648_s22 = sphi %s693_s22, %s820_s22   ;;  %s644_s21 = sphi %s691_s21, %s819_s21  }
   0x3   : > { %p31_p1 = scmp.ge.s32.totalorder %s29_s24, 2  ;;  %p234_p2 = scmp.lt.s32.totalorder %s652_s23, 3 }
   0x5   : > { %s822_s24 = smov (%p31_p1, %s29_s24), 0  ;;  %p235_p3 = pnand %p590_p0, %p234_p2 }
   0x6   : > { %p270_p4 = scmp.lt.s32.totalorder (!%p235_p3), %s644_s21, 1 }
   0x7   : > { %238 = sbr.rel (%p235_p3) target bundleno = 348 (0x15c), region = 40 }
   0xc   : > { %v371_v0 = vld [vmem:[%s813_s1 + $0x38] sm:$0xff]  ;;  %v370_v1 = vld [vmem:[%s813_s1 + $0x30] sm:$0xff]  ;;  %vm289_vm0 = vcmask 516096   ;;  %v654_v2 = vmov 0.0   ;;  %v369_v3 = vld [vmem:[%s813_s1 + $0x28] sm:$0xff]  ;;  %s824_s21 = smov (!%p270_p4, %s644_s21), 1 }
   0xd   : > { %383 = vmatpush.msra.mxu0 %v371_v0  ;;  %407 = vmatpush.msra.mxu1 %v371_v0  ;;  %290 = vst.msk [vmem:[#allocation2] sm:$0x1] %vm289_vm0, %v654_v2  ;;  %v368_v4 = vld [vmem:[%s813_s1 + $0x20] sm:$0xff]  ;;  %s599_s9 = sshll.u32 %s824_s21, 6  ;;  %vm301_vm1 = vcmask 523264   ;;  %v367_v5 = vld [vmem:[%s813_s1 + $0x18] sm:$0xff]  ;;  %s281_s13 = scalar_lea.vmem %s817_s5, %s824_s21 }
   0xe   : > { %291 = vst.msk [vmem:[#allocation3] sm:$0x1] %vm289_vm0, %v654_v2  ;;  %s732_s14 = scalar_lea.vmem %s812_s0, %s599_s9  ;;  %v366_v14 = vld [vmem:[%s813_s1 + $0x10] sm:$0xff]  ;;  %v365_v20 = vld [vmem:[%s813_s1 + $0x8] sm:$0xff]  ;;  %v364_v28 = vld [vmem:[%s813_s1] sm:$0xff]  ;;  %vm446_vm3 = vcmask 261120   ;;  %s284_s18 = scalar_lea.vmem %s818_s6, %s824_s21 }
   0xf   : > { %384 = vmatpush.msra.mxu0 %v370_v1  ;;  %408 = vmatpush.msra.mxu1 %v370_v1  ;;  %v292_v6 = vld [vmem:[%s732_s14] sm:$0xff]  ;;  %v293_v7 = vld [vmem:[%s732_s14 + $0x8] sm:$0xff]  ;;  %v294_v8 = vld [vmem:[%s732_s14 + $0x10] sm:$0xff] }
  0x10   : > { %v295_v9 = vld [vmem:[%s732_s14 + $0x18] sm:$0xff]  ;;  %v302_v10 = vsel %vm301_vm1, %v292_v6, 0.0  ;;  %v303_v11 = vsel %vm301_vm1, %v293_v7, 0.0  ;;  %v305_v12 = vsel %vm301_vm1, %v294_v8, 0.0  ;;  %v328_v13 = vmul.f32 %v292_v6, %v292_v6  ;;  %v296_v15 = vld [vmem:[%s732_s14 + $0x20] sm:$0xff]  ;;  %v297_v21 = vld [vmem:[%s732_s14 + $0x28] sm:$0xff] }
  0x11   : > { %385 = vmatpush.msra.mxu0 %v369_v3  ;;  %409 = vmatpush.msra.mxu1 %v369_v3  ;;  %v304_v16 = vadd.f32 %v303_v11, %v302_v10  ;;  %v329_v17 = vmul.f32 %v293_v7, %v293_v7  ;;  %v307_v18 = vsel %vm301_vm1, %v295_v9, 0.0  ;;  %v330_v19 = vmul.f32 %v294_v8, %v294_v8  ;;  %v298_v29 = vld [vmem:[%s732_s14 + $0x30] sm:$0xff]  ;;  %v299_v36 = vld [vmem:[%s732_s14 + $0x38] sm:$0xff] }
  0x12   : > { %v331_v23 = vmul.f32 %v295_v9, %v295_v9  ;;  %v309_v24 = vsel %vm301_vm1, %v296_v15, 0.0  ;;  %v332_v25 = vmul.f32 %v296_v15, %v296_v15  ;;  %v336_v26 = vsel %vm301_vm1, %v328_v13, 0.0  ;;  %v445_v47 = vld [vmem:[%s814_s2 + $0x18] sm:$0xff]  ;;  %v444_v48 = vld [vmem:[%s814_s2 + $0x10] sm:$0xff]  ;;  %v443_v13 = vld [vmem:[%s814_s2 + $0x8] sm:$0xff] }
  0x13   : > { %386 = vmatpush.msra.mxu0 %v368_v4  ;;  %410 = vmatpush.msra.mxu1 %v368_v4  ;;  %v306_v22 = vadd.f32 %v305_v12, %v304_v16  ;;  %v337_v27 = vsel %vm301_vm1, %v329_v17, 0.0  ;;  %v339_v32 = vsel %vm301_vm1, %v330_v19, 0.0  ;;  %v311_v33 = vsel %vm301_vm1, %v297_v21, 0.0 }
  0x14   : > { %v338_v31 = vadd.f32 %v337_v27, %v336_v26  ;;  %v333_v34 = vmul.f32 %v297_v21, %v297_v21  ;;  %v341_v35 = vsel %vm301_vm1, %v331_v23, 0.0  ;;  %v313_v39 = vsel %vm301_vm1, %v298_v29, 0.0  ;;  %462 = vmatpush.msra.mxu2 %v445_v47  ;;  %485 = vmatpush.msra.mxu3 %v445_v47  ;;  %v300_v3 = vld [vmem:[#allocation2] sm:$0x1] }
  0x15   : > { %387 = vmatpush.msra.mxu0 %v367_v5  ;;  %411 = vmatpush.msra.mxu1 %v367_v5  ;;  %v308_v30 = vadd.f32 %v307_v18, %v306_v22  ;;  %v334_v40 = vmul.f32 %v298_v29, %v298_v29  ;;  %v343_v41 = vsel %vm301_vm1, %v332_v25, 0.0  ;;  %v315_v44 = vsel %vm301_vm1, %v299_v36, 0.0  ;;  %v327_v8 = vld [vmem:[#allocation3] sm:$0x1] }
  0x16   : > { %v340_v38 = vadd.f32 %v339_v32, %v338_v31  ;;  %v335_v45 = vmul.f32 %v299_v36, %v299_v36  ;;  %v345_v46 = vsel %vm301_vm1, %v333_v34, 0.0  ;;  %463 = vmatpush.msra.mxu2 %v444_v48  ;;  %486 = vmatpush.msra.mxu3 %v444_v48  ;;  %v655_v15 = vmov 128.0  }
  0x17   : > { %388 = vmatpush.msra.mxu0 %v366_v14  ;;  %412 = vmatpush.msra.mxu1 %v366_v14  ;;  %v310_v37 = vadd.f32 %v309_v24, %v308_v30  ;;  %v347_v51 = vsel %vm301_vm1, %v334_v40, 0.0  ;;  %v442_v14 = vld [vmem:[%s814_s2] sm:$0xff]  ;;  %626 = vrcp.f32 %v655_v15 }
  0x18   : > { %v342_v43 = vadd.f32 %v341_v35, %v340_v38  ;;  %v349_v54 = vsel %vm301_vm1, %v335_v45, 0.0  ;;  %464 = vmatpush.msra.mxu2 %v443_v13  ;;  %487 = vmatpush.msra.mxu3 %v443_v13 }
  0x19   : > { %389 = vmatpush.msra.mxu0 %v365_v20  ;;  %413 = vmatpush.msra.mxu1 %v365_v20  ;;  %v312_v42 = vadd.f32 %v311_v33, %v310_v37  ;;  %v493_v37 = vld [vmem:[%s815_s3] sm:$0x1] }
  0x1a   : > { %v344_v50 = vadd.f32 %v343_v41, %v342_v43  ;;  %465 = vmatpush.msra.mxu2 %v442_v14  ;;  %488 = vmatpush.msra.mxu3 %v442_v14  ;;  %v496_v41 = vld [vmem:[%s816_s4] sm:$0x1] }
  0x1b   : > { %390 = vmatpush.msra.mxu0 %v364_v28  ;;  %414 = vmatpush.msra.mxu1 %v364_v28  ;;  %v314_v49 = vadd.f32 %v313_v39, %v312_v42 }
  0x1c   : > { %v346_v53 = vadd.f32 %v345_v46, %v344_v50 }
  0x1d   : > { %v316_v52 = vadd.f32 %v315_v44, %v314_v49  ;;  %v627_v16 = vpop.eup %626 }
  0x1e   : > { %v348_v56 = vadd.f32 %v347_v51, %v346_v53  ;;  %v420_v17 = vmul.f32 128.0, %v627_v16  ;;  %vm424_vm2 = vweird.f32 %v627_v16 }
  0x1f   : > { %v317_v55 = vsel %vm301_vm1, %v316_v52, 0.0 }
  0x20   : > { %v318_v57 = vrot.slane %v317_v55, 4  ;;  %v350_v58 = vadd.f32 %v349_v54, %v348_v56  ;;  %v421_v18 = vsub.f32 1.0, %v420_v17 }
  0x22   : > { %v319_v59 = vadd.f32 %v318_v57, %v317_v55  ;;  %v351_v60 = vsel %vm301_vm1, %v350_v58, 0.0  ;;  %v422_v19 = vmul.f32 %v627_v16, %v421_v18 }
  0x23   : > { %v352_v62 = vrot.slane %v351_v60, 4 }
  0x24   : > { %v320_v61 = vrot.slane %v319_v59, 2  ;;  %v423_v20 = vadd.f32 %v627_v16, %v422_v19 }
  0x25   : > { %v353_v0 = vadd.f32 %v352_v62, %v351_v60 }
  0x26   : > { %v321_v63 = vadd.f32 %v320_v61, %v319_v59  ;;  %v425_v21 = vsel %vm424_vm2, %v627_v16, %v423_v20 }
  0x27   : > { %v354_v2 = vrot.slane %v353_v0, 2 }
  0x28   : > { %v322_v1 = vrot.slane %v321_v63, 1 }
  0x29   : > { %v355_v5 = vadd.f32 %v354_v2, %v353_v0 }
  0x2a   : > { %v323_v4 = vadd.f32 %v322_v1, %v321_v63 }
  0x2b   : > { %v356_v7 = vrot.slane %v355_v5, 1 }
  0x2c   : > { %v324_v6 = vadd.f32 %v323_v4, %v300_v3 }
  0x2d   : > { %v357_v9 = vadd.f32 %v356_v7, %v355_v5 }
  0x2e   : > { %326 = vst.msk [vmem:[#allocation2] sm:$0x1] %vm289_vm0, %v324_v6 }
  0x2f   : > { %v358_v10 = vadd.f32 %v357_v9, %v327_v8 }
  0x31   : > { %359 = vst.msk [vmem:[#allocation3] sm:$0x1] %vm289_vm0, %v358_v10 }
  0x35   : > { %v363_v11 = vld [vmem:[#allocation2] sm:$0x1] }
  0x36   : > { %593 = vmatmul.msk.f32.vlgmr.msra.gmra.mxu0 %vm301_vm1, %v363_v11 }
  0x38   : > { %v395_v12 = vld [vmem:[#allocation3] sm:$0x1] }
  0x39   : > { %594 = vmatmul.msk.f32.vlgmr.msra.gmra.mxu1 %vm301_vm1, %v395_v12 }
  0xb3   : > { %v392_v22 = vpop.f32.mrf.mxu0 }
  0xb4   : > { %v426_v23 = vmul.f32 %v425_v21, %v392_v22 }
  0xb6   : > { %v428_v24 = vmul.f32 %v426_v23, %v426_v23  ;;  %595 = vmatmul.msk.f32.vlgmr.msra.gmra.mxu2 %vm446_vm3, %v426_v23  ;;  %v416_v25 = vpop.f32.mrf.mxu1 }
  0xb7   : > { %v427_v26 = vmul.f32 %v425_v21, %v416_v25 }
  0xb9   : > { %v429_v27 = vsub.f32 %v427_v26, %v428_v24 }
  0xbb   : > { %v430_v28 = vmax.f32 %v429_v27, 0.0 }
  0xbd   : > { %v431_v29 = vadd.f32 1e-05, %v430_v28 }
  0xbf   : > { %628 = vrsqrt.f32 %v431_v29  ;;  %vm438_vm5 = vweird.f32 %v431_v29 }
  0xc5   : > { %v629_v30 = vpop.eup %628 }
  0xc6   : > { %v433_v31 = vmul.f32 %v629_v30, %v431_v29  ;;  %vm439_vm4 = vweird.f32 %v629_v30 }
  0xc7   : > { %vm440_vm6 = vmor %vm438_vm5, %vm439_vm4 }
  0xc8   : > { %v434_v32 = vmul.f32 %v629_v30, %v433_v31 }
  0xca   : > { %v435_v33 = vmul.f32 0.5, %v434_v32 }
  0xcc   : > { %v436_v34 = vsub.f32 1.5, %v435_v33 }
  0xce   : > { %v437_v35 = vmul.f32 %v629_v30, %v436_v34 }
  0xd0   : > { %v441_v36 = vsel %vm440_vm6, %v629_v30, %v437_v35 }
  0xd1   : > { %596 = vmatmul.msk.f32.vlgmr.msra.gmra.mxu3 %vm446_vm3, %v441_v36 }
 0x139   : > { %v467_v40 = vpop.f32.mrf.mxu2 }
 0x154   : > { %v490_v38 = vpop.f32.mrf.mxu3 }
 0x155   : > { %v494_v39 = vmul.f32 %v493_v37, %v490_v38 }
 0x157   : > { %495 = vst.msk [vmem:[%s281_s13] sm:$0x1] %vm289_vm0, %v494_v39  ;;  %v497_v42 = vmul.f32 %v494_v39, %v467_v40 }
 0x159   : > { %v498_v43 = vsub.f32 %v496_v41, %v497_v42 }
 0x15b   : > { %499 = vst.msk [vmem:[%s284_s18] sm:$0x1] %vm289_vm0, %v498_v43 }
 0x15c PF: > { %s17_s23 = sadd.s32 1, %s652_s23   ;;  %s819_s21 = smov %s648_s22 }
 0x15d   : > { %p14_p5 = scmp.ge.s32.totalorder %s17_s23, 4   ;;  %s820_s22 = smov %s822_s24 }
 0x15f   :  { %16 = sbr.rel (!%p14_p5) target bundleno = 2 (0x2), region = 90 }

// kernel: resnet_block.5
= control target key start
LH: loop header
LB: loop body
LE: loop exit
PB: predicated region body
PF: predicated region fallthrough
CT: control target
= control target key end

     0   :  { %12 = vsyncpa [#allocation4], 0  ;;  %s2486_s24 = smov 0   ;;  %s2488_s25 = smov 0   ;;  %s3247_s0 = inlined_call_operand.vmem [shape: f32[2,1,32], index: 0, kind: input, shape index: {}]   ;;  %s3248_s1 = inlined_call_operand.vmem [shape: f32[2,1,32], index: 1, kind: input, shape index: {}]   ;;  %s3249_s2 = inlined_call_operand.vmem [shape: f32[2,8,8,32], index: 2, kind: input, shape index: {}, may-alias: {2,3,4}]   ;;  %s3250_s3 = inlined_call_operand.vmem [shape: f32[2,8,8,32], index: 3, kind: input, shape index: {}, may-alias: {2,3,4}]   ;;  %s3251_s4 = inlined_call_operand.vmem [shape: f32[2,8,8,32], index: 4, kind: input, shape index: {}, may-alias: {2,3,4}]   ;;  %s3252_s5 = inlined_call_operand.hbm [shape: f32[9,32,64], index: 5, kind: input, shape index: {}]   ;;  %s3253_s6 = inlined_call_operand.vmem [shape: f32[1,1,64], index: 6, kind: input, shape index: {}]   ;;  %s3254_s7 = inlined_call_operand.vmem [shape: f32[2,8,8,64], index: 7, kind: output, shape index: {}]  }
   0x1   :  { %s2490_s26 = smov 0  }
   0x2 LB: > { %s2125_s3 = sadd.s32 4294967295, %s2440_s26   ;;  %s30_s4 = sadd.s32 1, %s2436_s25  ;;  %s2440_s26 = sphi %s2490_s26, %s18_s26   ;;  %s2436_s25 = sphi %s2488_s25, %s3276_s25   ;;  %s2432_s24 = sphi %s2486_s24, %s3275_s24  }
   0x3   : > { %p32_p0 = scmp.ge.s32.totalorder %s30_s4, 2  ;;  %p2127_p1 = scmp.ge.s32.totalorder %s2440_s26, 1 }
   0x4   : > { %p257_p2 = scmp.lt.s32.totalorder %s2440_s26, 3  ;;  %p2321_p4 = scmp.eq.s32.totalorder %s2125_s3, 0 }
   0x5   : > { %s3278_s4 = smov (%p32_p0, %s30_s4), 0  ;;  %s268_s29 = sshll.u32 %s3252_s5, 4  ;;  %s269_s29 = int_to_ptr.hbm [resolvable:$true] %s268_s29 }
   0x6   : > { %p258_p3 = pnand %p2127_p1, %p257_p2  ;;  %s2442_s30 = smov [#allocation3]  }
   0x7   : > { %s270_s8 = sshll.u32 %s2442_s30, 4  ;;  %s2443_s9 = smov 128   ;;  %s271_s8 = int_to_ptr.vmem [resolvable:$true] %s270_s8 }
   0x8   : > { %p2317_p5 = pneg %p258_p3  ;;  %s2444_s10 = smov 8  }
   0x9   : > { %352 = sbr.rel (%p258_p3) target bundleno = 479 (0x1df), region = 48 }
   0xa   : > { %p2318_p6 = pnand %p2321_p4, %p2317_p5 }
   0xc   : > { %2320 = dma.hbm_to_vmem [thread:$0]  (!%p2318_p6), %s269_s29, 4608, %s271_s8, [#allocation4], %s2443_s9, %s2443_s9, %s2444_s10  }
   0xe   : > { %2427 = dma.done.wait (%p2321_p4), [#allocation4], 4608  }
   0xf   : > { %2429 = vsyncadd (%p2321_p4), [#allocation4], 4294962688  ;;  %p423_p7 = scmp.lt.s32.totalorder %s2432_s24, 1  ;;  %vm483_vm0 = vcmask 261120   ;;  %v2445_v0 = vmov 0.0   ;;  %v802_v1 = vld [vmem:[#allocation3 + $0x38] sm:$0xff] }
  0x10   : > { %488 = vst.msk [vmem:[#allocation2 + $0x20] sm:$0xff] %vm483_vm0, %v2445_v0  ;;  %v801_v2 = vld [vmem:[#allocation3 + $0x30] sm:$0xff]  ;;  %2301 = vmatpush.msra.mxu1 %v802_v1  ;;  %2302 = vmatpush.msra.mxu2 %v802_v1  ;;  %v800_v3 = vld [vmem:[#allocation3 + $0x28] sm:$0xff]  ;;  %v799_v14 = vld [vmem:[#allocation3 + $0x20] sm:$0xff] }
  0x11   : > { %s3280_s24 = smov (!%p423_p7, %s2432_s24), 1  ;;  %489 = vst.msk [vmem:[#allocation2 + $0x28] sm:$0xff] %vm483_vm0, %v2445_v0  ;;  %2303 = vmatpush.msra.mxu3 %v802_v1  ;;  %863 = vmatpush.msra.mxu0 %v802_v1  ;;  %v1033_v36 = vld [vmem:[#allocation3 + $0x58] sm:$0xff]  ;;  %v1032_v58 = vld [vmem:[#allocation3 + $0x50] sm:$0xff] }
  0x12   : > { %s425_s13 = scalar_lea.vmem %s3247_s0, %s3280_s24  ;;  %484 = vst.msk [vmem:[#allocation2] sm:$0xff] %vm483_vm0, %v2445_v0  ;;  %s428_s16 = scalar_lea.vmem %s3248_s1, %s3280_s24  ;;  %2304 = vmatpush.msra.mxu1 %v801_v2  ;;  %2305 = vmatpush.msra.mxu2 %v801_v2  ;;  %v1167_v42 = vld [vmem:[#allocation3 + $0x78] sm:$0xff] }
  0x13   : > { %s2296_s17 = sshll.u32 %s3280_s24, 6  ;;  %485 = vst.msk [vmem:[#allocation2 + $0x8] sm:$0xff] %vm483_vm0, %v2445_v0  ;;  %v481_v4 = vld [vmem:[%s425_s13] sm:$0x1]  ;;  %2306 = vmatpush.msra.mxu3 %v801_v2  ;;  %864 = vmatpush.msra.mxu0 %v801_v2  ;;  %v781_v43 = vld [vmem:[#allocation3 + $0x18] sm:$0xff] }
  0x14   : > { %s2532_s20 = scalar_lea.vmem %s3249_s2, %s2296_s17  ;;  %486 = vst.msk [vmem:[#allocation2 + $0x10] sm:$0xff] %vm483_vm0, %v2445_v0  ;;  %v482_v5 = vld [vmem:[%s428_s16] sm:$0x1]  ;;  %v2541_v7 = vperm.slane %v481_v4, 0  ;;  %2307 = vmatpush.msra.mxu1 %v800_v3  ;;  %2308 = vmatpush.msra.mxu2 %v800_v3  ;;  %v1301_v44 = vld [vmem:[#allocation3 + $0x98] sm:$0xff]  ;;  %s3205_s27 = scalar_lea.vmem %s3254_s7, %s2296_s17 }
  0x15   : > { %487 = vst.msk [vmem:[#allocation2 + $0x18] sm:$0xff] %vm483_vm0, %v2445_v0  ;;  %v507_v6 = vld [vmem:[%s2532_s20 + $0x8] sm:$0xff]  ;;  %v2543_v8 = vperm.slane %v482_v5, 0  ;;  %v509_v9 = vld [vmem:[%s2532_s20 + $0x18] sm:$0xff]  ;;  %v508_v11 = vld [vmem:[%s2532_s20 + $0x10] sm:$0xff]  ;;  %2309 = vmatpush.msra.mxu3 %v800_v3  ;;  %865 = vmatpush.msra.mxu0 %v800_v3 }
  0x16   : > { %490 = vst.msk [vmem:[#allocation2 + $0x30] sm:$0xff] %vm483_vm0, %v2445_v0  ;;  %v511_v10 = vld [vmem:[%s2532_s20 + $0x28] sm:$0xff]  ;;  %v510_v12 = vld [vmem:[%s2532_s20 + $0x20] sm:$0xff]  ;;  %v512_v13 = vld [vmem:[%s2532_s20 + $0x30] sm:$0xff]  ;;  %v518_v15 = vmul.f32 %v2541_v7, %v507_v6  ;;  %v520_v16 = vmul.f32 %v2541_v7, %v509_v9  ;;  %v519_v18 = vmul.f32 %v2541_v7, %v508_v11  ;;  %2310 = vmatpush.msra.mxu1 %v799_v14 }
  0x17   : > { %491 = vst.msk [vmem:[#allocation2 + $0x38] sm:$0xff] %vm483_vm0, %v2445_v0  ;;  %v522_v17 = vmul.f32 %v2541_v7, %v511_v10  ;;  %v521_v19 = vmul.f32 %v2541_v7, %v510_v12  ;;  %v523_v20 = vmul.f32 %v2541_v7, %v512_v13  ;;  %2311 = vmatpush.msra.mxu2 %v799_v14  ;;  %v506_v27 = vld [vmem:[%s2532_s20] sm:$0xff] }
  0x18   : > { %492 = vst.msk [vmem:[#allocation2 + $0x40] sm:$0xff] %vm483_vm0, %v2445_v0  ;;  %v2565_v21 = vadd.f32 %v2543_v8, %v518_v15  ;;  %v2570_v22 = vadd.f32 %v2543_v8, %v520_v16  ;;  %v2578_v24 = vadd.f32 %v2543_v8, %v519_v18  ;;  %2312 = vmatpush.msra.mxu3 %v799_v14  ;;  %v1166_v6 = vld [vmem:[#allocation3 + $0x70] sm:$0xff] }
  0x19   : > { %493 = vst.msk [vmem:[#allocation2 + $0x48] sm:$0xff] %vm483_vm0, %v2445_v0  ;;  %v2573_v23 = vadd.f32 %v2543_v8, %v522_v17  ;;  %v2581_v25 = vadd.f32 %v2543_v8, %v521_v19  ;;  %v2584_v26 = vadd.f32 %v2543_v8, %v523_v20  ;;  %866 = vmatpush.msra.mxu0 %v799_v14  ;;  %v780_v9 = vld [vmem:[#allocation3 + $0x10] sm:$0xff]  ;;  %v1164_v20 = vld [vmem:[#allocation3 + $0x60] sm:$0xff] }
  0x1a   : > { %494 = vst.msk [vmem:[#allocation2 + $0x50] sm:$0xff] %vm483_vm0, %v2445_v0  ;;  %v2141_v28 = vmul.f32 -1.442695, %v2565_v21  ;;  %v2143_v29 = vmul.f32 -1.442695, %v2570_v22  ;;  %v517_v33 = vmul.f32 %v2541_v7, %v506_v27  ;;  %1094 = vmatpush.msrb.mxu2 %v1033_v36  ;;  %1228 = vmatpush.msrb.mxu3 %v1167_v42  ;;  %v1300_v12 = vld [vmem:[#allocation3 + $0x90] sm:$0xff] }
  0x1b   : > { %495 = vst.msk [vmem:[#allocation2 + $0x58] sm:$0xff] %vm483_vm0, %v2445_v0  ;;  %v2145_v30 = vmul.f32 -1.442695, %v2573_v23  ;;  %v2142_v31 = vmul.f32 -1.442695, %v2578_v24  ;;  %968 = vmatpush.msrb.mxu1 %v781_v43  ;;  %1362 = vmatpush.msrb.mxu0 %v1301_v44  ;;  %v783_v19 = vld [vmem:[#allocation2 + $0x9] sm:$0xff] }
  0x1c   : > { %496 = vst.msk [vmem:[#allocation2 + $0x60] sm:$0xff] %vm483_vm0, %v2445_v0  ;;  %2352 = vpow2.f32 %v2141_v28  ;;  %v2144_v32 = vmul.f32 -1.442695, %v2581_v25  ;;  %v2146_v34 = vmul.f32 -1.442695, %v2584_v26  ;;  %v2609_v35 = vadd.f32 %v2543_v8, %v517_v33  ;;  %1095 = vmatpush.msrb.mxu2 %v1032_v58  ;;  %1229 = vmatpush.msrb.mxu3 %v1166_v6 }
  0x1d   : > { %497 = vst.msk [vmem:[#allocation2 + $0x68] sm:$0xff] %vm483_vm0, %v2445_v0  ;;  %2354 = vpow2.f32 %v2143_v29  ;;  %969 = vmatpush.msrb.mxu1 %v780_v9  ;;  %1363 = vmatpush.msrb.mxu0 %v1300_v12  ;;  %v1030_v12 = vld [vmem:[#allocation3 + $0x40] sm:$0xff] }
  0x1e   : > { %498 = vst.msk [vmem:[#allocation2 + $0x70] sm:$0xff] %vm483_vm0, %v2445_v0  ;;  %2356 = vpow2.f32 %v2145_v30  ;;  %v2140_v45 = vmul.f32 -1.442695, %v2609_v35 }
  0x1f   : > { %499 = vst.msk [vmem:[#allocation2 + $0x78] sm:$0xff] %vm483_vm0, %v2445_v0  ;;  %2358 = vpow2.f32 %v2142_v31 }
  0x20   : > { %500 = vst.msk [vmem:[#allocation2 + $0x80] sm:$0xff] %vm483_vm0, %v2445_v0  ;;  %2360 = vpow2.f32 %v2144_v32 }
  0x21   : > { %501 = vst.msk [vmem:[#allocation2 + $0x88] sm:$0xff] %vm483_vm0, %v2445_v0  ;;  %2362 = vpow2.f32 %v2146_v34 }
  0x22   : > { %502 = vst.msk [vmem:[#allocation2 + $0x90] sm:$0xff] %vm483_vm0, %v2445_v0  ;;  %v2353_v37 = vpop.eup %2352 }
  0x23   : > { %503 = vst.msk [vmem:[#allocation2 + $0x98] sm:$0xff] %vm483_vm0, %v2445_v0  ;;  %v2355_v38 = vpop.eup %2354  ;;  %v2615_v39 = vadd.f32 1.0, %v2353_v37 }
  0x24   : > { %504 = vst.msk [vmem:[#allocation2 + $0xa0] sm:$0xff] %vm483_vm0, %v2445_v0  ;;  %v2357_v40 = vpop.eup %2356  ;;  %v2619_v41 = vadd.f32 1.0, %v2355_v38 }
  0x25   : > { %752 = vst.msk [vmem:[#allocation2 + $0x1] sm:$0xff] %vm483_vm0, %v2445_v0  ;;  %v2359_v46 = vpop.eup %2358  ;;  %2364 = vrcp.f32 %v2615_v39  ;;  %v592_v48 = vand.u32 2147483647, %v2615_v39  ;;  %v594_v50 = vand.u32 2147483648, %v2615_v39  ;;  %v2626_v51 = vadd.f32 1.0, %v2357_v40  ;;  %v1031_v40 = vld [vmem:[#allocation3 + $0x48] sm:$0xff] }
  0x26   : > { %753 = vst.msk [vmem:[#allocation2 + $0x91] sm:$0xff] %vm483_vm0, %v2445_v0  ;;  %v2361_v47 = vpop.eup %2360  ;;  %2366 = vrcp.f32 %v2619_v41  ;;  %v2628_v52 = vadd.f32 1.0, %v2359_v46  ;;  %v622_v53 = vand.u32 2147483647, %v2619_v41  ;;  %v624_v54 = vand.u32 2147483648, %v2619_v41  ;;  %1096 = vmatpush.msrb.mxu2 %v1031_v40 }
  0x27   : > { %v2363_v49 = vpop.eup %2362  ;;  %v2632_v55 = vadd.f32 1.0, %v2361_v47  ;;  %2368 = vpow2.f32 %v2140_v45  ;;  %vm588_vm1 = vweird.f32 %v2615_v39  ;;  %vm618_vm2 = vweird.f32 %v2619_v41 }
  0x28   : > { %2370 = vrcp.f32 %v2626_v51  ;;  %v654_v56 = vand.u32 2147483648, %v2626_v51  ;;  %vm2638_vm3 = vcmp.eq.f32.partialorder %v592_v48, 8.507059e+37  ;;  %v652_v60 = vand.u32 2147483647, %v2626_v51  ;;  %1097 = vmatpush.msrb.mxu2 %v1030_v12  ;;  %v1701_v12 = vld [vmem:[#allocation3 + $0xe8] sm:$0xff] }
  0x29   : > { %2372 = vrcp.f32 %v2628_v52  ;;  %v2645_v61 = vadd.f32 1.0, %v2363_v49  ;;  %v2649_v63 = vor.u32 1.1754944e-38, %v594_v50  ;;  %v607_v0 = vand.u32 2147483647, %v2628_v52 }
  0x2a   : > { %v609_v1 = vand.u32 2147483648, %v2628_v52  ;;  %2374 = vrcp.f32 %v2632_v55  ;;  %vm2658_vm4 = vcmp.eq.f32.partialorder %v622_v53, 8.507059e+37  ;;  %v2662_v5 = vor.u32 1.1754944e-38, %v624_v54  ;;  %v1165_v53 = vld [vmem:[#allocation3 + $0x68] sm:$0xff] }
  0x2b   : > { %v2647_v62 = vpop.eup %2364  ;;  %vm648_vm5 = vweird.f32 %v2626_v51  ;;  %v2667_v11 = vor.u32 1.1754944e-38, %v654_v56  ;;  %vm603_vm6 = vweird.f32 %v2628_v52  ;;  %v639_v13 = vand.u32 2147483648, %v2632_v55  ;;  %v779_v54 = vld [vmem:[#allocation3 + $0x8] sm:$0xff]  ;;  %1230 = vmatpush.msrb.mxu3 %v1165_v53 }
  0x2c   : > { %v782_v57 = vld [vmem:[#allocation2 + $0x1] sm:$0xff]  ;;  %v2654_v2 = vpop.eup %2366  ;;  %v584_v3 = vmul.f32 %v2647_v62, %v2615_v39  ;;  %vm589_vm7 = vweird.f32 %v2647_v62  ;;  %vm2672_vm8 = vcmp.eq.f32.partialorder %v652_v60, 8.507059e+37  ;;  %vm633_vm9 = vweird.f32 %v2632_v55  ;;  %970 = vmatpush.msrb.mxu1 %v779_v54  ;;  %v2817_v39 = vld [vmem:[#allocation2 + $0x29] sm:$0xff] }
  0x2d   : > { %2150 = vmatmul.msk.f32.vlgmr.msra.gmra.mxu0 %vm483_vm0, %v782_v57  ;;  %v614_v10 = vmul.f32 %v2654_v2, %v2619_v41  ;;  %v2369_v14 = vpop.eup %2368  ;;  %2376 = vrcp.f32 %v2645_v61  ;;  %vm619_vm10 = vweird.f32 %v2654_v2  ;;  %vm2681_vm11 = vcmp.eq.f32.partialorder %v607_v0, 8.507059e+37  ;;  %vm2699_vm13 = vmor %vm588_vm1, %vm589_vm7  ;;  %v1299_v57 = vld [vmem:[#allocation3 + $0x88] sm:$0xff]  ;;  %1231 = vmatpush.msrb.mxu3 %v1164_v20 }
  0x2e   : > { %v585_v15 = vsub.f32 1.0, %v584_v3  ;;  %v2678_v17 = vpop.eup %2370  ;;  %v2685_v27 = vor.u32 1.1754944e-38, %v609_v1  ;;  %v637_v28 = vand.u32 2147483647, %v2632_v55  ;;  %vm663_vm12 = vweird.f32 %v2645_v61  ;;  %vm2711_vm14 = vmor %vm618_vm2, %vm619_vm10  ;;  %1364 = vmatpush.msrb.mxu0 %v1299_v57  ;;  %v2846_v57 = vld [vmem:[#allocation2 + $0x59] sm:$0xff] }
  0x2f   : > { %v615_v18 = vsub.f32 1.0, %v614_v10  ;;  %v2373_v29 = vpop.eup %2372  ;;  %v644_v31 = vmul.f32 %v2678_v17, %v2626_v51  ;;  %v667_v32 = vand.u32 2147483647, %v2645_v61  ;;  %v640_v38 = vor.u32 1.1754944e-38, %v639_v13  ;;  %v1836_v51 = vld [vmem:[#allocation3 + $0x110] sm:$0xff] }
  0x30   : > { %v586_v30 = vmul.f32 %v2647_v62, %v585_v15  ;;  %v2693_v33 = vpop.eup %2374  ;;  %v599_v37 = vmul.f32 %v2373_v29, %v2628_v52  ;;  %v669_v42 = vand.u32 2147483648, %v2645_v61  ;;  %vm649_vm15 = vweird.f32 %v2678_v17 }
  0x31   : > { %v616_v36 = vmul.f32 %v2654_v2, %v615_v18  ;;  %v645_v44 = vsub.f32 1.0, %v644_v31  ;;  %v629_v45 = vmul.f32 %v2693_v33, %v2632_v55  ;;  %vm604_vm1 = vweird.f32 %v2373_v29  ;;  %vm2737_vm2 = vmor %vm648_vm5, %vm649_vm15 }
  0x32   : > { %v587_v43 = vadd.f32 %v2647_v62, %v586_v30  ;;  %v600_v47 = vsub.f32 1.0, %v599_v37  ;;  %vm634_vm7 = vweird.f32 %v2693_v33  ;;  %v2725_v56 = vadd.f32 1.0, %v2369_v14 }
  0x33   : > { %v617_v46 = vadd.f32 %v2654_v2, %v616_v36  ;;  %v2377_v41 = vpop.eup %2376  ;;  %v646_v49 = vmul.f32 %v2678_v17, %v645_v44  ;;  %v630_v50 = vsub.f32 1.0, %v629_v45  ;;  %v670_v16 = vor.u32 1.1754944e-38, %v669_v42  ;;  %v1569_v36 = vld [vmem:[#allocation3 + $0xd8] sm:$0xff] }
  0x34   : > { %v591_v48 = vsel %vm2699_vm13, %v2647_v62, %v587_v43  ;;  %v601_v0 = vmul.f32 %v2373_v29, %v600_v47  ;;  %v659_v1 = vmul.f32 %v2377_v41, %v2645_v61  ;;  %vm664_vm5 = vweird.f32 %v2377_v41  ;;  %v1703_v42 = vld [vmem:[#allocation3 + $0xf8] sm:$0xff]  ;;  %v762_v62 = vld [vmem:[#allocation2] sm:$0xff] }
  0x35   : > { %2151 = vmatmul.msk.f32.gmra.mxu0 %vm483_vm0, %v783_v19  ;;  %v596_v58 = vsel %vm2638_vm3, %v2649_v63, %v591_v48  ;;  %v621_v60 = vsel %vm2711_vm14, %v2654_v2, %v617_v46  ;;  %v647_v63 = vadd.f32 %v2678_v17, %v646_v49  ;;  %vm2750_vm3 = vmor %vm603_vm6, %vm604_vm1  ;;  %v631_v2 = vmul.f32 %v2693_v33, %v630_v50  ;;  %v1435_v43 = vld [vmem:[#allocation3 + $0xb8] sm:$0xff] }
  0x36   : > { %v689_v3 = vmul.f32 %v596_v58, %v2565_v21  ;;  %v626_v59 = vsel %vm2658_vm4, %v2662_v5, %v621_v60  ;;  %v602_v9 = vadd.f32 %v2373_v29, %v601_v0  ;;  %vm2760_vm4 = vmor %vm633_vm9, %vm634_vm7  ;;  %v660_v4 = vsub.f32 1.0, %v659_v1  ;;  %v1837_v45 = vld [vmem:[#allocation3 + $0x118] sm:$0xff]  ;;  %v785_v58 = vld [vmem:[#allocation2 + $0x19] sm:$0xff] }
  0x37   : > { %v691_v6 = vmul.f32 %v626_v59, %v2570_v22  ;;  %v651_v52 = vsel %vm2737_vm2, %v2678_v17, %v647_v63  ;;  %v632_v22 = vadd.f32 %v2693_v33, %v631_v2  ;;  %vm638_vm6 = vcmp.eq.f32.partialorder %v637_v28, 8.507059e+37  ;;  %vm2786_vm9 = vmor %vm663_vm12, %vm664_vm5  ;;  %v2819_v46 = vld [vmem:[#allocation2 + $0x49] sm:$0xff]  ;;  %v2852_v60 = vld [vmem:[#allocation2 + $0x79] sm:$0xff] }
  0x38   : > { %755 = vst.msk [vmem:[#allocation2 + $0x21] sm:$0xff] %vm483_vm0, %v689_v3  ;;  %2378 = vrcp.f32 %v2725_v56  ;;  %v656_v55 = vsel %vm2672_vm8, %v2667_v11, %v651_v52  ;;  %v606_v5 = vsel %vm2750_vm3, %v2373_v29, %v602_v9  ;;  %v661_v10 = vmul.f32 %v2377_v41, %v660_v4  ;;  %v1298_v29 = vld [vmem:[#allocation3 + $0x80] sm:$0xff]  ;;  %v1013_v0 = vld [vmem:[#allocation2 + $0x2] sm:$0xff] }
  0x39   : > { %757 = vst.msk [vmem:[#allocation2 + $0x41] sm:$0xff] %vm483_vm0, %v691_v6  ;;  %v693_v13 = vmul.f32 %v656_v55, %v2573_v23  ;;  %v611_v14 = vsel %vm2681_vm11, %v2685_v27, %v606_v5  ;;  %v636_v15 = vsel %vm2760_vm4, %v2693_v33, %v632_v22  ;;  %vm668_vm8 = vcmp.eq.f32.partialorder %v667_v32, 8.507059e+37  ;;  %v778_v27 = vld [vmem:[#allocation3] sm:$0xff]  ;;  %1365 = vmatpush.msrb.mxu0 %v1298_v29  ;;  %v1568_v3 = vld [vmem:[#allocation3 + $0xd0] sm:$0xff]  ;;  %v763_v2 = vld [vmem:[#allocation2 + $0x8] sm:$0xff] }
  0x3a   : > { %v690_v17 = vmul.f32 %v611_v14, %v2578_v24  ;;  %v641_v23 = vsel %vm638_vm6, %v640_v38, %v636_v15  ;;  %v662_v18 = vadd.f32 %v2377_v41, %v661_v10  ;;  %971 = vmatpush.msrb.mxu1 %v778_v27  ;;  %v579_v33 = vand.u32 2147483648, %v2725_v56  ;;  %v2825_v48 = vld [vmem:[#allocation2 + $0x69] sm:$0xff]  ;;  %v1702_v59 = vld [vmem:[#allocation3 + $0xf0] sm:$0xff]  ;;  %v1567_v10 = vld [vmem:[#allocation3 + $0xc8] sm:$0xff] }
  0x3b   : > { %759 = vst.msk [vmem:[#allocation2 + $0x61] sm:$0xff] %vm483_vm0, %v693_v13  ;;  %v692_v19 = vmul.f32 %v641_v23, %v2581_v25  ;;  %vm573_vm10 = vweird.f32 %v2725_v56  ;;  %1898 = vmatpush.msra.mxu0 %v1837_v45  ;;  %v1434_v63 = vld [vmem:[#allocation3 + $0xb0] sm:$0xff]  ;;  %v1433_v13 = vld [vmem:[#allocation3 + $0xa8] sm:$0xff]  ;;  %v1834_v45 = vld [vmem:[#allocation3 + $0x100] sm:$0xff] }
  0x3c   : > { %756 = vst.msk [vmem:[#allocation2 + $0x31] sm:$0xff] %vm483_vm0, %v690_v17  ;;  %v666_v28 = vsel %vm2786_vm9, %v2377_v41, %v662_v18  ;;  %v580_v40 = vor.u32 1.1754944e-38, %v579_v33  ;;  %v1835_v14 = vld [vmem:[#allocation3 + $0x108] sm:$0xff] }
  0x3d   : > { %758 = vst.msk [vmem:[#allocation2 + $0x51] sm:$0xff] %vm483_vm0, %v692_v19  ;;  %v671_v30 = vsel %vm668_vm8, %v670_v16, %v666_v28  ;;  %1899 = vmatpush.msra.mxu0 %v1836_v51  ;;  %v513_v16 = vld [vmem:[%s2532_s20 + $0x38] sm:$0xff] }
  0x3e   : > { %v2379_v24 = vpop.eup %2378  ;;  %v694_v31 = vmul.f32 %v671_v30, %v2584_v26  ;;  %v577_v26 = vand.u32 2147483647, %v2725_v56  ;;  %v524_v17 = vmul.f32 %v2541_v7, %v513_v16 }
  0x3f   : > { %v2799_v61 = vld [vmem:[#allocation2 + $0x21] sm:$0xff]  ;;  %v569_v25 = vmul.f32 %v2379_v24, %v2725_v56  ;;  %vm574_vm11 = vweird.f32 %v2379_v24  ;;  %1900 = vmatpush.msra.mxu0 %v1835_v14 }
  0x40   : > { %2154 = vmatmul.msk.f32.vlgmr.msra.gmra.mxu1 %vm483_vm0, %v2799_v61  ;;  %v2805_v32 = vld [vmem:[#allocation2 + $0x41] sm:$0xff]  ;;  %760 = vst.msk [vmem:[#allocation2 + $0x71] sm:$0xff] %vm483_vm0, %v694_v31  ;;  %vm575_vm12 = vmor %vm573_vm10, %vm574_vm11  ;;  %vm578_vm13 = vcmp.eq.f32.partialorder %v577_v26, 8.507059e+37  ;;  %v535_v23 = vadd.f32 %v2543_v8, %v524_v17 }
  0x41   : > { %2158 = vmatmul.msk.f32.vlgmr.msra.gmra.mxu2 %vm483_vm0, %v2805_v32  ;;  %v570_v34 = vsub.f32 1.0, %v569_v25  ;;  %1496 = vmatpush.msra.mxu1 %v1435_v43  ;;  %v2870_v4 = vld [vmem:[#allocation2 + $0x20] sm:$0xff]  ;;  %v2881_v22 = vld [vmem:[#allocation2 + $0x28] sm:$0xff]  ;;  %v1566_v25 = vld [vmem:[#allocation3 + $0xc0] sm:$0xff] }
  0x42   : > { %1630 = vmatpush.msra.mxu2 %v1569_v36  ;;  %v2813_v37 = vld [vmem:[#allocation2 + $0x61] sm:$0xff]  ;;  %v2147_v19 = vmul.f32 -1.442695, %v535_v23  ;;  %1901 = vmatpush.msra.mxu0 %v1834_v45 }
  0x43   : > { %v571_v38 = vmul.f32 %v2379_v24, %v570_v34  ;;  %2162 = vmatmul.msk.f32.vlgmr.msra.gmra.mxu3 %vm483_vm0, %v2813_v37  ;;  %v2831_v50 = vld [vmem:[#allocation2 + $0x31] sm:$0xff]  ;;  %1497 = vmatpush.msra.mxu1 %v1434_v63  ;;  %v2876_v52 = vld [vmem:[#allocation2 + $0x1a] sm:$0xff]  ;;  %v2887_v55 = vld [vmem:[#allocation2 + $0x22] sm:$0xff] }
  0x44   : > { %1764 = vmatpush.msra.mxu3 %v1703_v42  ;;  %v2833_v53 = vld [vmem:[#allocation2 + $0x51] sm:$0xff]  ;;  %1631 = vmatpush.msra.mxu2 %v1568_v3  ;;  %2380 = vpow2.f32 %v2147_v19  ;;  %v2920_v20 = vld [vmem:[#allocation2 + $0x40] sm:$0xff]  ;;  %v2932_v28 = vld [vmem:[#allocation2 + $0x48] sm:$0xff] }
  0x45   : > { %v572_v44 = vadd.f32 %v2379_v24, %v571_v38  ;;  %v2893_v5 = vld [vmem:[#allocation2 + $0x30] sm:$0xff]  ;;  %1498 = vmatpush.msra.mxu1 %v1433_v13  ;;  %v2905_v11 = vld [vmem:[#allocation2 + $0x38] sm:$0xff]  ;;  %v2938_v29 = vld [vmem:[#allocation2 + $0x42] sm:$0xff] }
  0x46   : > { %1765 = vmatpush.msra.mxu3 %v1702_v59  ;;  %1632 = vmatpush.msra.mxu2 %v1567_v10  ;;  %v2899_v15 = vld [vmem:[#allocation2 + $0x2a] sm:$0xff]  ;;  %v2914_v18 = vld [vmem:[#allocation2 + $0x32] sm:$0xff]  ;;  %v2926_v8 = vld [vmem:[#allocation2 + $0x3a] sm:$0xff] }
  0x47   : > { %v576_v47 = vsel %vm575_vm12, %v2379_v24, %v572_v44  ;;  %v2839_v54 = vld [vmem:[#allocation2 + $0x71] sm:$0xff]  ;;  %v2977_v3 = vld [vmem:[#allocation2 + $0x5a] sm:$0xff]  ;;  %v2983_v59 = vld [vmem:[#allocation2 + $0x68] sm:$0xff] }
  0x48   : > { %2155 = vmatmul.msk.f32.gmra.mxu1 %vm483_vm0, %v2817_v39  ;;  %v581_v41 = vsel %vm578_vm13, %v580_v40, %v576_v47  ;;  %1766 = vmatpush.msra.mxu3 %v1701_v12  ;;  %v2944_v31 = vld [vmem:[#allocation2 + $0x50] sm:$0xff]  ;;  %v2991_v51 = vld [vmem:[#allocation2 + $0x62] sm:$0xff]  ;;  %v3013_v13 = vld [vmem:[#allocation2 + $0x78] sm:$0xff] }
  0x49   : > { %2159 = vmatmul.msk.f32.gmra.mxu2 %vm483_vm0, %v2819_v46  ;;  %v688_v49 = vmul.f32 %v581_v41, %v2609_v35  ;;  %v2844_v35 = vld [vmem:[#allocation2 + $0x39] sm:$0xff]  ;;  %v1700_v34 = vld [vmem:[#allocation3 + $0xe0] sm:$0xff] }
  0x4a   : > { %v2381_v7 = vpop.eup %2380  ;;  %1633 = vmatpush.msra.mxu2 %v1566_v25  ;;  %1767 = vmatpush.msra.mxu3 %v1700_v34  ;;  %v2950_v38 = vld [vmem:[#allocation2 + $0x4a] sm:$0xff]  ;;  %v3021_v17 = vld [vmem:[#allocation2 + $0x72] sm:$0xff] }
  0x4b   : > { %754 = vst.msk [vmem:[#allocation2 + $0x11] sm:$0xff] %vm483_vm0, %v688_v49  ;;  %2163 = vmatmul.msk.f32.gmra.mxu3 %vm483_vm0, %v2825_v48  ;;  %v567_v27 = vadd.f32 1.0, %v2381_v7  ;;  %v1432_v44 = vld [vmem:[#allocation3 + $0xa0] sm:$0xff]  ;;  %v2958_v49 = vld [vmem:[#allocation2 + $0x58] sm:$0xff] }
  0x4c   : > { %1499 = vmatpush.msra.mxu1 %v1432_v44  ;;  %v3005_v10 = vld [vmem:[#allocation2 + $0x6a] sm:$0xff] }
  0x4d   : > { %2382 = vrcp.f32 %v567_v27  ;;  %v684_v36 = vand.u32 2147483648, %v567_v27  ;;  %vm678_vm14 = vweird.f32 %v567_v27  ;;  %v682_v42 = vand.u32 2147483647, %v567_v27 }
  0x4f   : > { %v685_v47 = vor.u32 1.1754944e-38, %v684_v36  ;;  %vm683_vm7 = vcmp.eq.f32.partialorder %v682_v42, 8.507059e+37 }
  0x50   : > { %2156 = vmatmul.msk.f32.gmra.mxu1 %vm483_vm0, %v2831_v50 }
  0x51   : > { %2160 = vmatmul.msk.f32.gmra.mxu2 %vm483_vm0, %v2833_v53 }
  0x52   : > { %v784_v56 = vld [vmem:[#allocation2 + $0x11] sm:$0xff] }
  0x53   : > { %2152 = vmatmul.msk.f32.gmra.mxu0 %vm483_vm0, %v784_v56  ;;  %2164 = vmatmul.msk.f32.gmra.mxu3 %vm483_vm0, %v2839_v54  ;;  %v1147_v1 = vld [vmem:[#allocation2 + $0x10] sm:$0xff]  ;;  %v1148_v9 = vld [vmem:[#allocation2 + $0x18] sm:$0xff]  ;;  %v2383_v24 = vpop.eup %2382 }
  0x54   : > { %v1014_v6 = vld [vmem:[#allocation2 + $0xa] sm:$0xff]  ;;  %v2865_v21 = vld [vmem:[#allocation2 + $0x12] sm:$0xff]  ;;  %v674_v30 = vmul.f32 %v2383_v24, %v567_v27  ;;  %vm679_vm15 = vweird.f32 %v2383_v24 }
  0x55   : > { %vm680_vm1 = vmor %vm678_vm14, %vm679_vm15 }
  0x56   : > { %v675_v33 = vsub.f32 1.0, %v674_v30 }
  0x58   : > { %2157 = vmatmul.msk.f32.gmra.mxu1 %vm483_vm0, %v2844_v35  ;;  %v676_v26 = vmul.f32 %v2383_v24, %v675_v33 }
  0x59   : > { %2161 = vmatmul.msk.f32.gmra.mxu2 %vm483_vm0, %v2846_v57 }
  0x5a   : > { %v677_v40 = vadd.f32 %v2383_v24, %v676_v26  ;;  %v3043_v26 = vld [vmem:[#allocation2 + $0x89] sm:$0xff] }
  0x5b   : > { %2153 = vmatmul.msk.f32.gmra.mxu0 %vm483_vm0, %v785_v58  ;;  %2165 = vmatmul.msk.f32.gmra.mxu3 %vm483_vm0, %v2852_v60 }
  0x5c   : > { %v681_v41 = vsel %vm680_vm1, %v2383_v24, %v677_v40 }
  0x60   : > { %2166 = vmatmul.msk.f32.vlgmr.msrb.gmra.mxu1 %vm483_vm0, %v762_v62  ;;  %v2965_v62 = vld [vmem:[#allocation2 + $0x52] sm:$0xff] }
  0x61   : > { %2182 = vmatmul.msk.f32.vlgmr.msrb.gmra.mxu2 %vm483_vm0, %v1013_v0 }
  0x63   : > { %2214 = vmatmul.msk.f32.vlgmr.msrb.gmra.mxu0 %vm483_vm0, %v784_v56  ;;  %2198 = vmatmul.msk.f32.vlgmr.msrb.gmra.mxu3 %vm483_vm0, %v1147_v1  ;;  %v686_v56 = vsel %vm683_vm7, %v685_v47, %v681_v41 }
  0x68   : > { %2167 = vmatmul.msk.f32.gmra.mxu1 %vm483_vm0, %v763_v2  ;;  %v2997_v2 = vld [vmem:[#allocation2 + $0x70] sm:$0xff] }
  0x69   : > { %2183 = vmatmul.msk.f32.gmra.mxu2 %vm483_vm0, %v1014_v6 }
  0x6b   : > { %2215 = vmatmul.msk.f32.gmra.mxu0 %vm483_vm0, %v785_v58  ;;  %2199 = vmatmul.msk.f32.gmra.mxu3 %vm483_vm0, %v1148_v9  ;;  %v695_v58 = vmul.f32 %v686_v56, %v535_v23 }
  0x6d   : > { %761 = vst.msk [vmem:[#allocation2 + $0x81] sm:$0xff] %vm483_vm0, %v695_v58 }
  0x70   : > { %2168 = vmatmul.msk.f32.gmra.mxu1 %vm483_vm0, %v1147_v1  ;;  %v2971_v1 = vld [vmem:[#allocation2 + $0x60] sm:$0xff] }
  0x71   : > { %2184 = vmatmul.msk.f32.gmra.mxu2 %vm483_vm0, %v2865_v21 }
  0x73   : > { %2216 = vmatmul.msk.f32.gmra.mxu0 %vm483_vm0, %v2799_v61  ;;  %2200 = vmatmul.msk.f32.gmra.mxu3 %vm483_vm0, %v2870_v4 }
  0x74   : > { %v3025_v7 = vld [vmem:[#allocation2 + $0x81] sm:$0xff] }
  0x75   : > { %v3029_v27 = vld [vmem:[#allocation2 + $0x80] sm:$0xff]  ;;  %v3047_v36 = vld [vmem:[#allocation2 + $0x88] sm:$0xff] }
  0x76   : > { %v3037_v25 = vld [vmem:[#allocation2 + $0x7a] sm:$0xff] }
  0x78   : > { %2169 = vmatmul.msk.f32.gmra.mxu1 %vm483_vm0, %v1148_v9 }
  0x79   : > { %2185 = vmatmul.msk.f32.gmra.mxu2 %vm483_vm0, %v2876_v52 }
  0x7b   : > { %2217 = vmatmul.msk.f32.gmra.mxu0 %vm483_vm0, %v2817_v39  ;;  %2201 = vmatmul.msk.f32.gmra.mxu3 %vm483_vm0, %v2881_v22 }
  0x80   : > { %2170 = vmatmul.msk.f32.gmra.mxu1 %vm483_vm0, %v2870_v4 }
  0x81   : > { %2186 = vmatmul.msk.f32.gmra.mxu2 %vm483_vm0, %v2887_v55 }
  0x83   : > { %2218 = vmatmul.msk.f32.gmra.mxu0 %vm483_vm0, %v2831_v50  ;;  %2202 = vmatmul.msk.f32.gmra.mxu3 %vm483_vm0, %v2893_v5 }
  0x88   : > { %2171 = vmatmul.msk.f32.gmra.mxu1 %vm483_vm0, %v2881_v22 }
  0x89   : > { %2187 = vmatmul.msk.f32.gmra.mxu2 %vm483_vm0, %v2899_v15 }
  0x8b   : > { %2219 = vmatmul.msk.f32.gmra.mxu0 %vm483_vm0, %v2844_v35  ;;  %2203 = vmatmul.msk.f32.gmra.mxu3 %vm483_vm0, %v2905_v11 }
  0x90   : > { %2172 = vmatmul.msk.f32.gmra.mxu1 %vm483_vm0, %v2893_v5 }
  0x91   : > { %2188 = vmatmul.msk.f32.gmra.mxu2 %vm483_vm0, %v2914_v18 }
  0x93   : > { %2220 = vmatmul.msk.f32.gmra.mxu0 %vm483_vm0, %v2805_v32  ;;  %2204 = vmatmul.msk.f32.gmra.mxu3 %vm483_vm0, %v2920_v20 }
  0x98   : > { %2173 = vmatmul.msk.f32.gmra.mxu1 %vm483_vm0, %v2905_v11 }
  0x99   : > { %2189 = vmatmul.msk.f32.gmra.mxu2 %vm483_vm0, %v2926_v8 }
  0x9b   : > { %2221 = vmatmul.msk.f32.gmra.mxu0 %vm483_vm0, %v2819_v46  ;;  %2205 = vmatmul.msk.f32.gmra.mxu3 %vm483_vm0, %v2932_v28 }
  0xa0   : > { %2174 = vmatmul.msk.f32.gmra.mxu1 %vm483_vm0, %v2920_v20 }
  0xa1   : > { %2190 = vmatmul.msk.f32.gmra.mxu2 %vm483_vm0, %v2938_v29 }
  0xa3   : > { %2222 = vmatmul.msk.f32.gmra.mxu0 %vm483_vm0, %v2833_v53  ;;  %2206 = vmatmul.msk.f32.gmra.mxu3 %vm483_vm0, %v2944_v31 }
  0xa8   : > { %2175 = vmatmul.msk.f32.gmra.mxu1 %vm483_vm0, %v2932_v28 }
  0xa9   : > { %2191 = vmatmul.msk.f32.gmra.mxu2 %vm483_vm0, %v2950_v38 }
  0xaa   : > { %v2952_v43 = vpop.f32.mrf.mxu0 }
  0xab   : > { %2223 = vmatmul.msk.f32.gmra.mxu0 %vm483_vm0, %v2846_v57  ;;  %2207 = vmatmul.msk.f32.gmra.mxu3 %vm483_vm0, %v2958_v49 }
  0xb0   : > { %2176 = vmatmul.msk.f32.gmra.mxu1 %vm483_vm0, %v2944_v31 }
  0xb1   : > { %2192 = vmatmul.msk.f32.gmra.mxu2 %vm483_vm0, %v2965_v62 }
  0xb2   : > { %v871_v0 = vpop.f32.mrf.mxu0 }
  0xb3   : > { %2224 = vmatmul.msk.f32.gmra.mxu0 %vm483_vm0, %v2813_v37  ;;  %2208 = vmatmul.msk.f32.gmra.mxu3 %vm483_vm0, %v2971_v1 }
  0xb8   : > { %2177 = vmatmul.msk.f32.gmra.mxu1 %vm483_vm0, %v2958_v49 }
  0xb9   : > { %2193 = vmatmul.msk.f32.gmra.mxu2 %vm483_vm0, %v2977_v3 }
  0xbb   : > { %2225 = vmatmul.msk.f32.gmra.mxu0 %vm483_vm0, %v2825_v48  ;;  %2209 = vmatmul.msk.f32.gmra.mxu3 %vm483_vm0, %v2983_v59 }
  0xbd   : > { %v2989_v63 = vpop.f32.mrf.mxu1 }
  0xc0   : > { %2178 = vmatmul.msk.f32.gmra.mxu1 %vm483_vm0, %v2971_v1 }
  0xc1   : > { %2194 = vmatmul.msk.f32.gmra.mxu2 %vm483_vm0, %v2991_v51 }
  0xc3   : > { %2226 = vmatmul.msk.f32.gmra.mxu0 %vm483_vm0, %v2839_v54  ;;  %2210 = vmatmul.msk.f32.gmra.mxu3 %vm483_vm0, %v2997_v2 }
  0xc4   : > { %v3003_v6 = vpop.f32.mrf.mxu2 }
  0xc5   : > { %v881_v9 = vpop.f32.mrf.mxu1 }
  0xc6   : > { %v3007_v12 = vpop.f32.mrf.mxu3 }
  0xc8   : > { %2179 = vmatmul.msk.f32.gmra.mxu1 %vm483_vm0, %v2983_v59 }
  0xc9   : > { %2195 = vmatmul.msk.f32.gmra.mxu2 %vm483_vm0, %v3005_v10 }
  0xcb   : > { %2227 = vmatmul.msk.f32.gmra.mxu0 %vm483_vm0, %v2852_v60  ;;  %2211 = vmatmul.msk.f32.gmra.mxu3 %vm483_vm0, %v3013_v13 }
  0xcc   : > { %v891_v14 = vpop.f32.mrf.mxu2 }
  0xcd   : > { %v3019_v16 = vpop.f32.mrf.mxu1 }
  0xce   : > { %v901_v23 = vpop.f32.mrf.mxu3 }
  0xd0   : > { %2180 = vmatmul.msk.f32.gmra.mxu1 %vm483_vm0, %v2997_v2  ;;  %v873_v19 = vpop.f32.mrf.mxu0 }
  0xd1   : > { %2196 = vmatmul.msk.f32.gmra.mxu2 %vm483_vm0, %v3021_v17 }
  0xd3   : > { %2228 = vmatmul.msk.f32.gmra.mxu0 %vm483_vm0, %v3025_v7  ;;  %2212 = vmatmul.msk.f32.gmra.mxu3 %vm483_vm0, %v3029_v27 }
  0xd4   : > { %v3035_v24 = vpop.f32.mrf.mxu2 }
  0xd5   : > { %v886_v30 = vpop.f32.mrf.mxu1 }
  0xd6   : > { %v3039_v33 = vpop.f32.mrf.mxu3 }
  0xd8   : > { %2181 = vmatmul.msk.f32.gmra.mxu1 %vm483_vm0, %v3013_v13  ;;  %v876_v34 = vpop.f32.mrf.mxu0 }
  0xd9   : > { %2197 = vmatmul.msk.f32.gmra.mxu2 %vm483_vm0, %v3037_v25 }
  0xdb   : > { %2229 = vmatmul.msk.f32.gmra.mxu0 %vm483_vm0, %v3043_v26  ;;  %2213 = vmatmul.msk.f32.gmra.mxu3 %vm483_vm0, %v3047_v36 }
  0xdc   : > { %v896_v40 = vpop.f32.mrf.mxu2 }
  0xdd   : > { %v973_v42 = vpop.f32.mrf.mxu1 }
  0xde   : > { %v906_v44 = vpop.f32.mrf.mxu3  ;;  %v974_v47 = vadd.f32 %v973_v42, %v2952_v43 }
  0xe0   : > { %2230 = vmatmul.msk.f32.vlgmr.msra.gmra.mxu1 %vm483_vm0, %v2865_v21  ;;  %v1367_v45 = vpop.f32.mrf.mxu0 }
  0xe1   : > { %2246 = vmatmul.msk.f32.vlgmr.msra.gmra.mxu2 %vm483_vm0, %v2870_v4 }
  0xe3   : > { %2278 = vmatmul.msk.f32.vlgmr.msra.gmra.mxu0 %vm483_vm0, %v2887_v55  ;;  %2262 = vmatmul.msk.f32.vlgmr.msra.gmra.mxu3 %vm483_vm0, %v2799_v61 }
  0xe4   : > { %v1099_v41 = vpop.f32.mrf.mxu2 }
  0xe5   : > { %v1139_v56 = vadd.f32 %v1099_v41, %v974_v47  ;;  %v976_v58 = vpop.f32.mrf.mxu1 }
  0xe6   : > { %v1233_v0 = vpop.f32.mrf.mxu3 }
  0xe7   : > { %v1273_v9 = vadd.f32 %v1233_v0, %v1139_v56 }
  0xe8   : > { %2231 = vmatmul.msk.f32.gmra.mxu1 %vm483_vm0, %v2876_v52  ;;  %v1370_v21 = vpop.f32.mrf.mxu0 }
  0xe9   : > { %2247 = vmatmul.msk.f32.gmra.mxu2 %vm483_vm0, %v2881_v22  ;;  %v3066_v4 = vadd.f32 %v1367_v45, %v1273_v9 }
  0xeb   : > { %2279 = vmatmul.msk.f32.gmra.mxu0 %vm483_vm0, %v2899_v15  ;;  %2263 = vmatmul.msk.f32.gmra.mxu3 %vm483_vm0, %v2817_v39 }
  0xec   : > { %v1102_v61 = vpop.f32.mrf.mxu2 }
  0xed   : > { %v978_v43 = vpop.f32.mrf.mxu1 }
  0xee   : > { %v1236_v14 = vpop.f32.mrf.mxu3  ;;  %v979_v52 = vadd.f32 %v978_v43, %v873_v19 }
  0xf0   : > { %2232 = vmatmul.msk.f32.gmra.mxu1 %vm483_vm0, %v2887_v55  ;;  %v1372_v23 = vpop.f32.mrf.mxu0 }
  0xf1   : > { %2248 = vmatmul.msk.f32.gmra.mxu2 %vm483_vm0, %v2893_v5 }
  0xf3   : > { %2280 = vmatmul.msk.f32.gmra.mxu0 %vm483_vm0, %v2914_v18  ;;  %2264 = vmatmul.msk.f32.gmra.mxu3 %vm483_vm0, %v2831_v50 }
  0xf4   : > { %v1104_v22 = vpop.f32.mrf.mxu2 }
  0xf5   : > { %v1140_v30 = vadd.f32 %v1104_v22, %v979_v52  ;;  %v981_v39 = vpop.f32.mrf.mxu1 }
  0xf6   : > { %v1238_v34 = vpop.f32.mrf.mxu3 }
  0xf7   : > { %v1274_v40 = vadd.f32 %v1238_v34, %v1140_v30 }
  0xf8   : > { %2233 = vmatmul.msk.f32.gmra.mxu1 %vm483_vm0, %v2899_v15  ;;  %v1375_v55 = vpop.f32.mrf.mxu0 }
  0xf9   : > { %2249 = vmatmul.msk.f32.gmra.mxu2 %vm483_vm0, %v2905_v11  ;;  %v3084_v5 = vadd.f32 %v1372_v23, %v1274_v40 }
  0xfb   : > { %2281 = vmatmul.msk.f32.gmra.mxu0 %vm483_vm0, %v2926_v8  ;;  %2265 = vmatmul.msk.f32.gmra.mxu3 %vm483_vm0, %v2844_v35 }
  0xfc   : > { %v1107_v50 = vpop.f32.mrf.mxu2 }
  0xfd   : > { %v983_v19 = vpop.f32.mrf.mxu1 }
  0xfe   : > { %v1241_v42 = vpop.f32.mrf.mxu3  ;;  %v984_v15 = vadd.f32 %v983_v19, %v2989_v63 }
 0x100   : > { %2234 = vmatmul.msk.f32.gmra.mxu1 %vm483_vm0, %v2914_v18  ;;  %v1377_v44 = vpop.f32.mrf.mxu0 }
 0x101   : > { %2250 = vmatmul.msk.f32.gmra.mxu2 %vm483_vm0, %v2920_v20 }
 0x103   : > { %2282 = vmatmul.msk.f32.gmra.mxu0 %vm483_vm0, %v2938_v29  ;;  %2266 = vmatmul.msk.f32.gmra.mxu3 %vm483_vm0, %v2805_v32 }
 0x104   : > { %v1109_v11 = vpop.f32.mrf.mxu2 }
 0x105   : > { %v1141_v35 = vadd.f32 %v1109_v11, %v984_v15  ;;  %v986_v45 = vpop.f32.mrf.mxu1  ;;  %v1830_v11 = vld [vmem:[#allocation2 + $0x8a] sm:$0xff] }
 0x106   : > { %v1243_v47 = vpop.f32.mrf.mxu3 }
 0x107   : > { %v1275_v41 = vadd.f32 %v1243_v47, %v1141_v35  ;;  %v1563_v35 = vld [vmem:[#allocation2 + $0x90] sm:$0xff] }
 0x108   : > { %2235 = vmatmul.msk.f32.gmra.mxu1 %vm483_vm0, %v2926_v8  ;;  %v1380_v18 = vpop.f32.mrf.mxu0 }
 0x109   : > { %2251 = vmatmul.msk.f32.gmra.mxu2 %vm483_vm0, %v2932_v28  ;;  %v3103_v20 = vadd.f32 %v1377_v44, %v1275_v41  ;;  %v1697_v41 = vld [vmem:[#allocation2 + $0x91] sm:$0xff] }
 0x10b   : > { %2283 = vmatmul.msk.f32.gmra.mxu0 %vm483_vm0, %v2950_v38  ;;  %2267 = vmatmul.msk.f32.gmra.mxu3 %vm483_vm0, %v2819_v46 }
 0x10c   : > { %v1112_v32 = vpop.f32.mrf.mxu2 }
 0x10d   : > { %v988_v63 = vpop.f32.mrf.mxu1 }
 0x10e   : > { %v1246_v56 = vpop.f32.mrf.mxu3  ;;  %v989_v8 = vadd.f32 %v988_v63, %v3019_v16  ;;  %v1564_v63 = vld [vmem:[#allocation2 + $0x98] sm:$0xff] }
 0x110   : > { %2236 = vmatmul.msk.f32.gmra.mxu1 %vm483_vm0, %v2938_v29  ;;  %v1382_v58 = vpop.f32.mrf.mxu0 }
 0x111   : > { %2252 = vmatmul.msk.f32.gmra.mxu2 %vm483_vm0, %v2944_v31 }
 0x113   : > { %2284 = vmatmul.msk.f32.gmra.mxu0 %vm483_vm0, %v2965_v62  ;;  %2268 = vmatmul.msk.f32.gmra.mxu3 %vm483_vm0, %v2833_v53 }
 0x114   : > { %v1114_v28 = vpop.f32.mrf.mxu2 }
 0x115   : > { %v1142_v46 = vadd.f32 %v1114_v28, %v989_v8  ;;  %v991_v0 = vpop.f32.mrf.mxu1  ;;  %v1832_v28 = vld [vmem:[#allocation2 + $0x9a] sm:$0xff] }
 0x116   : > { %v1248_v9 = vpop.f32.mrf.mxu3 }
 0x117   : > { %v1276_v21 = vadd.f32 %v1248_v9, %v1142_v46  ;;  %v1698_v46 = vld [vmem:[#allocation2 + $0x99] sm:$0xff] }
 0x118   : > { %2237 = vmatmul.msk.f32.gmra.mxu1 %vm483_vm0, %v2950_v38  ;;  %v1385_v29 = vpop.f32.mrf.mxu0 }
 0x119   : > { %2253 = vmatmul.msk.f32.gmra.mxu2 %vm483_vm0, %v2958_v49  ;;  %v3122_v31 = vadd.f32 %v1382_v58, %v1276_v21 }
 0x11b   : > { %2285 = vmatmul.msk.f32.gmra.mxu0 %vm483_vm0, %v2977_v3  ;;  %2269 = vmatmul.msk.f32.gmra.mxu3 %vm483_vm0, %v2846_v57 }
 0x11c   : > { %v1117_v53 = vpop.f32.mrf.mxu2 }
 0x11d   : > { %v993_v16 = vpop.f32.mrf.mxu1 }
 0x11e   : > { %v1251_v61 = vpop.f32.mrf.mxu3  ;;  %v994_v38 = vadd.f32 %v993_v16, %v3003_v6 }
 0x120   : > { %2238 = vmatmul.msk.f32.gmra.mxu1 %vm483_vm0, %v2965_v62  ;;  %v1387_v43 = vpop.f32.mrf.mxu0 }
 0x121   : > { %2254 = vmatmul.msk.f32.gmra.mxu2 %vm483_vm0, %v2971_v1 }
 0x123   : > { %2286 = vmatmul.msk.f32.gmra.mxu0 %vm483_vm0, %v2991_v51  ;;  %2270 = vmatmul.msk.f32.gmra.mxu3 %vm483_vm0, %v2813_v37 }
 0x124   : > { %v1119_v49 = vpop.f32.mrf.mxu2 }
 0x125   : > { %v1143_v57 = vadd.f32 %v1119_v49, %v994_v38  ;;  %v996_v14 = vpop.f32.mrf.mxu1 }
 0x126   : > { %v1253_v23 = vpop.f32.mrf.mxu3 }
 0x127   : > { %v1277_v52 = vadd.f32 %v1253_v23, %v1143_v57  ;;  %v3198_v57 = vld [vmem:[%s3253_s6] ss:$0 sm:$0xff] }
 0x128   : > { %2239 = vmatmul.msk.f32.gmra.mxu1 %vm483_vm0, %v2977_v3  ;;  %v1390_v62 = vpop.f32.mrf.mxu0 }
 0x129   : > { %2255 = vmatmul.msk.f32.gmra.mxu2 %vm483_vm0, %v2983_v59  ;;  %v3141_v1 = vadd.f32 %v1387_v43, %v1277_v52 }
 0x12b   : > { %2287 = vmatmul.msk.f32.gmra.mxu0 %vm483_vm0, %v3005_v10  ;;  %2271 = vmatmul.msk.f32.gmra.mxu3 %vm483_vm0, %v2825_v48 }
 0x12c   : > { %v1122_v37 = vpop.f32.mrf.mxu2 }
 0x12d   : > { %v998_v6 = vpop.f32.mrf.mxu1 }
 0x12e   : > { %v1256_v22 = vpop.f32.mrf.mxu3  ;;  %v999_v3 = vadd.f32 %v998_v6, %v3035_v24 }
 0x130   : > { %2240 = vmatmul.msk.f32.gmra.mxu1 %vm483_vm0, %v2991_v51  ;;  %v1392_v30 = vpop.f32.mrf.mxu0 }
 0x131   : > { %2256 = vmatmul.msk.f32.gmra.mxu2 %vm483_vm0, %v2997_v2 }
 0x133   : > { %2288 = vmatmul.msk.f32.gmra.mxu0 %vm483_vm0, %v3021_v17  ;;  %2272 = vmatmul.msk.f32.gmra.mxu3 %vm483_vm0, %v2839_v54 }
 0x134   : > { %v1124_v59 = vpop.f32.mrf.mxu2 }
 0x135   : > { %v1144_v48 = vadd.f32 %v1124_v59, %v999_v3  ;;  %v1001_v39 = vpop.f32.mrf.mxu1 }
 0x136   : > { %v1258_v34 = vpop.f32.mrf.mxu3 }
 0x137   : > { %v1278_v40 = vadd.f32 %v1258_v34, %v1144_v48 }
 0x138   : > { %2241 = vmatmul.msk.f32.gmra.mxu1 %vm483_vm0, %v3005_v10  ;;  %v1395_v51 = vpop.f32.mrf.mxu0  ;;  %v1829_v10 = vld [vmem:[#allocation2 + $0x82] sm:$0xff] }
 0x139   : > { %2257 = vmatmul.msk.f32.gmra.mxu2 %vm483_vm0, %v3013_v13  ;;  %v3160_v2 = vadd.f32 %v1392_v30, %v1278_v40 }
 0x13b   : > { %2289 = vmatmul.msk.f32.gmra.mxu0 %vm483_vm0, %v3037_v25  ;;  %2273 = vmatmul.msk.f32.gmra.mxu3 %vm483_vm0, %v2852_v60 }
 0x13c   : > { %v1127_v54 = vpop.f32.mrf.mxu2 }
 0x13d   : > { %v1003_v24 = vpop.f32.mrf.mxu1 }
 0x13e   : > { %v1261_v55 = vpop.f32.mrf.mxu3  ;;  %v1004_v13 = vadd.f32 %v1003_v24, %v3007_v12 }
 0x140   : > { %2242 = vmatmul.msk.f32.gmra.mxu1 %vm483_vm0, %v3021_v17  ;;  %v1397_v50 = vpop.f32.mrf.mxu0 }
 0x141   : > { %2258 = vmatmul.msk.f32.gmra.mxu2 %vm483_vm0, %v3029_v27 }
 0x143   : > { %2290 = vmatmul.msk.f32.gmra.mxu0 %vm483_vm0, %v1829_v10  ;;  %2274 = vmatmul.msk.f32.gmra.mxu3 %vm483_vm0, %v3025_v7 }
 0x144   : > { %v1129_v19 = vpop.f32.mrf.mxu2 }
 0x145   : > { %v1145_v60 = vadd.f32 %v1129_v19, %v1004_v13  ;;  %v1006_v42 = vpop.f32.mrf.mxu1 }
 0x146   : > { %v1263_v44 = vpop.f32.mrf.mxu3 }
 0x147   : > { %v1279_v15 = vadd.f32 %v1263_v44, %v1145_v60 }
 0x148   : > { %2243 = vmatmul.msk.f32.gmra.mxu1 %vm483_vm0, %v3037_v25  ;;  %v1400_v17 = vpop.f32.mrf.mxu0  ;;  %v1831_v25 = vld [vmem:[#allocation2 + $0x92] sm:$0xff] }
 0x149   : > { %2259 = vmatmul.msk.f32.gmra.mxu2 %vm483_vm0, %v3047_v36  ;;  %v3178_v27 = vadd.f32 %v1397_v50, %v1279_v15 }
 0x14b   : > { %2291 = vmatmul.msk.f32.gmra.mxu0 %vm483_vm0, %v1830_v11  ;;  %2275 = vmatmul.msk.f32.gmra.mxu3 %vm483_vm0, %v3043_v26 }
 0x14c   : > { %v1132_v12 = vpop.f32.mrf.mxu2 }
 0x14d   : > { %v1008_v7 = vpop.f32.mrf.mxu1 }
 0x14e   : > { %v1266_v45 = vpop.f32.mrf.mxu3  ;;  %v1009_v36 = vadd.f32 %v1008_v7, %v3039_v33 }
 0x150   : > { %2244 = vmatmul.msk.f32.gmra.mxu1 %vm483_vm0, %v1829_v10  ;;  %v1402_v47 = vpop.f32.mrf.mxu0 }
 0x151   : > { %2260 = vmatmul.msk.f32.gmra.mxu2 %vm483_vm0, %v1563_v35 }
 0x153   : > { %2292 = vmatmul.msk.f32.gmra.mxu0 %vm483_vm0, %v1831_v25  ;;  %2276 = vmatmul.msk.f32.gmra.mxu3 %vm483_vm0, %v1697_v41 }
 0x154   : > { %v1134_v18 = vpop.f32.mrf.mxu2 }
 0x155   : > { %v1146_v32 = vadd.f32 %v1134_v18, %v1009_v36  ;;  %v1011_v26 = vpop.f32.mrf.mxu1 }
 0x156   : > { %v1268_v56 = vpop.f32.mrf.mxu3 }
 0x157   : > { %v1280_v58 = vadd.f32 %v1268_v56, %v1146_v32 }
 0x158   : > { %v1405_v8 = vpop.f32.mrf.mxu0  ;;  %2245 = vmatmul.msk.f32.gmra.mxu1 %vm483_vm0, %v1830_v11 }
 0x159   : > { %2261 = vmatmul.msk.f32.gmra.mxu2 %vm483_vm0, %v1564_v63  ;;  %v3190_v0 = vadd.f32 %v1402_v47, %v1280_v58 }
 0x15b   : > { %2293 = vmatmul.msk.f32.gmra.mxu0 %vm483_vm0, %v1832_v28  ;;  %2277 = vmatmul.msk.f32.gmra.mxu3 %vm483_vm0, %v1698_v46  ;;  %vm1963_vm0 = vcmask 523264  }
 0x15c   : > { %v1137_v33 = vpop.f32.mrf.mxu2 }
 0x15d   : > { %v1501_v9 = vpop.f32.mrf.mxu1 }
 0x15e   : > { %v1271_v21 = vpop.f32.mrf.mxu3  ;;  %v1541_v53 = vadd.f32 %v1501_v9, %v3066_v4 }
 0x160   : > { %v1903_v29 = vpop.f32.mrf.mxu0 }
 0x164   : > { %v1635_v16 = vpop.f32.mrf.mxu2 }
 0x165   : > { %v1675_v61 = vadd.f32 %v1635_v16, %v1541_v53  ;;  %v1504_v43 = vpop.f32.mrf.mxu1 }
 0x166   : > { %v1769_v38 = vpop.f32.mrf.mxu3 }
 0x167   : > { %v1809_v49 = vadd.f32 %v1769_v38, %v1675_v61 }
 0x168   : > { %v1906_v14 = vpop.f32.mrf.mxu0 }
 0x169   : > { %v1943_v23 = vadd.f32 %v1903_v29, %v1809_v49 }
 0x16b   : > { %v1955_v4 = vadd.f32 %v3198_v57, %v1943_v23 }
 0x16c   : > { %v1638_v52 = vpop.f32.mrf.mxu2 }
 0x16d   : > { %v1506_v62 = vpop.f32.mrf.mxu1  ;;  %1964 = vst.msk [vmem:[%s3205_s27] sm:$0xff] %vm1963_vm0, %v1955_v4 }
 0x16e   : > { %v1772_v37 = vpop.f32.mrf.mxu3  ;;  %v1542_v22 = vadd.f32 %v1506_v62, %v3084_v5 }
 0x170   : > { %v1908_v6 = vpop.f32.mrf.mxu0 }
 0x174   : > { %v1640_v30 = vpop.f32.mrf.mxu2 }
 0x175   : > { %v1676_v3 = vadd.f32 %v1640_v30, %v1542_v22  ;;  %v1509_v59 = vpop.f32.mrf.mxu1 }
 0x176   : > { %v1774_v48 = vpop.f32.mrf.mxu3 }
 0x177   : > { %v1810_v39 = vadd.f32 %v1774_v48, %v1676_v3 }
 0x178   : > { %v1911_v34 = vpop.f32.mrf.mxu0 }
 0x179   : > { %v1944_v40 = vadd.f32 %v1908_v6, %v1810_v39 }
 0x17b   : > { %v1956_v51 = vadd.f32 %v3198_v57, %v1944_v40 }
 0x17c   : > { %v1643_v54 = vpop.f32.mrf.mxu2 }
 0x17d   : > { %v1511_v24 = vpop.f32.mrf.mxu1  ;;  %1965 = vst.msk [vmem:[%s3205_s27 + $0x8] sm:$0xff] %vm1963_vm0, %v1956_v51 }
 0x17e   : > { %v1777_v55 = vpop.f32.mrf.mxu3  ;;  %v1543_v10 = vadd.f32 %v1511_v24, %v3103_v20 }
 0x180   : > { %v1913_v50 = vpop.f32.mrf.mxu0 }
 0x184   : > { %v1645_v13 = vpop.f32.mrf.mxu2 }
 0x185   : > { %v1677_v5 = vadd.f32 %v1645_v13, %v1543_v10  ;;  %v1514_v19 = vpop.f32.mrf.mxu1 }
 0x186   : > { %v1779_v60 = vpop.f32.mrf.mxu3 }
 0x187   : > { %v1811_v42 = vadd.f32 %v1779_v60, %v1677_v5 }
 0x188   : > { %v1916_v44 = vpop.f32.mrf.mxu0 }
 0x189   : > { %v1945_v15 = vadd.f32 %v1913_v50, %v1811_v42 }
 0x18b   : > { %v1957_v17 = vadd.f32 %v3198_v57, %v1945_v15 }
 0x18c   : > { %v1648_v11 = vpop.f32.mrf.mxu2 }
 0x18d   : > { %v1516_v12 = vpop.f32.mrf.mxu1  ;;  %1966 = vst.msk [vmem:[%s3205_s27 + $0x10] sm:$0xff] %vm1963_vm0, %v1957_v17 }
 0x18e   : > { %v1782_v7 = vpop.f32.mrf.mxu3  ;;  %v1544_v45 = vadd.f32 %v1516_v12, %v3122_v31 }
 0x190   : > { %v1918_v35 = vpop.f32.mrf.mxu0 }
 0x194   : > { %v1650_v47 = vpop.f32.mrf.mxu2 }
 0x195   : > { %v1678_v20 = vadd.f32 %v1650_v47, %v1544_v45  ;;  %v1519_v25 = vpop.f32.mrf.mxu1 }
 0x196   : > { %v1784_v41 = vpop.f32.mrf.mxu3 }
 0x197   : > { %v1812_v36 = vadd.f32 %v1784_v41, %v1678_v20 }
 0x198   : > { %v1921_v18 = vpop.f32.mrf.mxu0 }
 0x199   : > { %v1946_v32 = vadd.f32 %v1918_v35, %v1812_v36 }
 0x19b   : > { %v1958_v26 = vadd.f32 %v3198_v57, %v1946_v32 }
 0x19c   : > { %v1653_v63 = vpop.f32.mrf.mxu2 }
 0x19d   : > { %v1521_v56 = vpop.f32.mrf.mxu1  ;;  %1967 = vst.msk [vmem:[%s3205_s27 + $0x18] sm:$0xff] %vm1963_vm0, %v1958_v26 }
 0x19e   : > { %v1787_v58 = vpop.f32.mrf.mxu3  ;;  %v1545_v28 = vadd.f32 %v1521_v56, %v3141_v1 }
 0x1a0   : > { %v1923_v8 = vpop.f32.mrf.mxu0 }
 0x1a4   : > { %v1655_v46 = vpop.f32.mrf.mxu2 }
 0x1a5   : > { %v1679_v31 = vadd.f32 %v1655_v46, %v1545_v28  ;;  %v1524_v33 = vpop.f32.mrf.mxu1 }
 0x1a6   : > { %v1789_v9 = vpop.f32.mrf.mxu3 }
 0x1a7   : > { %v1813_v21 = vadd.f32 %v1789_v9, %v1679_v31 }
 0x1a8   : > { %v1926_v29 = vpop.f32.mrf.mxu0 }
 0x1a9   : > { %v1947_v53 = vadd.f32 %v1923_v8, %v1813_v21 }
 0x1ab   : > { %v1959_v16 = vadd.f32 %v3198_v57, %v1947_v53 }
 0x1ac   : > { %v1658_v61 = vpop.f32.mrf.mxu2 }
 0x1ad   : > { %v1526_v43 = vpop.f32.mrf.mxu1  ;;  %1968 = vst.msk [vmem:[%s3205_s27 + $0x20] sm:$0xff] %vm1963_vm0, %v1959_v16 }
 0x1ae   : > { %v1792_v38 = vpop.f32.mrf.mxu3  ;;  %v1546_v14 = vadd.f32 %v1526_v43, %v3160_v2 }
 0x1b0   : > { %v1928_v49 = vpop.f32.mrf.mxu0 }
 0x1b4   : > { %v1660_v23 = vpop.f32.mrf.mxu2 }
 0x1b5   : > { %v1680_v1 = vadd.f32 %v1660_v23, %v1546_v14  ;;  %v1529_v4 = vpop.f32.mrf.mxu1 }
 0x1b6   : > { %v1794_v52 = vpop.f32.mrf.mxu3 }
 0x1b7   : > { %v1814_v62 = vadd.f32 %v1794_v52, %v1680_v1 }
 0x1b8   : > { %v1931_v37 = vpop.f32.mrf.mxu0 }
 0x1b9   : > { %v1948_v6 = vadd.f32 %v1928_v49, %v1814_v62 }
 0x1bb   : > { %v1960_v22 = vadd.f32 %v3198_v57, %v1948_v6 }
 0x1bc   : > { %v1663_v30 = vpop.f32.mrf.mxu2 }
 0x1bd   : > { %v1531_v3 = vpop.f32.mrf.mxu1  ;;  %1969 = vst.msk [vmem:[%s3205_s27 + $0x28] sm:$0xff] %vm1963_vm0, %v1960_v22 }
 0x1be   : > { %v1797_v59 = vpop.f32.mrf.mxu3  ;;  %v1547_v39 = vadd.f32 %v1531_v3, %v3178_v27 }
 0x1c0   : > { %v1933_v48 = vpop.f32.mrf.mxu0 }
 0x1c4   : > { %v1665_v34 = vpop.f32.mrf.mxu2 }
 0x1c5   : > { %v1681_v2 = vadd.f32 %v1665_v34, %v1547_v39  ;;  %v1534_v40 = vpop.f32.mrf.mxu1 }
 0x1c6   : > { %v1799_v51 = vpop.f32.mrf.mxu3 }
 0x1c7   : > { %v1815_v54 = vadd.f32 %v1799_v51, %v1681_v2 }
 0x1c8   : > { %v1936_v24 = vpop.f32.mrf.mxu0 }
 0x1c9   : > { %v1949_v55 = vadd.f32 %v1933_v48, %v1815_v54 }
 0x1cb   : > { %v1961_v50 = vadd.f32 %v3198_v57, %v1949_v55 }
 0x1cc   : > { %v1668_v10 = vpop.f32.mrf.mxu2 }
 0x1cd   : > { %v1536_v13 = vpop.f32.mrf.mxu1  ;;  %1970 = vst.msk [vmem:[%s3205_s27 + $0x30] sm:$0xff] %vm1963_vm0, %v1961_v50 }
 0x1ce   : > { %v1802_v5 = vpop.f32.mrf.mxu3  ;;  %v1548_v60 = vadd.f32 %v1536_v13, %v3190_v0 }
 0x1d0   : > { %v1938_v19 = vpop.f32.mrf.mxu0 }
 0x1d4   : > { %v1670_v42 = vpop.f32.mrf.mxu2 }
 0x1d5   : > { %v1682_v27 = vadd.f32 %v1670_v42, %v1548_v60  ;;  %v1539_v44 = vpop.f32.mrf.mxu1 }
 0x1d6   : > { %v1804_v15 = vpop.f32.mrf.mxu3 }
 0x1d7   : > { %v1816_v17 = vadd.f32 %v1804_v15, %v1682_v27 }
 0x1d8   : > { %v1941_v11 = vpop.f32.mrf.mxu0 }
 0x1d9   : > { %v1950_v12 = vadd.f32 %v1938_v19, %v1816_v17 }
 0x1db   : > { %v1962_v7 = vadd.f32 %v3198_v57, %v1950_v12 }
 0x1dc   : > { %v1673_v35 = vpop.f32.mrf.mxu2 }
 0x1dd   : > { %1971 = vst.msk [vmem:[%s3205_s27 + $0x38] sm:$0xff] %vm1963_vm0, %v1962_v7 }
 0x1de   : > { %v1807_v45 = vpop.f32.mrf.mxu3 }
 0x1df PF: > { %s18_s26 = sadd.s32 1, %s2440_s26   ;;  %s3275_s24 = smov %s2436_s25 }
 0x1e0   : > { %p15_p8 = scmp.ge.s32.totalorder %s18_s26, 4   ;;  %s3276_s25 = smov %s3278_s4 }
 0x1e2   :  { %17 = sbr.rel (!%p15_p8) target bundleno = 2 (0x2), region = 103 }
 0x1e7   :  { %2002 = vsyncpa [#allocation4], 1 }
 0x1e8   :  { %2004 = vsyncpa [#allocation4 + $0x1], 1 }

// kernel: resnet_block.7
= control target key start
LH: loop header
LB: loop body
LE: loop exit
PB: predicated region body
PF: predicated region fallthrough
CT: control target
= control target key end

     0   :  { %15 = vsyncpa [#allocation4], 0  ;;  %s3836_s0 = inlined_call_operand.vmem [shape: f32[2,1,64], index: 0, kind: input, shape index: {}]   ;;  %s3837_s1 = inlined_call_operand.vmem [shape: f32[2,1,64], index: 1, kind: input, shape index: {}]   ;;  %s3838_s2 = inlined_call_operand.vmem [shape: f32[2,8,8,64], index: 2, kind: input, shape index: {}, may-alias: {2,3,4}]   ;;  %s3839_s3 = inlined_call_operand.vmem [shape: f32[2,8,8,64], index: 3, kind: input, shape index: {}, may-alias: {2,3,4}]   ;;  %s3840_s4 = inlined_call_operand.vmem [shape: f32[2,8,8,64], index: 4, kind: input, shape index: {}, may-alias: {2,3,4}]   ;;  %s3841_s5 = inlined_call_operand.hbm [shape: f32[9,64,64], index: 5, kind: input, shape index: {}]   ;;  %s3842_s6 = inlined_call_operand.vmem [shape: f32[1,1,64], index: 6, kind: input, shape index: {}]   ;;  %s3843_s7 = inlined_call_operand.vmem [shape: f32[2,8,8,32], index: 7, kind: input, shape index: {}]   ;;  %s3844_s8 = inlined_call_operand.vmem [shape: f32[32,64], index: 8, kind: input, shape index: {}]   ;;  %s3845_s9 = inlined_call_operand.vmem [shape: f32[1,1,64], index: 9, kind: input, shape index: {}]   ;;  %s3846_s10 = inlined_call_operand.hbm [shape: f32[2,8,8,64], index: 10, kind: output, shape index: {}]  }
   0x1   :  { %16 = vsyncpa [#allocation5], 0 }
   0x2   :  { %18 = vsyncpa [#allocation5 + $0x1], 0  ;;  %s2888_s4 = smov 0   ;;  %s2890_s12 = smov 0  }
   0x3   :  { %s2892_s13 = smov 0   ;;  %s2894_s14 = smov 0  }
   0x4   :  { %s2896_s15 = smov 0   ;;  %s2898_s16 = smov 0  }
   0x5 LB: > { %s2393_s17 = sadd.s32 4294967295, %s2825_s16   ;;  %s2394_s18 = sadd.s32 4294967294, %s2825_s16   ;;  %s2825_s16 = sphi %s2898_s16, %s24_s16   ;;  %s2821_s15 = sphi %s2896_s15, %s3875_s15   ;;  %s2817_s14 = sphi %s2894_s14, %s3874_s14   ;;  %s2813_s13 = sphi %s2892_s13, %s3873_s13   ;;  %s2809_s12 = sphi %s2890_s12, %s3872_s12   ;;  %s2805_s4 = sphi %s2888_s4, %s3871_s4  }
   0x6   : > { %s36_s19 = sadd.s32 1, %s2821_s15  ;;  %s309_s20 = sadd.s32 1, %s2813_s13 }
   0x7   : > { %p38_p0 = scmp.ge.s32.totalorder %s36_s19, 2  ;;  %p319_p1 = scmp.ne.s32.totalorder %s2813_s13, %s2809_s12 }
   0x8   : > { %p320_p2 = scmp.eq.s32.totalorder %s2393_s17, 1  ;;  %p325_p3 = scmp.ne.s32.totalorder %s2809_s12, %s2805_s4 }
   0x9   : > { %s3877_s19 = smov (%p38_p0, %s36_s19), 0  ;;  %p326_p5 = scmp.eq.s32.totalorder %s2394_s18, 1 }
   0xa   : > { %p2928_p4 = por %p320_p2, %p319_p1  ;;  %s304_s22 = ssub.s32 %s2821_s15, %s3877_s19 }
   0xb   : > { %p2395_p6 = scmp.ge.s32.totalorder %s2825_s16, 1  ;;  %p307_p7 = scmp.eq.s32.totalorder %s304_s22, 0 }
   0xc   : > { %p2935_p8 = por %p326_p5, %p325_p3  ;;  %p333_p9 = scmp.lt.s32.totalorder %s2825_s16, 3 }
   0xd   : > { %s2941_s24 = scalar_select %p307_p7, %s2813_s13, %s309_s20  }
   0xe   : > { %p334_p10 = pnand %p2395_p6, %p333_p9  ;;  %p2620_p11 = scmp.eq.s32.totalorder %s2393_s17, 0 }
   0xf   : > { %s344_s27 = sshll.u32 %s3841_s5, 4  ;;  %s2827_s28 = smov [#allocation3]   ;;  %s345_s27 = int_to_ptr.hbm [resolvable:$true] %s344_s27 }
  0x10   : > { %p2612_p12 = pneg %p334_p10  ;;  %s346_s29 = sshll.u32 %s2827_s28, 4  ;;  %s347_s29 = int_to_ptr.vmem [resolvable:$true] %s346_s29 }
  0x11   : > { %s2828_s30 = smov 128   ;;  %s2829_s11 = smov 8  }
  0x12   : > { %p2613_p13 = pnand %p2620_p11, %p2612_p12  ;;  %447 = sbr.rel (%p334_p10) target bundleno = 510 (0x1fe), region = 60 }
  0x14   : > { %2615 = dma.hbm_to_vmem [thread:$0]  (!%p2613_p13), %s345_s27, 9216, %s347_s29, [#allocation4], %s2828_s30, %s2828_s30, %s2829_s11  }
  0x17   : > { %2796 = dma.done.wait (%p2620_p11), [#allocation4], 9216  }
  0x18   : > { %2798 = vsyncadd (%p2620_p11), [#allocation4], 4294958080  ;;  %vm590_vm0 = vcmask 523264   ;;  %p529_p0 = scmp.lt.s32.totalorder %s2817_s14, 1  ;;  %v2830_v0 = vmov 0.0   ;;  %v2960_v1 = vld [vmem:[#allocation3 + $0x38] sm:$0xff] }
  0x19   : > { %591 = vst.msk [vmem:[#allocation2] sm:$0xff] %vm590_vm0, %v2830_v0  ;;  %v2962_v2 = vld [vmem:[#allocation3 + $0x30] sm:$0xff]  ;;  %1079 = vmatpush.msra.mxu1 %v2960_v1  ;;  %v2970_v3 = vld [vmem:[#allocation3 + $0x28] sm:$0xff]  ;;  %v917_v4 = vld [vmem:[#allocation3 + $0x78] sm:$0xff]  ;;  %s526_s18 = sand.u32 1, %s2809_s12  }
  0x1a   : > { %592 = vst.msk [vmem:[#allocation2 + $0x8] sm:$0xff] %vm590_vm0, %v2830_v0  ;;  %s2952_s3 = scalar_select %p529_p0, %s2817_s14, 1  ;;  %2582 = vmatpush.msra.mxu2 %v917_v4  ;;  %v916_v5 = vld [vmem:[#allocation3 + $0x70] sm:$0xff]  ;;  %v2984_v6 = vld [vmem:[#allocation3 + $0x20] sm:$0xff]  ;;  %2583 = vmatpush.msra.mxu3 %v917_v4  ;;  %v915_v7 = vld [vmem:[#allocation3 + $0x68] sm:$0xff] }
  0x1b   : > { %859 = vst.msk [vmem:[#allocation2 + $0x1] sm:$0xff] %vm590_vm0, %v2830_v0  ;;  %1080 = vmatpush.msra.mxu1 %v2962_v2  ;;  %974 = vmatpush.msra.mxu0 %v917_v4  ;;  %v2997_v8 = vld [vmem:[#allocation3 + $0x18] sm:$0xff]  ;;  %v914_v9 = vld [vmem:[#allocation3 + $0x60] sm:$0xff]  ;;  %v3001_v10 = vld [vmem:[#allocation3 + $0x10] sm:$0xff]  ;;  %s2400_s20 = sshll.u32 %s526_s18, 6 }
  0x1c   : > { %593 = vst.msk [vmem:[#allocation2 + $0x10] sm:$0xff] %vm590_vm0, %v2830_v0  ;;  %s2576_s17 = sshll.u32 %s2952_s3, 6  ;;  %s531_s27 = scalar_lea.vmem %s3836_s0, %s2952_s3  ;;  %2584 = vmatpush.msra.mxu2 %v916_v5  ;;  %2585 = vmatpush.msra.mxu3 %v916_v5  ;;  %v913_v11 = vld [vmem:[#allocation3 + $0x58] sm:$0xff]  ;;  %v3026_v23 = vld [vmem:[#allocation3 + $0x8] sm:$0xff]  ;;  %v912_v24 = vld [vmem:[#allocation3 + $0x50] sm:$0xff] }
  0x1d   : > { %594 = vst.msk [vmem:[#allocation2 + $0x18] sm:$0xff] %vm590_vm0, %v2830_v0  ;;  %s2982_s22 = scalar_lea.vmem %s3838_s2, %s2576_s17  ;;  %s534_s30 = scalar_lea.vmem %s3837_s1, %s2952_s3  ;;  %1081 = vmatpush.msra.mxu1 %v2970_v3  ;;  %975 = vmatpush.msra.mxu0 %v916_v5  ;;  %v3009_v13 = vld [vmem:[%s531_s27] ss:$0 sm:$0xff]  ;;  %v3045_v31 = vld [vmem:[#allocation3] sm:$0xff]  ;;  %v911_v32 = vld [vmem:[#allocation3 + $0x48] sm:$0xff] }
  0x1e   : > { %595 = vst.msk [vmem:[#allocation2 + $0x20] sm:$0xff] %vm590_vm0, %v2830_v0  ;;  %v615_v12 = vld [vmem:[%s2982_s22 + $0x10] sm:$0xff]  ;;  %2586 = vmatpush.msra.mxu2 %v915_v7  ;;  %v3011_v14 = vld [vmem:[%s534_s30] ss:$0 sm:$0xff]  ;;  %v618_v15 = vld [vmem:[%s2982_s22 + $0x28] sm:$0xff]  ;;  %2587 = vmatpush.msra.mxu3 %v915_v7  ;;  %s3644_s11 = scalar_lea.vmem %s3843_s7, %s2576_s17  ;;  %s3760_s26 = scalar_lea.vmem [#allocation6], %s2400_s20 }
  0x1f   : > { %596 = vst.msk [vmem:[#allocation2 + $0x28] sm:$0xff] %vm590_vm0, %v2830_v0  ;;  %1082 = vmatpush.msra.mxu1 %v2984_v6  ;;  %976 = vmatpush.msra.mxu0 %v915_v7  ;;  %v613_v16 = vld [vmem:[%s2982_s22] sm:$0xff]  ;;  %v616_v17 = vld [vmem:[%s2982_s22 + $0x18] sm:$0xff]  ;;  %v619_v18 = vld [vmem:[%s2982_s22 + $0x30] sm:$0xff]  ;;  %v626_v19 = vmul.f32 %v3009_v13, %v615_v12  ;;  %v629_v20 = vmul.f32 %v3009_v13, %v618_v15  ;;  %s2581_s27 = sshll.u32 %s2817_s14, 6  ;;  %s2213_s14 = scalar_lea.sflag [#allocation5], %s526_s18 }
  0x20   : > { %597 = vst.msk [vmem:[#allocation2 + $0x30] sm:$0xff] %vm590_vm0, %v2830_v0  ;;  %2588 = vmatpush.msra.mxu2 %v914_v9  ;;  %v624_v21 = vmul.f32 %v3009_v13, %v613_v16  ;;  %v614_v22 = vld [vmem:[%s2982_s22 + $0x8] sm:$0xff]  ;;  %2589 = vmatpush.msra.mxu3 %v914_v9  ;;  %v627_v25 = vmul.f32 %v3009_v13, %v616_v17  ;;  %v617_v36 = vld [vmem:[%s2982_s22 + $0x20] sm:$0xff]  ;;  %v910_v40 = vld [vmem:[#allocation3 + $0x40] sm:$0xff]  ;;  %s2226_s30 = scalar_lea.hbm %s3846_s10, %s2581_s27  ;;  %s2763_s27 = scalar_lea.hbm %s3846_s10, 128 }
  0x21   : > { %598 = vst.msk [vmem:[#allocation2 + $0x38] sm:$0xff] %vm590_vm0, %v2830_v0  ;;  %1083 = vmatpush.msra.mxu1 %v2997_v8  ;;  %977 = vmatpush.msra.mxu0 %v914_v9  ;;  %v630_v26 = vmul.f32 %v3009_v13, %v619_v18  ;;  %v625_v27 = vmul.f32 %v3009_v13, %v614_v22  ;;  %v1152_v53 = vld [vmem:[#allocation3 + $0xb8] sm:$0xff]  ;;  %v1151_v55 = vld [vmem:[#allocation3 + $0xb0] sm:$0xff]  ;;  %s2229_s3 = sshll.u32 %s2226_s30, 4  ;;  %s2230_s3 = int_to_ptr.hbm [resolvable:$true] %s2229_s3 }
  0x22   : > { %599 = vst.msk [vmem:[#allocation2 + $0x40] sm:$0xff] %vm590_vm0, %v2830_v0  ;;  %2590 = vmatpush.msra.mxu2 %v913_v11  ;;  %v3037_v28 = vadd.f32 %v3011_v14, %v626_v19  ;;  %v3040_v29 = vadd.f32 %v3011_v14, %v629_v20  ;;  %v3043_v30 = vadd.f32 %v3011_v14, %v624_v21  ;;  %v869_v37 = vld [vmem:[#allocation2] sm:$0xff]  ;;  %v870_v48 = vld [vmem:[#allocation2 + $0x8] sm:$0xff]  ;;  %v1150_v20 = vld [vmem:[#allocation3 + $0xa8] sm:$0xff]  ;;  %s2757_s17 = sshra.s32 %s2230_s3, 4  ;;  %s2758_s17 = int_to_ptr.hbm [resolvable:$true] %s2757_s17 }
  0x23   : > { %600 = vst.msk [vmem:[#allocation2 + $0x48] sm:$0xff] %vm590_vm0, %v2830_v0  ;;  %1084 = vmatpush.msra.mxu1 %v3001_v10  ;;  %2591 = vmatpush.msra.mxu3 %v913_v11  ;;  %v3050_v33 = vadd.f32 %v3011_v14, %v627_v25  ;;  %v3053_v34 = vadd.f32 %v3011_v14, %v630_v26  ;;  %v893_v54 = vld [vmem:[#allocation2 + $0x1] sm:$0xff]  ;;  %v894_v21 = vld [vmem:[#allocation2 + $0x9] sm:$0xff]  ;;  %s2759_s20 = scalar_lea.hbm %s2758_s17, 64  ;;  %p2764_p5 = scmp.lt.s32.totalorder %s2758_s17, %s3846_s10 }
  0x24   : > { %601 = vst.msk [vmem:[#allocation2 + $0x50] sm:$0xff] %vm590_vm0, %v2830_v0  ;;  %978 = vmatpush.msra.mxu0 %v913_v11  ;;  %v3056_v35 = vadd.f32 %v3011_v14, %v625_v27  ;;  %2592 = vmatpush.msra.mxu2 %v912_v24  ;;  %v2411_v38 = vmul.f32 -1.442695, %v3037_v28  ;;  %v2414_v39 = vmul.f32 -1.442695, %v3040_v29  ;;  %v628_v44 = vmul.f32 %v3009_v13, %v617_v36  ;;  %v1566_v58 = vld [vmem:[#allocation3 + $0x178] sm:$0xff]  ;;  %p2760_p1 = scmp.ne.s32.totalorder %s2758_s17, %s2759_s20  ;;  %p2765_p6 = scmp.lt.s32.totalorder %s2763_s27, %s2759_s20 }
  0x25   : > { %602 = vst.msk [vmem:[#allocation2 + $0x58] sm:$0xff] %vm590_vm0, %v2830_v0  ;;  %1085 = vmatpush.msra.mxu1 %v3026_v23  ;;  %2593 = vmatpush.msra.mxu3 %v912_v24  ;;  %v2409_v41 = vmul.f32 -1.442695, %v3043_v30  ;;  %v2412_v42 = vmul.f32 -1.442695, %v3050_v33  ;;  %v1428_v19 = vld [vmem:[#allocation3 + $0x138] sm:$0xff] }
  0x26   : > { %603 = vst.msk [vmem:[#allocation2 + $0x60] sm:$0xff] %vm590_vm0, %v2830_v0  ;;  %979 = vmatpush.msra.mxu0 %v912_v24  ;;  %2594 = vmatpush.msra.mxu2 %v911_v32  ;;  %2681 = vpow2.f32 %v2411_v38  ;;  %v2415_v43 = vmul.f32 -1.442695, %v3053_v34  ;;  %v2410_v45 = vmul.f32 -1.442695, %v3056_v35  ;;  %v3081_v46 = vadd.f32 %v3011_v14, %v628_v44  ;;  %p2761_p2 = pnand %p2760_p1, %p2928_p4  ;;  %p2766_p7 = por %p2765_p6, %p2764_p5 }
  0x27   : > { %604 = vst.msk [vmem:[#allocation2 + $0x68] sm:$0xff] %vm590_vm0, %v2830_v0  ;;  %1086 = vmatpush.msra.mxu1 %v3045_v31  ;;  %2595 = vmatpush.msra.mxu3 %v911_v32  ;;  %2683 = vpow2.f32 %v2414_v39 }
  0x28   : > { %605 = vst.msk [vmem:[#allocation2 + $0x70] sm:$0xff] %vm590_vm0, %v2830_v0  ;;  %2435 = vmatmul.msk.f32.vlgmr.msra.gmra.mxu1 %vm590_vm0, %v869_v37  ;;  %2596 = vmatpush.msra.mxu2 %v910_v40  ;;  %2685 = vpow2.f32 %v2409_v41  ;;  %v2413_v56 = vmul.f32 -1.442695, %v3081_v46  ;;  %v1425_v37 = vld [vmem:[#allocation3 + $0x120] sm:$0xff]  ;;  %p2762_p3 = pneg %p2761_p2 }
  0x29   : > { %606 = vst.msk [vmem:[#allocation2 + $0x78] sm:$0xff] %vm590_vm0, %v2830_v0  ;;  %980 = vmatpush.msra.mxu0 %v911_v32  ;;  %2597 = vmatpush.msra.mxu3 %v910_v40  ;;  %2687 = vpow2.f32 %v2412_v42 }
  0x2a   : > { %607 = vst.msk [vmem:[#allocation2 + $0x80] sm:$0xff] %vm590_vm0, %v2830_v0  ;;  %2689 = vpow2.f32 %v2415_v43  ;;  %1209 = vmatpush.msrb.mxu2 %v1152_v53  ;;  %1623 = vmatpush.msrb.mxu1 %v1566_v58  ;;  %p2767_p9 = pnand %p2766_p7, %p2762_p3 }
  0x2b   : > { %608 = vst.msk [vmem:[#allocation2 + $0x88] sm:$0xff] %vm590_vm0, %v2830_v0  ;;  %2598 = vmatpush.msrb.mxu3 %v2960_v1  ;;  %981 = vmatpush.msra.mxu0 %v910_v40  ;;  %2691 = vpow2.f32 %v2410_v45 }
  0x2c   : > { %609 = vst.msk [vmem:[#allocation2 + $0x90] sm:$0xff] %vm590_vm0, %v2830_v0  ;;  %v2682_v47 = vpop.eup %2681  ;;  %2419 = vmatmul.msk.f32.vlgmr.msra.gmra.mxu0 %vm590_vm0, %v893_v54  ;;  %1210 = vmatpush.msrb.mxu2 %v1151_v55 }
  0x2d   : > { %610 = vst.msk [vmem:[#allocation2 + $0x98] sm:$0xff] %vm590_vm0, %v2830_v0  ;;  %2599 = vmatpush.msrb.mxu3 %v2962_v2  ;;  %v2684_v49 = vpop.eup %2683  ;;  %v3084_v50 = vadd.f32 1.0, %v2682_v47  ;;  %1485 = vmatpush.msrb.mxu0 %v1428_v19 }
  0x2e   : > { %611 = vst.msk [vmem:[#allocation2 + $0xa0] sm:$0xff] %vm590_vm0, %v2830_v0  ;;  %v2686_v51 = vpop.eup %2685  ;;  %v3086_v52 = vadd.f32 1.0, %v2684_v49  ;;  %1211 = vmatpush.msrb.mxu2 %v1150_v20 }
  0x2f   : > { %860 = vst.msk [vmem:[#allocation2 + $0x91] sm:$0xff] %vm590_vm0, %v2830_v0  ;;  %2600 = vmatpush.msrb.mxu3 %v2970_v3  ;;  %v2688_v57 = vpop.eup %2687  ;;  %2693 = vrcp.f32 %v3084_v50  ;;  %v714_v60 = vand.u32 2147483647, %v3084_v50  ;;  %v716_v62 = vand.u32 2147483648, %v3084_v50  ;;  %v3096_v63 = vadd.f32 1.0, %v2686_v51 }
  0x30   : > { %2436 = vmatmul.msk.f32.gmra.mxu1 %vm590_vm0, %v870_v48  ;;  %v2690_v59 = vpop.eup %2689  ;;  %2695 = vrcp.f32 %v3086_v52  ;;  %v3099_v0 = vadd.f32 1.0, %v2688_v57  ;;  %v759_v1 = vand.u32 2147483647, %v3086_v52  ;;  %v761_v2 = vand.u32 2147483648, %v3086_v52 }
  0x31   : > { %v2692_v61 = vpop.eup %2691  ;;  %2601 = vmatpush.msrb.mxu3 %v2984_v6  ;;  %v3103_v3 = vadd.f32 1.0, %v2690_v59  ;;  %2697 = vpow2.f32 %v2413_v56  ;;  %vm710_vm1 = vweird.f32 %v3084_v50  ;;  %vm755_vm2 = vweird.f32 %v3086_v52  ;;  %v1427_v59 = vld [vmem:[#allocation3 + $0x130] sm:$0xff] }
  0x32   : > { %2699 = vrcp.f32 %v3096_v63  ;;  %v686_v4 = vand.u32 2147483648, %v3096_v63  ;;  %vm3110_vm3 = vcmp.eq.f32.partialorder %v714_v60, 8.507059e+37  ;;  %v684_v6 = vand.u32 2147483647, %v3096_v63  ;;  %v1149_v60 = vld [vmem:[#allocation3 + $0xa0] sm:$0xff]  ;;  %1486 = vmatpush.msrb.mxu0 %v1427_v59 }
  0x33   : > { %2602 = vmatpush.msrb.mxu3 %v2997_v8  ;;  %2701 = vrcp.f32 %v3099_v0  ;;  %v3116_v7 = vadd.f32 1.0, %v2692_v61  ;;  %v3120_v11 = vor.u32 1.1754944e-38, %v716_v62  ;;  %v729_v12 = vand.u32 2147483647, %v3099_v0  ;;  %v1565_v61 = vld [vmem:[#allocation3 + $0x170] sm:$0xff]  ;;  %1212 = vmatpush.msrb.mxu2 %v1149_v60 }
  0x34   : > { %v731_v15 = vand.u32 2147483648, %v3099_v0  ;;  %2703 = vrcp.f32 %v3103_v3  ;;  %vm3130_vm4 = vcmp.eq.f32.partialorder %v759_v1, 8.507059e+37  ;;  %v3134_v18 = vor.u32 1.1754944e-38, %v761_v2  ;;  %2420 = vmatmul.msk.f32.gmra.mxu0 %vm590_vm0, %v894_v21  ;;  %1624 = vmatpush.msrb.mxu1 %v1565_v61  ;;  %v3298_v61 = vld [vmem:[#allocation2 + $0x19] sm:$0xff] }
  0x35   : > { %v3118_v9 = vpop.eup %2693  ;;  %2603 = vmatpush.msrb.mxu3 %v3001_v10  ;;  %vm680_vm5 = vweird.f32 %v3096_v63  ;;  %v3139_v10 = vor.u32 1.1754944e-38, %v686_v4  ;;  %vm725_vm6 = vweird.f32 %v3099_v0  ;;  %v776_v24 = vand.u32 2147483648, %v3103_v3 }
  0x36   : > { %v3126_v8 = vpop.eup %2695  ;;  %v706_v16 = vmul.f32 %v3118_v9, %v3084_v50  ;;  %vm711_vm7 = vweird.f32 %v3118_v9  ;;  %vm3144_vm8 = vcmp.eq.f32.partialorder %v684_v6, 8.507059e+37  ;;  %vm770_vm9 = vweird.f32 %v3103_v3 }
  0x37   : > { %v751_v22 = vmul.f32 %v3126_v8, %v3086_v52  ;;  %v2698_v25 = vpop.eup %2697  ;;  %2705 = vrcp.f32 %v3116_v7  ;;  %2604 = vmatpush.msrb.mxu3 %v3026_v23  ;;  %vm756_vm10 = vweird.f32 %v3126_v8  ;;  %vm3155_vm11 = vcmp.eq.f32.partialorder %v729_v12, 8.507059e+37  ;;  %vm3170_vm13 = vmor %vm710_vm1, %vm711_vm7  ;;  %v1426_v12 = vld [vmem:[#allocation3 + $0x128] sm:$0xff] }
  0x38   : > { %v707_v26 = vsub.f32 1.0, %v706_v16  ;;  %v3152_v32 = vpop.eup %2699  ;;  %v732_v38 = vor.u32 1.1754944e-38, %v731_v15  ;;  %v774_v39 = vand.u32 2147483647, %v3103_v3  ;;  %vm695_vm12 = vweird.f32 %v3116_v7  ;;  %vm3182_vm14 = vmor %vm755_vm2, %vm756_vm10  ;;  %1487 = vmatpush.msrb.mxu0 %v1426_v12 }
  0x39   : > { %v752_v36 = vsub.f32 1.0, %v751_v22  ;;  %v2702_v40 = vpop.eup %2701  ;;  %v676_v42 = vmul.f32 %v3152_v32, %v3096_v63  ;;  %v699_v23 = vand.u32 2147483647, %v3116_v7  ;;  %2605 = vmatpush.msrb.mxu3 %v3045_v31  ;;  %v777_v48 = vor.u32 1.1754944e-38, %v776_v24  ;;  %v1424_v31 = vld [vmem:[#allocation3 + $0x118] sm:$0xff]  ;;  %v1284_v63 = vld [vmem:[#allocation3 + $0xc8] sm:$0xff] }
  0x3a   : > { %v708_v41 = vmul.f32 %v3118_v9, %v707_v26  ;;  %v2704_v43 = vpop.eup %2703  ;;  %v721_v47 = vmul.f32 %v2702_v40, %v3099_v0  ;;  %v701_v49 = vand.u32 2147483648, %v3116_v7  ;;  %vm681_vm15 = vweird.f32 %v3152_v32  ;;  %1488 = vmatpush.msrb.mxu0 %v1425_v37  ;;  %v1561_v37 = vld [vmem:[#allocation3 + $0x150] sm:$0xff] }
  0x3b   : > { %v753_v45 = vmul.f32 %v3126_v8, %v752_v36  ;;  %v677_v50 = vsub.f32 1.0, %v676_v42  ;;  %v766_v53 = vmul.f32 %v2704_v43, %v3103_v3  ;;  %vm726_vm1 = vweird.f32 %v2702_v40  ;;  %vm3205_vm2 = vmor %vm680_vm5, %vm681_vm15  ;;  %v1148_v36 = vld [vmem:[#allocation3 + $0x98] sm:$0xff] }
  0x3c   : > { %v709_v51 = vadd.f32 %v3118_v9, %v708_v41  ;;  %v722_v55 = vsub.f32 1.0, %v721_v47  ;;  %vm771_vm7 = vweird.f32 %v2704_v43  ;;  %v3193_v62 = vadd.f32 1.0, %v2698_v25  ;;  %1213 = vmatpush.msrb.mxu2 %v1148_v36  ;;  %1489 = vmatpush.msrb.mxu0 %v1424_v31  ;;  %v1979_v36 = vld [vmem:[#allocation3 + $0x230] sm:$0xff]  ;;  %v1977_v31 = vld [vmem:[#allocation3 + $0x220] sm:$0xff] }
  0x3d   : > { %v754_v54 = vadd.f32 %v3126_v8, %v753_v45  ;;  %v2706_v56 = vpop.eup %2705  ;;  %v678_v52 = vmul.f32 %v3152_v32, %v677_v50  ;;  %v767_v58 = vsub.f32 1.0, %v766_v53  ;;  %vm3226_vm5 = vmor %vm770_vm9, %vm771_vm7  ;;  %v3286_v50 = vld [vmem:[#allocation2 + $0x39] sm:$0xff] }
  0x3e   : > { %v713_v57 = vsel %vm3170_vm13, %v3118_v9, %v709_v51  ;;  %v723_v6 = vmul.f32 %v2702_v40, %v722_v55  ;;  %v691_v9 = vmul.f32 %v2706_v56, %v3116_v7  ;;  %2707 = vrcp.f32 %v3193_v62  ;;  %v1290_v51 = vld [vmem:[#allocation3 + $0xf8] sm:$0xff] }
  0x3f   : > { %v718_v1 = vsel %vm3110_vm3, %v3120_v11, %v713_v57  ;;  %v758_v2 = vsel %vm3182_vm14, %v3126_v8, %v754_v54  ;;  %v679_v15 = vadd.f32 %v3152_v32, %v678_v52  ;;  %vm3218_vm3 = vmor %vm725_vm6, %vm726_vm1  ;;  %v768_v8 = vmul.f32 %v2704_v43, %v767_v58  ;;  %v1564_v54 = vld [vmem:[#allocation3 + $0x168] sm:$0xff]  ;;  %v3288_v55 = vld [vmem:[#allocation2 + $0x69] sm:$0xff] }
  0x40   : > { %v797_v5 = vmul.f32 %v718_v1, %v3037_v28  ;;  %v763_v11 = vsel %vm3130_vm4, %v3134_v18, %v758_v2  ;;  %v724_v19 = vadd.f32 %v2702_v40, %v723_v6  ;;  %v692_v17 = vsub.f32 1.0, %v691_v9  ;;  %1625 = vmatpush.msrb.mxu1 %v1564_v54  ;;  %v1289_v57 = vld [vmem:[#allocation3 + $0xf0] sm:$0xff]  ;;  %v1288_v58 = vld [vmem:[#allocation3 + $0xe8] sm:$0xff]  ;;  %v1287_v1 = vld [vmem:[#allocation3 + $0xe0] sm:$0xff] }
  0x41   : > { %v800_v16 = vmul.f32 %v763_v11, %v3040_v29  ;;  %vm696_vm4 = vweird.f32 %v2706_v56  ;;  %v683_v0 = vsel %vm3205_vm2, %v3152_v32, %v679_v15  ;;  %v769_v18 = vadd.f32 %v2704_v43, %v768_v8  ;;  %v1423_v2 = vld [vmem:[#allocation3 + $0x110] sm:$0xff]  ;;  %v1145_v6 = vld [vmem:[#allocation3 + $0x80] sm:$0xff]  ;;  %v1286_v9 = vld [vmem:[#allocation3 + $0xd8] sm:$0xff] }
  0x42   : > { %863 = vst.msk [vmem:[#allocation2 + $0x31] sm:$0xff] %vm590_vm0, %v797_v5  ;;  %vm775_vm6 = vcmp.eq.f32.partialorder %v774_v39, 8.507059e+37  ;;  %v688_v29 = vsel %vm3144_vm8, %v3139_v10, %v683_v0  ;;  %v728_v3 = vsel %vm3218_vm3, %v2702_v40, %v724_v19  ;;  %v693_v20 = vmul.f32 %v2706_v56, %v692_v17  ;;  %vm3249_vm9 = vmor %vm695_vm12, %vm696_vm4  ;;  %1490 = vmatpush.msrb.mxu0 %v1423_v2  ;;  %v1285_v5 = vld [vmem:[#allocation3 + $0xd0] sm:$0xff]  ;;  %v1283_v8 = vld [vmem:[#allocation3 + $0xc0] sm:$0xff] }
  0x43   : > { %866 = vst.msk [vmem:[#allocation2 + $0x61] sm:$0xff] %vm590_vm0, %v800_v16  ;;  %v795_v21 = vmul.f32 %v688_v29, %v3043_v30  ;;  %v733_v22 = vsel %vm3155_vm11, %v732_v38, %v728_v3  ;;  %v773_v24 = vsel %vm3226_vm5, %v2704_v43, %v769_v18  ;;  %v702_v10 = vor.u32 1.1754944e-38, %v701_v49  ;;  %v1147_v38 = vld [vmem:[#allocation3 + $0x90] sm:$0xff]  ;;  %v1563_v16 = vld [vmem:[#allocation3 + $0x160] sm:$0xff]  ;;  %v1704_v19 = vld [vmem:[#allocation3 + $0x1b8] sm:$0xff] }
  0x44   : > { %v798_v26 = vmul.f32 %v733_v22, %v3050_v33  ;;  %v778_v27 = vsel %vm775_vm6, %v777_v48, %v773_v24  ;;  %v694_v32 = vadd.f32 %v2706_v56, %v693_v20  ;;  %vm700_vm8 = vcmp.eq.f32.partialorder %v699_v23, 8.507059e+37  ;;  %v2708_v39 = vpop.eup %2707  ;;  %1214 = vmatpush.msrb.mxu2 %v1147_v38  ;;  %v3322_v28 = vld [vmem:[#allocation2 + $0x49] sm:$0xff]  ;;  %1626 = vmatpush.msrb.mxu1 %v1563_v16  ;;  %v3324_v0 = vld [vmem:[#allocation2 + $0x79] sm:$0xff] }
  0x45   : > { %861 = vst.msk [vmem:[#allocation2 + $0x11] sm:$0xff] %vm590_vm0, %v795_v21  ;;  %v801_v30 = vmul.f32 %v778_v27, %v3053_v34  ;;  %v736_v34 = vmul.f32 %v2708_v39, %v3193_v62  ;;  %v746_v23 = vand.u32 2147483648, %v3193_v62  ;;  %vm740_vm10 = vweird.f32 %v3193_v62  ;;  %v1421_v17 = vld [vmem:[#allocation3 + $0x100] sm:$0xff]  ;;  %v1980_v3 = vld [vmem:[#allocation3 + $0x238] sm:$0xff]  ;;  %v3352_v27 = vld [vmem:[#allocation2 + $0x59] sm:$0xff] }
  0x46   : > { %864 = vst.msk [vmem:[#allocation2 + $0x41] sm:$0xff] %vm590_vm0, %v798_v26  ;;  %v698_v7 = vsel %vm3249_vm9, %v2706_v56, %v694_v32  ;;  %vm741_vm11 = vweird.f32 %v2708_v39  ;;  %v1146_v56 = vld [vmem:[#allocation3 + $0x88] sm:$0xff]  ;;  %v3332_v29 = vld [vmem:[#allocation2 + $0x29] sm:$0xff]  ;;  %v1841_v26 = vld [vmem:[#allocation3 + $0x1f0] sm:$0xff]  ;;  %vm2118_vm2 = vcmask 261120  }
  0x47   : > { %867 = vst.msk [vmem:[#allocation2 + $0x71] sm:$0xff] %vm590_vm0, %v801_v30  ;;  %v703_v33 = vsel %vm700_vm8, %v702_v10, %v698_v7  ;;  %v737_v43 = vsub.f32 1.0, %v736_v34  ;;  %vm3282_vm12 = vmor %vm740_vm10, %vm741_vm11  ;;  %v747_v49 = vor.u32 1.1754944e-38, %v746_v23  ;;  %1215 = vmatpush.msrb.mxu2 %v1146_v56  ;;  %v1562_v20 = vld [vmem:[#allocation3 + $0x158] sm:$0xff]  ;;  %v1703_v10 = vld [vmem:[#allocation3 + $0x1b0] sm:$0xff] }
  0x48   : > { %v796_v41 = vmul.f32 %v703_v33, %v3056_v35  ;;  %v744_v35 = vand.u32 2147483647, %v3193_v62  ;;  %1627 = vmatpush.msrb.mxu1 %v1562_v20  ;;  %v1842_v24 = vld [vmem:[#allocation3 + $0x1f8] sm:$0xff]  ;;  %v1840_v33 = vld [vmem:[#allocation3 + $0x1e8] sm:$0xff]  ;;  %v1839_v48 = vld [vmem:[#allocation3 + $0x1e0] sm:$0xff] }
  0x49   : > { %v3260_v40 = vld [vmem:[#allocation2 + $0x31] sm:$0xff]  ;;  %v738_v47 = vmul.f32 %v2708_v39, %v737_v43  ;;  %1216 = vmatpush.msrb.mxu2 %v1145_v6  ;;  %v1128_v7 = vld [vmem:[#allocation2 + $0x2] sm:$0xff] }
  0x4a   : > { %2425 = vmatmul.msk.f32.vlgmr.msra.gmra.mxu2 %vm590_vm0, %v3260_v40  ;;  %v3266_v42 = vld [vmem:[#allocation2 + $0x61] sm:$0xff]  ;;  %862 = vst.msk [vmem:[#allocation2 + $0x21] sm:$0xff] %vm590_vm0, %v796_v41  ;;  %vm745_vm13 = vcmp.eq.f32.partialorder %v744_v35, 8.507059e+37  ;;  %v3344_v25 = vld [vmem:[#allocation2 + $0x30] sm:$0xff]  ;;  %v3358_v30 = vld [vmem:[#allocation2 + $0x38] sm:$0xff]  ;;  %1628 = vmatpush.msrb.mxu1 %v1561_v37 }
  0x4b   : > { %2431 = vmatmul.msk.f32.vlgmr.msra.gmra.mxu3 %vm590_vm0, %v3266_v42  ;;  %v739_v53 = vadd.f32 %v2708_v39, %v738_v47  ;;  %1761 = vmatpush.msra.mxu2 %v1704_v19  ;;  %v1560_v23 = vld [vmem:[#allocation3 + $0x148] sm:$0xff]  ;;  %v1559_v35 = vld [vmem:[#allocation3 + $0x140] sm:$0xff]  ;;  %v1700_v54 = vld [vmem:[#allocation3 + $0x198] sm:$0xff] }
  0x4c   : > { %v3274_v44 = vld [vmem:[#allocation2 + $0x10] sm:$0xff]  ;;  %1347 = vmatpush.msra.mxu3 %v1290_v51  ;;  %v3296_v60 = vld [vmem:[#allocation2 + $0x18] sm:$0xff]  ;;  %1629 = vmatpush.msrb.mxu1 %v1560_v23  ;;  %v1838_v56 = vld [vmem:[#allocation3 + $0x1d8] sm:$0xff] }
  0x4d   : > { %v3276_v45 = vld [vmem:[#allocation2 + $0x11] sm:$0xff]  ;;  %2437 = vmatmul.msk.f32.gmra.mxu1 %vm590_vm0, %v3274_v44  ;;  %v743_v52 = vsel %vm3282_vm12, %v2708_v39, %v739_v53  ;;  %v3306_v4 = vld [vmem:[#allocation2 + $0x41] sm:$0xff]  ;;  %1762 = vmatpush.msra.mxu2 %v1703_v10 }
  0x4e   : > { %2421 = vmatmul.msk.f32.gmra.mxu0 %vm590_vm0, %v3276_v45  ;;  %1348 = vmatpush.msra.mxu3 %v1289_v57  ;;  %v748_v59 = vsel %vm745_vm13, %v747_v49, %v743_v52  ;;  %v3308_v12 = vld [vmem:[#allocation2 + $0x71] sm:$0xff]  ;;  %v3367_v38 = vld [vmem:[#allocation2 + $0x40] sm:$0xff]  ;;  %v3376_v34 = vld [vmem:[#allocation2 + $0x48] sm:$0xff] }
  0x4f   : > { %v799_v62 = vmul.f32 %v748_v59, %v3081_v46  ;;  %v1422_v46 = vld [vmem:[#allocation3 + $0x108] sm:$0xff]  ;;  %v3340_v22 = vld [vmem:[#allocation2 + $0x70] sm:$0xff]  ;;  %1630 = vmatpush.msrb.mxu1 %v1559_v35  ;;  %v3406_v53 = vld [vmem:[#allocation2 + $0x60] sm:$0xff] }
  0x50   : > { %1349 = vmatpush.msra.mxu3 %v1288_v58  ;;  %1491 = vmatpush.msrb.mxu0 %v1422_v46  ;;  %v3354_v32 = vld [vmem:[#allocation2 + $0x78] sm:$0xff]  ;;  %v1129_v41 = vld [vmem:[#allocation2 + $0xa] sm:$0xff]  ;;  %v1837_v46 = vld [vmem:[#allocation3 + $0x1d0] sm:$0xff] }
  0x51   : > { %865 = vst.msk [vmem:[#allocation2 + $0x51] sm:$0xff] %vm590_vm0, %v799_v62  ;;  %v3314_v11 = vld [vmem:[#allocation2 + $0x20] sm:$0xff]  ;;  %v3330_v18 = vld [vmem:[#allocation2 + $0x28] sm:$0xff]  ;;  %v1702_v39 = vld [vmem:[#allocation3 + $0x1a8] sm:$0xff] }
  0x52   : > { %2426 = vmatmul.msk.f32.gmra.mxu2 %vm590_vm0, %v3286_v50  ;;  %1350 = vmatpush.msra.mxu3 %v1287_v1  ;;  %v3316_v15 = vld [vmem:[#allocation2 + $0x21] sm:$0xff]  ;;  %v1978_v43 = vld [vmem:[#allocation3 + $0x228] sm:$0xff]  ;;  %v1701_v47 = vld [vmem:[#allocation3 + $0x1a0] sm:$0xff] }
  0x53   : > { %2432 = vmatmul.msk.f32.gmra.mxu3 %vm590_vm0, %v3288_v55  ;;  %1492 = vmatpush.msrb.mxu0 %v1421_v17  ;;  %v1131_v49 = vld [vmem:[#allocation2 + $0x1a] sm:$0xff]  ;;  %v3417_v52 = vld [vmem:[#allocation2 + $0x2a] sm:$0xff]  ;;  %v3433_v1 = vld [vmem:[#allocation2 + $0x32] sm:$0xff] }
  0x54   : > { %1351 = vmatpush.msra.mxu3 %v1286_v9  ;;  %1763 = vmatpush.msra.mxu2 %v1702_v39  ;;  %v2117_v57 = vld [vmem:[%s3844_s8 + $0x18] sm:$0xff]  ;;  %v3421_v58 = vld [vmem:[#allocation2 + $0x68] sm:$0xff]  ;;  %v1975_v16 = vld [vmem:[#allocation3 + $0x210] sm:$0xff] }
  0x55   : > { %2438 = vmatmul.msk.f32.gmra.mxu1 %vm590_vm0, %v3296_v60  ;;  %2037 = vmatpush.msra.mxu0 %v1980_v3  ;;  %v3454_v17 = vld [vmem:[#allocation2 + $0x42] sm:$0xff]  ;;  %v1836_v10 = vld [vmem:[#allocation3 + $0x1c8] sm:$0xff] }
  0x56   : > { %2422 = vmatmul.msk.f32.gmra.mxu0 %vm590_vm0, %v3298_v61  ;;  %1352 = vmatpush.msra.mxu3 %v1285_v5  ;;  %v1974_v35 = vld [vmem:[#allocation3 + $0x208] sm:$0xff] }
  0x57   : > { %2038 = vmatpush.msra.mxu0 %v1979_v36  ;;  %1764 = vmatpush.msra.mxu2 %v1701_v47 }
  0x58   : > { %1353 = vmatpush.msra.mxu3 %v1284_v63  ;;  %v3338_v21 = vld [vmem:[#allocation2 + $0x51] sm:$0xff]  ;;  %2155 = vmatpush.msra.mxu1 %v2117_v57  ;;  %v3445_v63 = vld [vmem:[#allocation2 + $0x3a] sm:$0xff] }
  0x59   : > { %2039 = vmatpush.msra.mxu0 %v1978_v43  ;;  %v3394_v51 = vld [vmem:[#allocation2 + $0x58] sm:$0xff]  ;;  %1765 = vmatpush.msra.mxu2 %v1700_v54  ;;  %v3464_v36 = vld [vmem:[#allocation2 + $0x4a] sm:$0xff] }
  0x5a   : > { %2427 = vmatmul.msk.f32.gmra.mxu2 %vm590_vm0, %v3306_v4  ;;  %1354 = vmatpush.msra.mxu3 %v1283_v8  ;;  %v3477_v47 = vld [vmem:[#allocation2 + $0x52] sm:$0xff]  ;;  %v3496_v57 = vld [vmem:[#allocation2 + $0x5a] sm:$0xff] }
  0x5b   : > { %2433 = vmatmul.msk.f32.gmra.mxu3 %vm590_vm0, %v3308_v12  ;;  %2040 = vmatpush.msra.mxu0 %v1977_v31  ;;  %v1697_v54 = vld [vmem:[#allocation3 + $0x180] sm:$0xff] }
  0x5d   : > { %2439 = vmatmul.msk.f32.gmra.mxu1 %vm590_vm0, %v3314_v11 }
  0x5e   : > { %2423 = vmatmul.msk.f32.gmra.mxu0 %vm590_vm0, %v3316_v15 }
  0x62   : > { %2428 = vmatmul.msk.f32.gmra.mxu2 %vm590_vm0, %v3322_v28 }
  0x63   : > { %2434 = vmatmul.msk.f32.gmra.mxu3 %vm590_vm0, %v3324_v0 }
  0x65   : > { %2440 = vmatmul.msk.f32.gmra.mxu1 %vm590_vm0, %v3330_v18 }
  0x66   : > { %2424 = vmatmul.msk.f32.gmra.mxu0 %vm590_vm0, %v3332_v29 }
  0x6a   : > { %2429 = vmatmul.msk.f32.gmra.mxu2 %vm590_vm0, %v3338_v21 }
  0x6b   : > { %2449 = vmatmul.msk.f32.vlgmr.msrb.gmra.mxu3 %vm590_vm0, %v3340_v22 }
  0x6c   : > { %1899 = vmatpush.msrb.mxu3 %v1842_v24  ;;  %v1698_v24 = vld [vmem:[#allocation3 + $0x188] sm:$0xff] }
  0x6d   : > { %2441 = vmatmul.msk.f32.gmra.mxu1 %vm590_vm0, %v3344_v25 }
  0x6e   : > { %2483 = vmatmul.msk.f32.vlgmr.msrb.gmra.mxu0 %vm590_vm0, %v3276_v45  ;;  %1900 = vmatpush.msrb.mxu3 %v1841_v26  ;;  %v3385_v45 = vld [vmem:[#allocation2 + $0x50] sm:$0xff] }
  0x70   : > { %1901 = vmatpush.msrb.mxu3 %v1840_v33 }
  0x72   : > { %2430 = vmatmul.msk.f32.gmra.mxu2 %vm590_vm0, %v3352_v27  ;;  %1902 = vmatpush.msrb.mxu3 %v1839_v48 }
  0x73   : > { %2450 = vmatmul.msk.f32.gmra.mxu3 %vm590_vm0, %v3354_v32 }
  0x74   : > { %1903 = vmatpush.msrb.mxu3 %v1838_v56  ;;  %v1835_v56 = vld [vmem:[#allocation3 + $0x1c0] sm:$0xff] }
  0x75   : > { %2442 = vmatmul.msk.f32.gmra.mxu1 %vm590_vm0, %v3358_v30 }
  0x76   : > { %2484 = vmatmul.msk.f32.gmra.mxu0 %vm590_vm0, %v3298_v61  ;;  %v1976_v61 = vld [vmem:[#allocation3 + $0x218] sm:$0xff]  ;;  %1904 = vmatpush.msrb.mxu3 %v1837_v46 }
  0x77   : > { %2041 = vmatpush.msra.mxu0 %v1976_v61 }
  0x78   : > { %1905 = vmatpush.msrb.mxu3 %v1836_v10 }
  0x79   : > { %2042 = vmatpush.msra.mxu0 %v1975_v16  ;;  %v3524_v16 = vld [vmem:[#allocation2 + $0x6a] sm:$0xff] }
  0x7a   : > { %2451 = vmatmul.msk.f32.vlgmr.msrb.gmra.mxu2 %vm590_vm0, %v1128_v7  ;;  %1906 = vmatpush.msrb.mxu3 %v1835_v56 }
  0x7b   : > { %2467 = vmatmul.msk.f32.vlgmr.msra.gmra.mxu3 %vm590_vm0, %v3274_v44  ;;  %v1130_v44 = vld [vmem:[#allocation2 + $0x12] sm:$0xff]  ;;  %2043 = vmatpush.msra.mxu0 %v1974_v35 }
  0x7d   : > { %2443 = vmatmul.msk.f32.gmra.mxu1 %vm590_vm0, %v3367_v38 }
  0x7e   : > { %2485 = vmatmul.msk.f32.gmra.mxu0 %vm590_vm0, %v3316_v15 }
  0x82   : > { %2452 = vmatmul.msk.f32.gmra.mxu2 %vm590_vm0, %v1129_v41 }
  0x83   : > { %2468 = vmatmul.msk.f32.gmra.mxu3 %vm590_vm0, %v3296_v60  ;;  %v620_v60 = vld [vmem:[%s2982_s22 + $0x38] sm:$0xff] }
  0x84   : > { %v631_v62 = vmul.f32 %v3009_v13, %v620_v60  ;;  %v1699_v13 = vld [vmem:[#allocation3 + $0x190] sm:$0xff] }
  0x85   : > { %2444 = vmatmul.msk.f32.gmra.mxu1 %vm590_vm0, %v3376_v34  ;;  %1766 = vmatpush.msra.mxu2 %v1699_v13 }
  0x86   : > { %2486 = vmatmul.msk.f32.gmra.mxu0 %vm590_vm0, %v3332_v29  ;;  %v642_v2 = vadd.f32 %v3011_v14, %v631_v62 }
  0x87   : > { %1767 = vmatpush.msra.mxu2 %v1698_v24  ;;  %v2115_v24 = vld [vmem:[%s3844_s8 + $0x8] sm:$0xff] }
  0x88   : > { %v2416_v6 = vmul.f32 -1.442695, %v642_v2 }
  0x89   : > { %1768 = vmatpush.msra.mxu2 %v1697_v54 }
  0x8a   : > { %2453 = vmatmul.msk.f32.gmra.mxu2 %vm590_vm0, %v1130_v44  ;;  %2709 = vpow2.f32 %v2416_v6  ;;  %v3506_v6 = vld [vmem:[#allocation2 + $0x62] sm:$0xff] }
  0x8b   : > { %2469 = vmatmul.msk.f32.gmra.mxu3 %vm590_vm0, %v3314_v11 }
  0x8d   : > { %2445 = vmatmul.msk.f32.gmra.mxu1 %vm590_vm0, %v3385_v45 }
  0x8e   : > { %2487 = vmatmul.msk.f32.gmra.mxu0 %vm590_vm0, %v3260_v40  ;;  %v3402_v40 = vld [vmem:[#allocation2 + $0x22] sm:$0xff] }
  0x90   : > { %v2710_v14 = vpop.eup %2709 }
  0x91   : > { %v674_v8 = vadd.f32 1.0, %v2710_v14 }
  0x92   : > { %2454 = vmatmul.msk.f32.gmra.mxu2 %vm590_vm0, %v1131_v49 }
  0x93   : > { %2470 = vmatmul.msk.f32.gmra.mxu3 %vm590_vm0, %v3330_v18  ;;  %2711 = vrcp.f32 %v674_v8  ;;  %v791_v7 = vand.u32 2147483648, %v674_v8  ;;  %vm785_vm14 = vweird.f32 %v674_v8  ;;  %v789_v33 = vand.u32 2147483647, %v674_v8 }
  0x95   : > { %2446 = vmatmul.msk.f32.gmra.mxu1 %vm590_vm0, %v3394_v51  ;;  %v792_v41 = vor.u32 1.1754944e-38, %v791_v7  ;;  %vm790_vm7 = vcmp.eq.f32.partialorder %v789_v33, 8.507059e+37 }
  0x96   : > { %2488 = vmatmul.msk.f32.gmra.mxu0 %vm590_vm0, %v3286_v50 }
  0x99   : > { %v2712_v3 = vpop.eup %2711 }
  0x9a   : > { %2455 = vmatmul.msk.f32.gmra.mxu2 %vm590_vm0, %v3402_v40  ;;  %v781_v20 = vmul.f32 %v2712_v3, %v674_v8  ;;  %vm786_vm15 = vweird.f32 %v2712_v3 }
  0x9b   : > { %2471 = vmatmul.msk.f32.gmra.mxu3 %vm590_vm0, %v3344_v25  ;;  %vm787_vm1 = vmor %vm785_vm14, %vm786_vm15 }
  0x9c   : > { %v782_v26 = vsub.f32 1.0, %v781_v20  ;;  %v3530_v20 = vld [vmem:[#allocation2 + $0x89] sm:$0xff] }
  0x9d   : > { %2447 = vmatmul.msk.f32.gmra.mxu1 %vm590_vm0, %v3406_v53 }
  0x9e   : > { %2489 = vmatmul.msk.f32.gmra.mxu0 %vm590_vm0, %v3306_v4  ;;  %v783_v37 = vmul.f32 %v2712_v3, %v782_v26 }
  0xa0   : > { %v784_v39 = vadd.f32 %v2712_v3, %v783_v37  ;;  %v3539_v37 = vld [vmem:[#allocation2 + $0x72] sm:$0xff] }
  0xa2   : > { %2456 = vmatmul.msk.f32.gmra.mxu2 %vm590_vm0, %v3417_v52  ;;  %v788_v23 = vsel %vm787_vm1, %v2712_v3, %v784_v39 }
  0xa3   : > { %2472 = vmatmul.msk.f32.gmra.mxu3 %vm590_vm0, %v3358_v30  ;;  %v793_v43 = vsel %vm790_vm7, %v792_v41, %v788_v23 }
  0xa5   : > { %v3425_v59 = vpop.f32.mrf.mxu1  ;;  %2448 = vmatmul.msk.f32.gmra.mxu1 %vm590_vm0, %v3421_v58 }
  0xa6   : > { %2490 = vmatmul.msk.f32.gmra.mxu0 %vm590_vm0, %v3322_v28 }
  0xa9   : > { %v3443_v5 = vpop.f32.mrf.mxu0 }
  0xaa   : > { %2457 = vmatmul.msk.f32.gmra.mxu2 %vm590_vm0, %v3433_v1 }
  0xab   : > { %2473 = vmatmul.msk.f32.gmra.mxu3 %vm590_vm0, %v3367_v38 }
  0xad   : > { %v1091_v9 = vpop.f32.mrf.mxu1  ;;  %2499 = vmatmul.msk.f32.vlgmr.msrb.gmra.mxu1 %vm590_vm0, %v1130_v44  ;;  %v802_v44 = vmul.f32 %v793_v43, %v642_v2 }
  0xae   : > { %2491 = vmatmul.msk.f32.gmra.mxu0 %vm590_vm0, %v3338_v21 }
  0xaf   : > { %868 = vst.msk [vmem:[#allocation2 + $0x81] sm:$0xff] %vm590_vm0, %v802_v44 }
  0xb1   : > { %v986_v19 = vpop.f32.mrf.mxu0 }
  0xb2   : > { %2458 = vmatmul.msk.f32.gmra.mxu2 %vm590_vm0, %v3445_v63 }
  0xb3   : > { %2474 = vmatmul.msk.f32.gmra.mxu3 %vm590_vm0, %v3376_v34 }
  0xb5   : > { %2500 = vmatmul.msk.f32.gmra.mxu1 %vm590_vm0, %v1131_v49 }
  0xb6   : > { %2492 = vmatmul.msk.f32.gmra.mxu0 %vm590_vm0, %v3352_v27  ;;  %v3516_v46 = vld [vmem:[#allocation2 + $0x81] sm:$0xff] }
  0xb7   : > { %v3541_v7 = vld [vmem:[#allocation2 + $0x80] sm:$0xff]  ;;  %v3559_v35 = vld [vmem:[#allocation2 + $0x88] sm:$0xff] }
  0xb8   : > { %v3557_v43 = vld [vmem:[#allocation2 + $0x7a] sm:$0xff] }
  0xba   : > { %2459 = vmatmul.msk.f32.gmra.mxu2 %vm590_vm0, %v3454_v17 }
  0xbb   : > { %2475 = vmatmul.msk.f32.gmra.mxu3 %vm590_vm0, %v3385_v45 }
  0xbd   : > { %2501 = vmatmul.msk.f32.gmra.mxu1 %vm590_vm0, %v3402_v40 }
  0xbe   : > { %2493 = vmatmul.msk.f32.gmra.mxu0 %vm590_vm0, %v3266_v42  ;;  %v2116_v42 = vld [vmem:[%s3844_s8 + $0x10] sm:$0xff] }
  0xbf   : > { %2156 = vmatpush.msra.mxu1 %v2116_v42 }
  0xc1   : > { %2157 = vmatpush.msra.mxu1 %v2115_v24 }
  0xc2   : > { %2460 = vmatmul.msk.f32.gmra.mxu2 %vm590_vm0, %v3464_v36 }
  0xc3   : > { %2476 = vmatmul.msk.f32.gmra.mxu3 %vm590_vm0, %v3394_v51 }
  0xc5   : > { %2502 = vmatmul.msk.f32.gmra.mxu1 %vm590_vm0, %v3417_v52 }
  0xc6   : > { %2494 = vmatmul.msk.f32.gmra.mxu0 %vm590_vm0, %v3288_v55 }
  0xca   : > { %2461 = vmatmul.msk.f32.gmra.mxu2 %vm590_vm0, %v3477_v47  ;;  %v3482_v48 = vpop.f32.mrf.mxu1 }
  0xcb   : > { %2477 = vmatmul.msk.f32.gmra.mxu3 %vm590_vm0, %v3406_v53  ;;  %v3486_v49 = vpop.f32.mrf.mxu0 }
  0xcc   : > { %v1094_v24 = vadd.f32 %v3482_v48, %v3486_v49 }
  0xcd   : > { %v3488_v31 = vpop.f32.mrf.mxu2  ;;  %2503 = vmatmul.msk.f32.gmra.mxu1 %vm590_vm0, %v3433_v1 }
  0xce   : > { %v3492_v55 = vpop.f32.mrf.mxu3  ;;  %2495 = vmatmul.msk.f32.gmra.mxu0 %vm590_vm0, %v3308_v12  ;;  %v1973_v12 = vld [vmem:[#allocation3 + $0x200] sm:$0xff] }
  0xcf   : > { %2044 = vmatpush.msra.mxu0 %v1973_v12 }
  0xd2   : > { %2462 = vmatmul.msk.f32.gmra.mxu2 %vm590_vm0, %v3496_v57  ;;  %v1096_v60 = vpop.f32.mrf.mxu1 }
  0xd3   : > { %2478 = vmatmul.msk.f32.gmra.mxu3 %vm590_vm0, %v3421_v58  ;;  %v991_v61 = vpop.f32.mrf.mxu0 }
  0xd5   : > { %v1001_v62 = vpop.f32.mrf.mxu2  ;;  %2504 = vmatmul.msk.f32.gmra.mxu1 %vm590_vm0, %v3445_v63 }
  0xd6   : > { %v1016_v2 = vpop.f32.mrf.mxu3  ;;  %2496 = vmatmul.msk.f32.gmra.mxu0 %vm590_vm0, %v3324_v0  ;;  %v1089_v62 = vadd.f32 %v3425_v59, %v3443_v5  ;;  %v2114_v59 = vld [vmem:[%s3844_s8] sm:$0xff] }
  0xd7   : > { %2158 = vmatpush.msra.mxu1 %v2114_v59  ;;  %v2107_v59 = vld [vmem:[%s3644_s11 + $0x8] sm:$0xff] }
  0xda   : > { %2463 = vmatmul.msk.f32.gmra.mxu2 %vm590_vm0, %v3506_v6  ;;  %v3510_v9 = vpop.f32.mrf.mxu1 }
  0xdb   : > { %2479 = vmatmul.msk.f32.gmra.mxu3 %vm590_vm0, %v3340_v22  ;;  %v3514_v13 = vpop.f32.mrf.mxu0 }
  0xdd   : > { %v3518_v14 = vpop.f32.mrf.mxu2  ;;  %2505 = vmatmul.msk.f32.gmra.mxu1 %vm590_vm0, %v3454_v17 }
  0xde   : > { %v1018_v8 = vpop.f32.mrf.mxu3  ;;  %2497 = vmatmul.msk.f32.gmra.mxu0 %vm590_vm0, %v3516_v46 }
  0xe2   : > { %2464 = vmatmul.msk.f32.gmra.mxu2 %vm590_vm0, %v3524_v16  ;;  %v1101_v19 = vpop.f32.mrf.mxu1 }
  0xe3   : > { %2480 = vmatmul.msk.f32.gmra.mxu3 %vm590_vm0, %v3354_v32  ;;  %v996_v3 = vpop.f32.mrf.mxu0 }
  0xe4   : > { %v1820_v3 = vld [vmem:[#allocation2 + $0x31] sm:$0xff] }
  0xe5   : > { %v1006_v10 = vpop.f32.mrf.mxu2  ;;  %2506 = vmatmul.msk.f32.gmra.mxu1 %vm590_vm0, %v3464_v36 }
  0xe6   : > { %v1021_v26 = vpop.f32.mrf.mxu3  ;;  %2498 = vmatmul.msk.f32.gmra.mxu0 %vm590_vm0, %v3530_v20 }
  0xea   : > { %2465 = vmatmul.msk.f32.gmra.mxu2 %vm590_vm0, %v3539_v37  ;;  %v3545_v39 = vpop.f32.mrf.mxu1 }
  0xeb   : > { %2481 = vmatmul.msk.f32.gmra.mxu3 %vm590_vm0, %v3541_v7  ;;  %v1494_v33 = vpop.f32.mrf.mxu0 }
  0xed   : > { %v3549_v42 = vpop.f32.mrf.mxu2  ;;  %2507 = vmatmul.msk.f32.gmra.mxu1 %vm590_vm0, %v3477_v47 }
  0xee   : > { %v1123_v41 = vpop.f32.mrf.mxu3  ;;  %2547 = vmatmul.msk.f32.vlgmr.msra.gmra.mxu0 %vm590_vm0, %v3402_v40 }
  0xef   : > { %v3555_v23 = vadd.f32 %v1123_v41, %v1018_v8 }
  0xf2   : > { %2466 = vmatmul.msk.f32.gmra.mxu2 %vm590_vm0, %v3557_v43  ;;  %v1106_v44 = vpop.f32.mrf.mxu1 }
  0xf3   : > { %2482 = vmatmul.msk.f32.gmra.mxu3 %vm590_vm0, %v3559_v35  ;;  %v1497_v54 = vpop.f32.mrf.mxu0 }
  0xf4   : > { %v3617_v54 = vld [vmem:[#allocation2 + $0x82] sm:$0xff] }
  0xf5   : > { %v1011_v56 = vpop.f32.mrf.mxu2  ;;  %2508 = vmatmul.msk.f32.gmra.mxu1 %vm590_vm0, %v3496_v57 }
  0xf6   : > { %v1126_v60 = vpop.f32.mrf.mxu3  ;;  %2548 = vmatmul.msk.f32.gmra.mxu0 %vm590_vm0, %v3417_v52 }
  0xfa   : > { %2515 = vmatmul.msk.f32.vlgmr.msra.gmra.mxu2 %vm590_vm0, %v3314_v11  ;;  %v3571_v40 = vpop.f32.mrf.mxu1 }
  0xfb   : > { %2531 = vmatmul.msk.f32.vlgmr.msrb.gmra.mxu3 %vm590_vm0, %v3316_v15  ;;  %v1499_v61 = vpop.f32.mrf.mxu0 }
  0xfd   : > { %v1218_v2 = vpop.f32.mrf.mxu2  ;;  %2509 = vmatmul.msk.f32.gmra.mxu1 %vm590_vm0, %v3506_v6 }
  0xfe   : > { %v1258_v12 = vadd.f32 %v1218_v2, %v1089_v62  ;;  %v1356_v8 = vpop.f32.mrf.mxu3  ;;  %2549 = vmatmul.msk.f32.gmra.mxu0 %vm590_vm0, %v3433_v1  ;;  %v3631_v62 = vld [vmem:[#allocation2 + $0x8a] sm:$0xff] }
 0x100   : > { %v1396_v52 = vadd.f32 %v1356_v8, %v1258_v12 }
 0x102   : > { %v1534_v11 = vadd.f32 %v1494_v33, %v1396_v52  ;;  %2516 = vmatmul.msk.f32.gmra.mxu2 %vm590_vm0, %v3330_v18  ;;  %v1111_v19 = vpop.f32.mrf.mxu1 }
 0x103   : > { %2532 = vmatmul.msk.f32.gmra.mxu3 %vm590_vm0, %v3332_v29  ;;  %v1502_v15 = vpop.f32.mrf.mxu0 }
 0x105   : > { %v1221_v5 = vpop.f32.mrf.mxu2  ;;  %2510 = vmatmul.msk.f32.gmra.mxu1 %vm590_vm0, %v3524_v16 }
 0x106   : > { %v1359_v1 = vpop.f32.mrf.mxu3  ;;  %2550 = vmatmul.msk.f32.gmra.mxu0 %vm590_vm0, %v3445_v63 }
 0x10a   : > { %2517 = vmatmul.msk.f32.gmra.mxu2 %vm590_vm0, %v3344_v25  ;;  %v3594_v18 = vpop.f32.mrf.mxu1 }
 0x10b   : > { %2533 = vmatmul.msk.f32.gmra.mxu3 %vm590_vm0, %v1820_v3  ;;  %v1504_v29 = vpop.f32.mrf.mxu0 }
 0x10d   : > { %v1223_v10 = vpop.f32.mrf.mxu2  ;;  %2511 = vmatmul.msk.f32.gmra.mxu1 %vm590_vm0, %v3539_v37 }
 0x10e   : > { %v1259_v26 = vadd.f32 %v1223_v10, %v1094_v24  ;;  %v1361_v33 = vpop.f32.mrf.mxu3  ;;  %2551 = vmatmul.msk.f32.gmra.mxu0 %vm590_vm0, %v3454_v17  ;;  %v1827_v10 = vld [vmem:[#allocation2 + $0x69] sm:$0xff] }
 0x110   : > { %v1397_v63 = vadd.f32 %v1361_v33, %v1259_v26 }
 0x112   : > { %v3603_v41 = vadd.f32 %v1499_v61, %v1397_v63  ;;  %2518 = vmatmul.msk.f32.gmra.mxu2 %vm590_vm0, %v3358_v30  ;;  %v1116_v25 = vpop.f32.mrf.mxu1  ;;  %v1099_v30 = vadd.f32 %v3510_v9, %v3514_v13 }
 0x113   : > { %2534 = vmatmul.msk.f32.gmra.mxu3 %vm590_vm0, %v3286_v50  ;;  %v1507_v48 = vpop.f32.mrf.mxu0 }
 0x114   : > { %v2110_v48 = vld [vmem:[%s3644_s11 + $0x20] sm:$0xff] }
 0x115   : > { %v1226_v49 = vpop.f32.mrf.mxu2  ;;  %2512 = vmatmul.msk.f32.gmra.mxu1 %vm590_vm0, %v3557_v43 }
 0x116   : > { %v1364_v44 = vpop.f32.mrf.mxu3  ;;  %2552 = vmatmul.msk.f32.gmra.mxu0 %vm590_vm0, %v3464_v36  ;;  %v1114_v49 = vadd.f32 %v3594_v18, %v3549_v42  ;;  %v2111_v42 = vld [vmem:[%s3644_s11 + $0x28] sm:$0xff] }
 0x11a   : > { %2519 = vmatmul.msk.f32.gmra.mxu2 %vm590_vm0, %v3367_v38  ;;  %v3615_v17 = vpop.f32.mrf.mxu1 }
 0x11b   : > { %2535 = vmatmul.msk.f32.gmra.mxu3 %vm590_vm0, %v3306_v4  ;;  %v1509_v50 = vpop.f32.mrf.mxu0 }
 0x11d   : > { %v1228_v56 = vpop.f32.mrf.mxu2  ;;  %2513 = vmatmul.msk.f32.gmra.mxu1 %vm590_vm0, %v3617_v54 }
 0x11e   : > { %v1260_v36 = vadd.f32 %v1228_v56, %v1099_v30  ;;  %v1366_v60 = vpop.f32.mrf.mxu3  ;;  %2553 = vmatmul.msk.f32.gmra.mxu0 %vm590_vm0, %v3477_v47 }
 0x120   : > { %v1398_v38 = vadd.f32 %v1366_v60, %v1260_v36 }
 0x122   : > { %v3627_v61 = vadd.f32 %v1504_v29, %v1398_v38  ;;  %2520 = vmatmul.msk.f32.gmra.mxu2 %vm590_vm0, %v3376_v34  ;;  %v1121_v4 = vpop.f32.mrf.mxu1  ;;  %v2106_v34 = vld [vmem:[%s3644_s11] sm:$0xff] }
 0x123   : > { %2536 = vmatmul.msk.f32.gmra.mxu3 %vm590_vm0, %v3322_v28  ;;  %v1512_v9 = vpop.f32.mrf.mxu0  ;;  %v1119_v4 = vadd.f32 %v3615_v17, %v3492_v55  ;;  %v2113_v55 = vld [vmem:[%s3644_s11 + $0x38] sm:$0xff] }
 0x125   : > { %v1231_v13 = vpop.f32.mrf.mxu2  ;;  %2514 = vmatmul.msk.f32.gmra.mxu1 %vm590_vm0, %v3631_v62 }
 0x126   : > { %v1369_v2 = vpop.f32.mrf.mxu3  ;;  %2554 = vmatmul.msk.f32.gmra.mxu0 %vm590_vm0, %v3496_v57  ;;  %v1104_v57 = vadd.f32 %v3545_v39, %v3488_v31 }
 0x12a   : > { %2521 = vmatmul.msk.f32.gmra.mxu2 %vm590_vm0, %v3385_v45  ;;  %v1632_v28 = vpop.f32.mrf.mxu1 }
 0x12b   : > { %2537 = vmatmul.msk.f32.gmra.mxu3 %vm590_vm0, %v3338_v21  ;;  %v1514_v47 = vpop.f32.mrf.mxu0  ;;  %v3653_v12 = vadd.f32 %v1632_v28, %v1534_v11 }
 0x12d   : > { %v1233_v8 = vpop.f32.mrf.mxu2  ;;  %2563 = vmatmul.msk.f32.vlgmr.msra.gmra.mxu1 %vm2118_vm2, %v2106_v34  ;;  %v1971_v34 = vld [vmem:[#allocation2 + $0x9a] sm:$0xff] }
 0x12e   : > { %v1261_v52 = vadd.f32 %v1233_v8, %v1104_v57  ;;  %v1371_v19 = vpop.f32.mrf.mxu3  ;;  %2555 = vmatmul.msk.f32.gmra.mxu0 %vm590_vm0, %v3506_v6  ;;  %v1826_v6 = vld [vmem:[#allocation2 + $0x61] sm:$0xff]  ;;  %v1694_v8 = vld [vmem:[#allocation2 + $0x90] sm:$0xff] }
 0x130   : > { %v1399_v45 = vadd.f32 %v1371_v19, %v1261_v52  ;;  %v1832_v52 = vld [vmem:[#allocation2 + $0x91] sm:$0xff] }
 0x132   : > { %v3658_v15 = vadd.f32 %v1509_v50, %v1399_v45  ;;  %2522 = vmatmul.msk.f32.gmra.mxu2 %vm590_vm0, %v3394_v51  ;;  %v1635_v21 = vpop.f32.mrf.mxu1  ;;  %v2108_v51 = vld [vmem:[%s3644_s11 + $0x10] sm:$0xff] }
 0x133   : > { %2538 = vmatmul.msk.f32.gmra.mxu3 %vm590_vm0, %v3352_v27  ;;  %v1517_v31 = vpop.f32.mrf.mxu0  ;;  %v1109_v27 = vadd.f32 %v3571_v40, %v3518_v14  ;;  %v2109_v40 = vld [vmem:[%s3644_s11 + $0x18] sm:$0xff] }
 0x135   : > { %v1236_v39 = vpop.f32.mrf.mxu2  ;;  %2564 = vmatmul.msk.f32.gmra.mxu1 %vm2118_vm2, %v2107_v59  ;;  %v1695_v59 = vld [vmem:[#allocation2 + $0x98] sm:$0xff] }
 0x136   : > { %v1374_v11 = vpop.f32.mrf.mxu3  ;;  %2556 = vmatmul.msk.f32.gmra.mxu0 %vm590_vm0, %v3524_v16  ;;  %v1833_v39 = vld [vmem:[#allocation2 + $0x99] sm:$0xff] }
 0x13a   : > { %2523 = vmatmul.msk.f32.gmra.mxu2 %vm590_vm0, %v3406_v53  ;;  %v1637_v5 = vpop.f32.mrf.mxu1 }
 0x13b   : > { %2539 = vmatmul.msk.f32.gmra.mxu3 %vm590_vm0, %v1826_v6  ;;  %v1519_v1 = vpop.f32.mrf.mxu0  ;;  %v3675_v3 = vadd.f32 %v1637_v5, %v3603_v41 }
 0x13d   : > { %v1238_v29 = vpop.f32.mrf.mxu2  ;;  %2565 = vmatmul.msk.f32.gmra.mxu1 %vm2118_vm2, %v2108_v51 }
 0x13e   : > { %v1262_v16 = vadd.f32 %v1238_v29, %v1109_v27  ;;  %v1376_v24 = vpop.f32.mrf.mxu3  ;;  %2557 = vmatmul.msk.f32.gmra.mxu0 %vm590_vm0, %v3539_v37  ;;  %v1828_v37 = vld [vmem:[#allocation2 + $0x71] sm:$0xff] }
 0x140   : > { %v1400_v53 = vadd.f32 %v1376_v24, %v1262_v16 }
 0x142   : > { %v3680_v26 = vadd.f32 %v1514_v47, %v1400_v53  ;;  %2524 = vmatmul.msk.f32.gmra.mxu2 %vm590_vm0, %v3421_v58  ;;  %v1640_v14 = vpop.f32.mrf.mxu1 }
 0x143   : > { %2540 = vmatmul.msk.f32.gmra.mxu3 %vm590_vm0, %v1827_v10  ;;  %v1522_v33 = vpop.f32.mrf.mxu0 }
 0x145   : > { %v1241_v63 = vpop.f32.mrf.mxu2  ;;  %2566 = vmatmul.msk.f32.gmra.mxu1 %vm2118_vm2, %v2109_v40 }
 0x146   : > { %v1379_v41 = vpop.f32.mrf.mxu3  ;;  %2558 = vmatmul.msk.f32.gmra.mxu0 %vm590_vm0, %v3557_v43 }
 0x14a   : > { %2525 = vmatmul.msk.f32.gmra.mxu2 %vm590_vm0, %v3340_v22  ;;  %v1642_v25 = vpop.f32.mrf.mxu1 }
 0x14b   : > { %2541 = vmatmul.msk.f32.gmra.mxu3 %vm590_vm0, %v1828_v37  ;;  %v1524_v58 = vpop.f32.mrf.mxu0  ;;  %v3696_v44 = vadd.f32 %v1642_v25, %v3627_v61 }
 0x14d   : > { %v1243_v50 = vpop.f32.mrf.mxu2  ;;  %2567 = vmatmul.msk.f32.gmra.mxu1 %vm2118_vm2, %v2110_v48 }
 0x14e   : > { %v1263_v43 = vadd.f32 %v1243_v50, %v1114_v49  ;;  %v1381_v30 = vpop.f32.mrf.mxu3  ;;  %2559 = vmatmul.msk.f32.gmra.mxu0 %vm590_vm0, %v3617_v54 }
 0x150   : > { %v1401_v22 = vadd.f32 %v1381_v30, %v1263_v43 }
 0x152   : > { %v1539_v56 = vadd.f32 %v1519_v1, %v1401_v22  ;;  %2526 = vmatmul.msk.f32.gmra.mxu2 %vm590_vm0, %v3354_v32  ;;  %v1645_v36 = vpop.f32.mrf.mxu1  ;;  %v2112_v32 = vld [vmem:[%s3644_s11 + $0x30] sm:$0xff]  ;;  %s2227_s11 = sshll.u32 %s3760_s26, 4  ;;  %s2228_s11 = int_to_ptr.vmem [resolvable:$true] %s2227_s11 }
 0x153   : > { %2542 = vmatmul.msk.f32.gmra.mxu3 %vm590_vm0, %v3324_v0  ;;  %v1527_v18 = vpop.f32.mrf.mxu0  ;;  %v1970_v0 = vld [vmem:[#allocation2 + $0x92] sm:$0xff] }
 0x155   : > { %v1246_v60 = vpop.f32.mrf.mxu2  ;;  %2568 = vmatmul.msk.f32.gmra.mxu1 %vm2118_vm2, %v2111_v42 }
 0x156   : > { %v1384_v38 = vpop.f32.mrf.mxu3  ;;  %2560 = vmatmul.msk.f32.gmra.mxu0 %vm590_vm0, %v3631_v62 }
 0x15a   : > { %2527 = vmatmul.msk.f32.gmra.mxu2 %vm590_vm0, %v3541_v7  ;;  %v1647_v54 = vpop.f32.mrf.mxu1 }
 0x15b   : > { %2543 = vmatmul.msk.f32.gmra.mxu3 %vm590_vm0, %v3516_v46  ;;  %v1529_v61 = vpop.f32.mrf.mxu0  ;;  %v3717_v9 = vadd.f32 %v1647_v54, %v3658_v15 }
 0x15d   : > { %v1248_v13 = vpop.f32.mrf.mxu2  ;;  %2569 = vmatmul.msk.f32.gmra.mxu1 %vm2118_vm2, %v2112_v32 }
 0x15e   : > { %v1264_v2 = vadd.f32 %v1248_v13, %v1119_v4  ;;  %v1386_v62 = vpop.f32.mrf.mxu3  ;;  %2561 = vmatmul.msk.f32.gmra.mxu0 %vm590_vm0, %v1970_v0  ;;  %v3747_v0 = vld [vmem:[%s3842_s6] ss:$0 sm:$0xff] }
 0x15f   : > { %v3756_v13 = vld [vmem:[%s3845_s9] ss:$0 sm:$0xff] }
 0x160   : > { %v1402_v7 = vadd.f32 %v1386_v62, %v1264_v2 }
 0x162   : > { %v1540_v28 = vadd.f32 %v1524_v58, %v1402_v7  ;;  %2528 = vmatmul.msk.f32.gmra.mxu2 %vm590_vm0, %v3559_v35  ;;  %v1650_v46 = vpop.f32.mrf.mxu1 }
 0x163   : > { %2544 = vmatmul.msk.f32.gmra.mxu3 %vm590_vm0, %v3530_v20  ;;  %v1532_v17 = vpop.f32.mrf.mxu0 }
 0x165   : > { %v1251_v47 = vpop.f32.mrf.mxu2  ;;  %2570 = vmatmul.msk.f32.gmra.mxu1 %vm2118_vm2, %v2113_v55 }
 0x166   : > { %v1389_v57 = vpop.f32.mrf.mxu3  ;;  %2562 = vmatmul.msk.f32.gmra.mxu0 %vm590_vm0, %v1971_v34 }
 0x16a   : > { %2529 = vmatmul.msk.f32.gmra.mxu2 %vm590_vm0, %v1694_v8  ;;  %v1652_v19 = vpop.f32.mrf.mxu1 }
 0x16b   : > { %2545 = vmatmul.msk.f32.gmra.mxu3 %vm590_vm0, %v1832_v52  ;;  %v2046_v35 = vpop.f32.mrf.mxu0  ;;  %v3731_v45 = vadd.f32 %v1652_v19, %v3680_v26 }
 0x16d   : > { %v1253_v20 = vpop.f32.mrf.mxu2 }
 0x16e   : > { %v1265_v15 = vadd.f32 %v1253_v20, %v3555_v23  ;;  %v1391_v21 = vpop.f32.mrf.mxu3 }
 0x170   : > { %v1403_v31 = vadd.f32 %v1391_v21, %v1265_v15 }
 0x172   : > { %v1541_v11 = vadd.f32 %v1529_v61, %v1403_v31  ;;  %2530 = vmatmul.msk.f32.gmra.mxu2 %vm590_vm0, %v1695_v59  ;;  %v1655_v6 = vpop.f32.mrf.mxu1 }
 0x173   : > { %2546 = vmatmul.msk.f32.gmra.mxu3 %vm590_vm0, %v1833_v39  ;;  %v2049_v5 = vpop.f32.mrf.mxu0 }
 0x175   : > { %v1256_v51 = vpop.f32.mrf.mxu2 }
 0x176   : > { %v1394_v1 = vpop.f32.mrf.mxu3 }
 0x17a   : > { %v1657_v27 = vpop.f32.mrf.mxu1 }
 0x17b   : > { %v2051_v29 = vpop.f32.mrf.mxu0  ;;  %v3736_v16 = vadd.f32 %v1657_v27, %v1539_v56 }
 0x17d   : > { %v1770_v24 = vpop.f32.mrf.mxu2 }
 0x17e   : > { %v1908_v53 = vpop.f32.mrf.mxu3  ;;  %v1810_v56 = vadd.f32 %v1770_v24, %v3653_v12 }
 0x180   : > { %v1948_v42 = vadd.f32 %v1908_v53, %v1810_v56 }
 0x182   : > { %v1660_v23 = vpop.f32.mrf.mxu1  ;;  %v2086_v54 = vadd.f32 %v2046_v35, %v1948_v42 }
 0x183   : > { %v2054_v10 = vpop.f32.mrf.mxu0 }
 0x184   : > { %v2098_v12 = vadd.f32 %v3747_v0, %v2086_v54 }
 0x185   : > { %v1773_v26 = vpop.f32.mrf.mxu2 }
 0x186   : > { %v1911_v14 = vpop.f32.mrf.mxu3 }
 0x18a   : > { %v1662_v40 = vpop.f32.mrf.mxu1 }
 0x18b   : > { %v2056_v33 = vpop.f32.mrf.mxu0  ;;  %v3738_v63 = vadd.f32 %v1662_v40, %v1540_v28 }
 0x18d   : > { %v1775_v41 = vpop.f32.mrf.mxu2 }
 0x18e   : > { %v1913_v37 = vpop.f32.mrf.mxu3  ;;  %v1811_v32 = vadd.f32 %v1775_v41, %v3675_v3 }
 0x190   : > { %v1949_v4 = vadd.f32 %v1913_v37, %v1811_v32 }
 0x192   : > { %v1665_v25 = vpop.f32.mrf.mxu1  ;;  %v2087_v28 = vadd.f32 %v2051_v29, %v1949_v4 }
 0x193   : > { %v2059_v48 = vpop.f32.mrf.mxu0 }
 0x194   : > { %v2099_v47 = vadd.f32 %v3747_v0, %v2087_v28 }
 0x195   : > { %v1778_v58 = vpop.f32.mrf.mxu2 }
 0x196   : > { %v1916_v49 = vpop.f32.mrf.mxu3 }
 0x19a   : > { %v1667_v50 = vpop.f32.mrf.mxu1 }
 0x19b   : > { %v2061_v43 = vpop.f32.mrf.mxu0  ;;  %v3740_v30 = vadd.f32 %v1667_v50, %v1541_v11 }
 0x19d   : > { %v1780_v22 = vpop.f32.mrf.mxu2 }
 0x19e   : > { %v1918_v36 = vpop.f32.mrf.mxu3  ;;  %v1812_v46 = vadd.f32 %v1780_v22, %v3696_v44 }
 0x1a0   : > { %v1950_v34 = vadd.f32 %v1918_v36, %v1812_v46 }
 0x1a2   : > { %v1670_v18 = vpop.f32.mrf.mxu1  ;;  %v2088_v35 = vadd.f32 %v2056_v33, %v1950_v34 }
 0x1a3   : > { %v2064_v60 = vpop.f32.mrf.mxu0 }
 0x1a4   : > { %v2100_v59 = vadd.f32 %v3747_v0, %v2088_v35 }
 0x1a5   : > { %v1783_v38 = vpop.f32.mrf.mxu2 }
 0x1a6   : > { %v1921_v61 = vpop.f32.mrf.mxu3 }
 0x1aa   : > { %v2160_v2 = vpop.f32.mrf.mxu1 }
 0x1ab   : > { %v2066_v62 = vpop.f32.mrf.mxu0  ;;  %v2184_v3 = vadd.f32 %v2160_v2, %v2098_v12 }
 0x1ad   : > { %v1785_v7 = vpop.f32.mrf.mxu2  ;;  %v2196_v55 = vadd.f32 %v3756_v13, %v2184_v3 }
 0x1ae   : > { %v1923_v17 = vpop.f32.mrf.mxu3  ;;  %v1813_v44 = vadd.f32 %v1785_v7, %v3717_v9 }
 0x1af   : > { %2204 = vst.msk [vmem:[%s3760_s26] sm:$0xff] %vm590_vm0, %v2196_v55 }
 0x1b0   : > { %v1951_v21 = vadd.f32 %v1923_v17, %v1813_v44 }
 0x1b2   : > { %v2163_v57 = vpop.f32.mrf.mxu1  ;;  %v2089_v5 = vadd.f32 %v2061_v43, %v1951_v21 }
 0x1b3   : > { %v2069_v8 = vpop.f32.mrf.mxu0  ;;  %v2185_v52 = vadd.f32 %v2163_v57, %v2099_v47 }
 0x1b4   : > { %v2101_v29 = vadd.f32 %v3747_v0, %v2089_v5 }
 0x1b5   : > { %v1788_v19 = vpop.f32.mrf.mxu2  ;;  %v2197_v20 = vadd.f32 %v3756_v13, %v2185_v52 }
 0x1b6   : > { %v1926_v15 = vpop.f32.mrf.mxu3 }
 0x1b7   : > { %2205 = vst.msk [vmem:[%s3760_s26 + $0x8] sm:$0xff] %vm590_vm0, %v2197_v20 }
 0x1ba   : > { %v2166_v31 = vpop.f32.mrf.mxu1 }
 0x1bb   : > { %v2071_v39 = vpop.f32.mrf.mxu0  ;;  %v2186_v11 = vadd.f32 %v2166_v31, %v2100_v59 }
 0x1bd   : > { %v1790_v6 = vpop.f32.mrf.mxu2  ;;  %v2198_v51 = vadd.f32 %v3756_v13, %v2186_v11 }
 0x1be   : > { %v1814_v1 = vadd.f32 %v1790_v6, %v3731_v45  ;;  %v1928_v27 = vpop.f32.mrf.mxu3 }
 0x1bf   : > { %2206 = vst.msk [vmem:[%s3760_s26 + $0x10] sm:$0xff] %vm590_vm0, %v2198_v51 }
 0x1c0   : > { %v1952_v9 = vadd.f32 %v1928_v27, %v1814_v1 }
 0x1c2   : > { %v2169_v24 = vpop.f32.mrf.mxu1  ;;  %v2090_v14 = vadd.f32 %v2066_v62, %v1952_v9 }
 0x1c3   : > { %v2074_v53 = vpop.f32.mrf.mxu0  ;;  %v2187_v23 = vadd.f32 %v2169_v24, %v2101_v29 }
 0x1c4   : > { %v2102_v33 = vadd.f32 %v3747_v0, %v2090_v14 }
 0x1c5   : > { %v1793_v10 = vpop.f32.mrf.mxu2  ;;  %v2199_v26 = vadd.f32 %v3756_v13, %v2187_v23 }
 0x1c6   : > { %v1931_v40 = vpop.f32.mrf.mxu3 }
 0x1c7   : > { %2207 = vst.msk [vmem:[%s3760_s26 + $0x18] sm:$0xff] %vm590_vm0, %v2199_v26 }
 0x1ca   : > { %v2172_v45 = vpop.f32.mrf.mxu1 }
 0x1cb   : > { %v2076_v41 = vpop.f32.mrf.mxu0  ;;  %v2188_v37 = vadd.f32 %v2172_v45, %v2102_v33 }
 0x1cd   : > { %v1795_v25 = vpop.f32.mrf.mxu2  ;;  %v2200_v48 = vadd.f32 %v3756_v13, %v2188_v37 }
 0x1ce   : > { %v1815_v58 = vadd.f32 %v1795_v25, %v3736_v16  ;;  %v1933_v49 = vpop.f32.mrf.mxu3 }
 0x1cf   : > { %2208 = vst.msk [vmem:[%s3760_s26 + $0x20] sm:$0xff] %vm590_vm0, %v2200_v48 }
 0x1d0   : > { %v1953_v50 = vadd.f32 %v1933_v49, %v1815_v58 }
 0x1d2   : > { %v2091_v43 = vadd.f32 %v2071_v39, %v1953_v50  ;;  %v2175_v22 = vpop.f32.mrf.mxu1 }
 0x1d3   : > { %v2079_v56 = vpop.f32.mrf.mxu0 }
 0x1d4   : > { %v2103_v36 = vadd.f32 %v3747_v0, %v2091_v43 }
 0x1d5   : > { %v1798_v42 = vpop.f32.mrf.mxu2 }
 0x1d6   : > { %v2189_v18 = vadd.f32 %v2175_v22, %v2103_v36  ;;  %v1936_v60 = vpop.f32.mrf.mxu3 }
 0x1d8   : > { %v2201_v38 = vadd.f32 %v3756_v13, %v2189_v18 }
 0x1da   : > { %2209 = vst.msk [vmem:[%s3760_s26 + $0x28] sm:$0xff] %vm590_vm0, %v2201_v38  ;;  %v2178_v2 = vpop.f32.mrf.mxu1 }
 0x1db   : > { %v2081_v54 = vpop.f32.mrf.mxu0 }
 0x1dd   : > { %v1800_v32 = vpop.f32.mrf.mxu2 }
 0x1de   : > { %v1816_v16 = vadd.f32 %v1800_v32, %v3738_v63  ;;  %v1938_v61 = vpop.f32.mrf.mxu3 }
 0x1e0   : > { %v1954_v4 = vadd.f32 %v1938_v61, %v1816_v16 }
 0x1e2   : > { %v2092_v12 = vadd.f32 %v2076_v41, %v1954_v4  ;;  %v2181_v8 = vpop.f32.mrf.mxu1 }
 0x1e3   : > { %v2084_v62 = vpop.f32.mrf.mxu0 }
 0x1e4   : > { %v2104_v3 = vadd.f32 %v3747_v0, %v2092_v12 }
 0x1e5   : > { %v1803_v7 = vpop.f32.mrf.mxu2 }
 0x1e6   : > { %v2190_v28 = vadd.f32 %v2178_v2, %v2104_v3  ;;  %v1941_v46 = vpop.f32.mrf.mxu3 }
 0x1e8   : > { %v2202_v55 = vadd.f32 %v3756_v13, %v2190_v28 }
 0x1ea   : > { %2210 = vst.msk [vmem:[%s3760_s26 + $0x30] sm:$0xff] %vm590_vm0, %v2202_v55 }
 0x1ed   : > { %v1805_v17 = vpop.f32.mrf.mxu2 }
 0x1ee   : > { %v1817_v34 = vadd.f32 %v1805_v17, %v3740_v30  ;;  %v1943_v63 = vpop.f32.mrf.mxu3 }
 0x1f0   : > { %v1955_v47 = vadd.f32 %v1943_v63, %v1817_v34 }
 0x1f2   : > { %v2093_v57 = vadd.f32 %v2081_v54, %v1955_v47 }
 0x1f4   : > { %v2105_v52 = vadd.f32 %v3747_v0, %v2093_v57 }
 0x1f5   : > { %v1808_v19 = vpop.f32.mrf.mxu2 }
 0x1f6   : > { %v2191_v35 = vadd.f32 %v2181_v8, %v2105_v52  ;;  %v1946_v44 = vpop.f32.mrf.mxu3 }
 0x1f8   : > { %v2203_v30 = vadd.f32 %v3756_v13, %v2191_v35 }
 0x1fa   : > { %2211 = vst.msk [vmem:[%s3760_s26 + $0x38] sm:$0xff] %vm590_vm0, %v2203_v30 }
 0x1fb   : > { %2770 = shalt.err (!%p2767_p9)
}
 0x1fc   : > { %s2831_s18 = smov 128   ;;  %s2832_s26 = smov 8  }
 0x1fd   : > { %2610 = dma.vmem_to_hbm [thread:$0]  (%p2928_p4), %s2228_s11, 1024, %s2230_s3, %s2213_s14, %s2831_s18, %s2831_s18, %s2832_s26  }
 0x1fe PF: > { %p2622_p10 = scmp.ge.s32.totalorder %s2825_s16, 2  ;;  %s2244_s30 = sand.u32 1, %s2805_s4  }
 0x1ff   : > { %s2245_s22 = scalar_lea.sflag [#allocation5], %s2244_s30 }
 0x200   : > { %p2617_p11 = pnand %p2622_p10, %p2935_p8 }
 0x202   : > { %p2618_p12 = pneg %p2617_p11 }
 0x204   : > { %2800 = dma.done.wait (%p2618_p12), %s2245_s22, 1024  }
 0x205   : > { %2802 = vsyncadd (%p2618_p12), %s2245_s22, 4294966272  ;;  %s24_s16 = sadd.s32 1, %s2825_s16   ;;  %s3871_s4 = smov %s2809_s12 }
 0x206   : > { %p21_p13 = scmp.ge.s32.totalorder %s24_s16, 4   ;;  %s3872_s12 = smov %s2813_s13 }
 0x207   : > { %s3873_s13 = smov %s2941_s24  ;;  %s3874_s14 = smov %s2821_s15 }
 0x208   : > { %s3875_s15 = smov %s3877_s19  ;;  %23 = sbr.rel (!%p21_p13) target bundleno = 5 (0x5), region = 123 }
 0x20d   :  { %2251 = vsyncpa [#allocation4], 1 }
 0x20e   :  { %2253 = vsyncpa [#allocation4 + $0x1], 1 }
 0x20f   :  { %2254 = vsyncpa [#allocation5], 1 }
 0x210   :  { %2256 = vsyncpa [#allocation5 + $0x1], 1 }

</bundles_post_ra>
